<compile_context>
chip_gen: v7x
topology: tpu7x:2x2x1
jax: 0.10.0
libtpu: 0.0.40
codegen_flags: <defaults>
</compile_context>

<pallas_src>
import functools

import jax
import jax.numpy as jnp
from jax import lax
from jax.experimental import pallas as pl
from jax.experimental.pallas import tpu as pltpu


def _round_up(x, m):
    return (x + m - 1) // m * m


# ---------------------------------------------------------------------------
# Pallas kernel: shifted-GEMM KxK conv + folded-BN shift + ReLU, for one
# (batch element, output row tile).  The M dimension is processed in sub-chunks
# of <=256 rows so the f32 accumulator stays register resident (no VMEM spill).
# ---------------------------------------------------------------------------
def _conv_bn_relu_kernel(x_ref, w_ref, shift_ref, o_ref, *, K, th_sub, n_sub, w_out):
    # x_ref:     (1, band_h, Wp, Cin)   halo row band of the padded input (bf16)
    # w_ref:     (K, K, Cin, Cout)      conv weight with BN scale folded in (bf16)
    # shift_ref: (1, Cout)              folded BN shift (f32)
    # o_ref:     (1, tile_h, w_out, Cout)
    cin = x_ref.shape[-1]
    cout = o_ref.shape[-1]
    shift = shift_ref[...]                         # (1, Cout) f32, broadcasts over rows

    for c in range(n_sub):                         # static sub-chunk loop (<=256 rows each)
        r0 = c * th_sub
        acc = jnp.zeros((th_sub * w_out, cout), jnp.float32)
        for ky in range(K):                        # unrolled: K*K shifted GEMMs (MXU)
            for kx in range(K):
                xs = x_ref[0, r0 + ky:r0 + ky + th_sub, kx:kx + w_out, :]
                xs = xs.reshape(th_sub * w_out, cin)
                acc = acc + jnp.dot(xs, w_ref[ky, kx],
                                    preferred_element_type=jnp.float32)
        y = jnp.maximum(acc + shift, 0.0)          # folded-BN shift + ReLU in f32
        o_ref[0, r0:r0 + th_sub, :, :] = (
            y.reshape(th_sub, w_out, cout).astype(o_ref.dtype))


def _vmem_limit(vmem_est):
    """Scoped VMEM request: estimate + slack, capped below physical capacity."""
    try:
        cap = int(pltpu.get_tpu_info().vmem_capacity_bytes)
    except Exception:
        cap = 64 << 20                             # assume most restrictive (v7x)
    cap -= 12 << 20                                # headroom for compiler scratch
    return int(max(16 << 20, min(vmem_est + (8 << 20), cap)))


def _conv_bn_relu_layer(x_pad, w, shift, *, H, W_out, tile_h, th_sub):
    """x_pad: (N, Hp, Wp, Cin) bf16 ; w: (K, K, Cin, Cout) bf16 ; shift: (1, Cout) f32
       -> (N, H, W_out, Cout) bf16"""
    N, Hp, Wp, Cin = x_pad.shape
    K = w.shape[0]
    Cout = w.shape[-1]
    assert H % tile_h == 0 and tile_h % th_sub == 0
    band_h = tile_h + K - 1
    n_row_tiles = H // tile_h
    n_sub = tile_h // th_sub

    kernel = functools.partial(_conv_bn_relu_kernel, K=K, th_sub=th_sub,
                               n_sub=n_sub, w_out=W_out)

    if band_h == Hp:
        # Tiny map: the whole padded image is exactly one band -> plain resident block.
        x_spec = pl.BlockSpec((1, Hp, Wp, Cin), lambda n, r: (n, 0, 0, 0))
    else:
        # Halo row band: overlapping windows via element-indexed H dimension.
        x_spec = pl.BlockSpec((1, pl.Element(band_h), Wp, Cin),
                              lambda n, r: (n, r * tile_h, 0, 0))

    itm = x_pad.dtype.itemsize
    vmem_est = (2 * band_h * Wp * Cin * itm          # input band (double-buffered)
                + 2 * K * K * Cin * Cout * itm       # weights
                + 2 * tile_h * W_out * Cout * itm    # output tiles (double-buffered)
                + 2 * Cout * 4                       # shift
                + 2 * th_sub * W_out * Cout * 4)     # accumulator / epilogue temps

    flops = 2 * N * H * W_out * K * K * Cin * Cout
    bytes_accessed = (N * Hp * Wp * Cin * itm + K * K * Cin * Cout * itm
                      + Cout * 4 + N * H * W_out * Cout * itm)

    return pl.pallas_call(
        kernel,
        out_shape=jax.ShapeDtypeStruct((N, H, W_out, Cout), x_pad.dtype),
        grid=(N, n_row_tiles),
        in_specs=[
            x_spec,
            # TODO(synk): pipeline_mode=pl.Buffered(1) here would single-buffer the
            #             grid-constant weight / shift blocks and save their copy.
            pl.BlockSpec((K, K, Cin, Cout), lambda n, r: (0, 0, 0, 0)),
            pl.BlockSpec((1, Cout), lambda n, r: (0, 0)),
        ],
        out_specs=pl.BlockSpec((1, tile_h, W_out, Cout), lambda n, r: (n, r, 0, 0)),
        compiler_params=pltpu.CompilerParams(
            dimension_semantics=("parallel", "parallel"),
            vmem_limit_bytes=_vmem_limit(vmem_est)),
        cost_estimate=pl.CostEstimate(
            flops=flops, transcendentals=0, bytes_accessed=bytes_accessed),
    )(x_pad, w, shift)


# ---------------------------------------------------------------------------
# Glue: params, tiling heuristics, per-layer padding / folding, block chaining
# ---------------------------------------------------------------------------
def _pick_tiles(H, W_out, tile_h=None):
    if tile_h is None:
        if H * W_out <= 4096:
            tile_h = H                         # tiny map: whole-image row residency
        else:
            tile_h = 1
            for d in range(1, H + 1):          # largest divisor with ~2K GEMM rows/tile
                if H % d == 0 and d * W_out <= 2048:
                    tile_h = d
            # TODO(synk): ragged last tile (masked store) so prime H does not
            #             degenerate to tile_h == 1.
    assert H % tile_h == 0, "tile_h must divide H"
    th_sub = 1
    for d in range(1, tile_h + 1):             # accumulator sub-chunk: <=256 rows
        if tile_h % d == 0 and d * W_out <= 256:
            th_sub = d
    return tile_h, th_sub


def init_stacked_block_params(key, in_channels, out_channels, n_blocks, kernel_size=3):
    """PyTorch-style kaiming-uniform conv init, BatchNorm2d defaults."""
    params = []
    cin = in_channels
    for _ in range(n_blocks):
        key, wk = jax.random.split(key)
        fan_in = cin * kernel_size * kernel_size
        bound = 1.0 / jnp.sqrt(jnp.float32(fan_in))
        w = jax.random.uniform(
            wk, (kernel_size, kernel_size, cin, out_channels),  # HWIO
            jnp.float32, -bound, bound)
        params.append(dict(
            w=w,
            gamma=jnp.ones((out_channels,), jnp.float32),
            beta=jnp.zeros((out_channels,), jnp.float32),
            mean=jnp.zeros((out_channels,), jnp.float32),
            var=jnp.ones((out_channels,), jnp.float32),
        ))
        cin = out_channels
    return params


def stacked_block_forward(x_nchw, params, eps=1e-5, tile_h=None,
                          compute_dtype=jnp.bfloat16):
    """StackedBlock.forward: sequential Conv(k, stride=1, same-pad, no bias)
    -> BatchNorm2d (inference running stats) -> ReLU blocks."""
    x = jnp.transpose(x_nchw, (0, 2, 3, 1)).astype(compute_dtype)   # NCHW -> NHWC
    N, H, W, _ = x.shape
    sub = 16                                    # bf16 packed-sublane multiple

    cout_real = x.shape[-1]
    for li, p in enumerate(params):
        w = p["w"]                              # (K, K, cin_layer, cout) HWIO
        K, _, cin_l, cout_real = w.shape
        pad = (K - 1) // 2                      # MONAI same_padding (stride=1, odd K)

        # Fold BN (inference) into per-channel scale/shift; fold scale into w.
        scale = p["gamma"] / jnp.sqrt(p["var"] + eps)
        shift = p["beta"] - p["mean"] * scale
        w_f = (w * scale).astype(jnp.float32)

        if li == 0 and K > 1 and K * K * cin_l <= 128:
            # Tiny-Cin first layer: pack the K*K taps into the channel dim
            # (host-side im2col, same 128-padded HBM footprint) so the layer is
            # one dense 128-wide contraction instead of K*K mostly-zero GEMMs.
            xp0 = jnp.pad(x, ((0, 0), (pad, pad), (pad, pad), (0, 0)))
            x = jnp.concatenate(
                [xp0[:, ky:ky + H, kx:kx + W, :]
                 for ky in range(K) for kx in range(K)], axis=-1)
            w_f = w_f.reshape(K * K * cin_l, cout_real)[None, None]
            cin_l = K * K * cin_l
            K, pad = 1, 0

        # Lane-dense channel padding (multiple of 128).  Padded weight columns /
        # shift entries are zero, so padded output channels stay exactly zero
        # through ReLU and the activation stays channel-padded between layers.
        # TODO(synk): pad to 256 on v6e/v7x when real channels exceed 128.
        cin_cur = x.shape[-1]
        cin_p = _round_up(cin_cur, 128)
        cout_p = _round_up(cout_real, 128)
        if cin_p != cin_cur:
            x = jnp.pad(x, ((0, 0), (0, 0), (0, 0), (0, cin_p - cin_cur)))
        w_p = jnp.pad(w_f, ((0, 0), (0, 0), (0, cin_p - cin_l),
                            (0, cout_p - cout_real))).astype(compute_dtype)
        shift_p = jnp.pad(shift, (0, cout_p - cout_real)).astype(jnp.float32)
        shift_p = shift_p.reshape(1, cout_p)

        # Spatial halo pad; pad W up to a sublane multiple (extra cols never read).
        # TODO(synk): fuse this pad into the previous layer's output store to avoid
        #             an extra HBM read+write of the activation per layer.
        wp_total = _round_up(W + 2 * pad, sub)
        xp = jnp.pad(x, ((0, 0), (pad, pad),
                         (pad, pad + wp_total - (W + 2 * pad)), (0, 0)))

        th, th_sub = _pick_tiles(H, W, tile_h)
        x = _conv_bn_relu_layer(xp, w_p, shift_p, H=H, W_out=W,
                                tile_h=th, th_sub=th_sub)

    out = x[..., :cout_real].astype(jnp.float32)
    return jnp.transpose(out, (0, 3, 1, 2))      # NHWC -> NCHW


def stacked_block_reference(x_nchw, params, eps=1e-5, compute_dtype=jnp.bfloat16):
    """Pure-JAX reference (lax.conv) mirroring the kernel numerics:
    bf16 operands, f32 accumulation, bf16 activations between layers."""
    x = jnp.transpose(x_nchw, (0, 2, 3, 1)).astype(compute_dtype)
    for p in params:
        scale = p["gamma"] / jnp.sqrt(p["var"] + eps)
        shift = p["beta"] - p["mean"] * scale
        w = (p["w"] * scale).astype(compute_dtype)
        y = lax.conv_general_dilated(
            x, w, window_strides=(1, 1), padding="SAME",
            dimension_numbers=("NHWC", "HWIO", "NHWC"),
            preferred_element_type=jnp.float32)
        x = jnp.maximum(y + shift, 0.0).astype(compute_dtype)
    return jnp.transpose(x.astype(jnp.float32), (0, 3, 1, 2))


if __name__ == "__main__":
    key = jax.random.PRNGKey(0)
    N, Cin, H, W = 2, 4, 16, 16
    Cout, n_blocks = 8, 2

    key, xk = jax.random.split(key)
    x = jax.random.normal(xk, (N, Cin, H, W), jnp.float32)   # NCHW like PyTorch
    params = init_stacked_block_params(key, Cin, Cout, n_blocks)

    ref = stacked_block_reference(x, params)

    # Path 1 (default): tiny map -> whole-image row residency, one row tile.
    fwd = jax.jit(lambda inp: stacked_block_forward(inp, params))
    out = jax.block_until_ready(fwd(x))
    assert out.shape == (N, Cout, H, W), out.shape
    assert jnp.allclose(out, ref, atol=2e-2, rtol=2e-2), \
        float(jnp.max(jnp.abs(out - ref)))

    # Path 2: force row-banded tiling (halo bands via element-indexed BlockSpec),
    # the layout used for realistic image sizes on v7x's 64 MiB VMEM.
    fwd_banded = jax.jit(lambda inp: stacked_block_forward(inp, params, tile_h=8))
    out_b = jax.block_until_ready(fwd_banded(x))
    assert jnp.allclose(out_b, ref, atol=2e-2, rtol=2e-2), \
        float(jnp.max(jnp.abs(out_b - ref)))

    print("KERNEL_OK")
</pallas_src>

<mosaic_0001>
module attributes {stable_mosaic.version = 11 : i64} {
  func.func @_conv_bn_relu_kernel(%arg0: i32, %arg1: i32, %arg2: memref<1x16x16x128xbf16, #tpu.memory_space<vmem>>, %arg3: memref<1x1x128x128xbf16, #tpu.memory_space<vmem>>, %arg4: memref<1x128xf32, #tpu.memory_space<vmem>>, %arg5: memref<1x16x16x128xbf16, #tpu.memory_space<vmem>>) attributes {dimension_semantics = [#tpu.dimension_semantics<parallel>, #tpu.dimension_semantics<parallel>], iteration_bounds = array<i64: 2, 1>, scalar_prefetch = 0 : i64, scratch_operands = 0 : i64, tpu.core_type = #tpu.core_type<tc>, window_params = [{transform_indices = @transform_0, window_bounds = array<i64: 1, 16, 16, 128>}, {pipeline_mode = #tpu.pipeline_mode<synchronous>, transform_indices = @transform_1, window_bounds = array<i64: 1, 1, 128, 128>}, {pipeline_mode = #tpu.pipeline_mode<synchronous>, transform_indices = @transform_2, window_bounds = array<i64: 1, 128>}, {transform_indices = @transform_3, window_bounds = array<i64: 1, 16, 16, 128>}]} {
    %c0 = arith.constant 0 : index
    %c0_0 = arith.constant 0 : index
    %0 = vector.load %arg4[%c0, %c0_0] : memref<1x128xf32, #tpu.memory_space<vmem>>, vector<1x128xf32>
    %cst = arith.constant 0.000000e+00 : f32
    %1 = vector.broadcast %cst : f32 to vector<256x128xf32>
    %c0_1 = arith.constant 0 : index
    %c0_2 = arith.constant 0 : index
    %c0_3 = arith.constant 0 : index
    %c0_4 = arith.constant 0 : index
    %2 = vector.load %arg2[%c0_1, %c0_2, %c0_3, %c0_4] : memref<1x16x16x128xbf16, #tpu.memory_space<vmem>>, vector<1x16x16x128xbf16>
    %3 = vector.shape_cast %2 : vector<1x16x16x128xbf16> to vector<16x16x128xbf16>
    %4 = vector.shape_cast %3 : vector<16x16x128xbf16> to vector<256x128xbf16>
    %c0_5 = arith.constant 0 : index
    %c0_6 = arith.constant 0 : index
    %c0_7 = arith.constant 0 : index
    %c0_8 = arith.constant 0 : index
    %5 = vector.load %arg3[%c0_5, %c0_6, %c0_7, %c0_8] : memref<1x1x128x128xbf16, #tpu.memory_space<vmem>>, vector<1x1x128x128xbf16>
    %6 = vector.shape_cast %5 : vector<1x1x128x128xbf16> to vector<128x128xbf16>
    %cst_9 = arith.constant dense<0.000000e+00> : vector<256x128xf32>
    %7 = tpu.matmul %4, %6, %cst_9 {dimension_numbers = #tpu.dot_dimension_numbers<[1], [0], [0], [1], [0, 0, 1, 1], [], []>} : vector<256x128xbf16>, vector<128x128xbf16>, vector<256x128xf32> -> vector<256x128xf32>
    %8 = arith.addf %1, %7 : vector<256x128xf32>
    %9 = vector.broadcast %0 : vector<1x128xf32> to vector<256x128xf32>
    %10 = arith.addf %8, %9 : vector<256x128xf32>
    %cst_10 = arith.constant 0.000000e+00 : f32
    %11 = vector.broadcast %cst_10 : f32 to vector<256x128xf32>
    %12 = arith.maximumf %10, %11 : vector<256x128xf32>
    %13 = vector.shape_cast %12 : vector<256x128xf32> to vector<16x16x128xf32>
    %14 = arith.truncf %13 : vector<16x16x128xf32> to vector<16x16x128xbf16>
    %c0_11 = arith.constant 0 : index
    %c0_12 = arith.constant 0 : index
    %c0_13 = arith.constant 0 : index
    %c0_14 = arith.constant 0 : index
    %15 = vector.load %arg5[%c0_11, %c0_12, %c0_13, %c0_14] : memref<1x16x16x128xbf16, #tpu.memory_space<vmem>>, vector<1x16x16x128xbf16>
    %16 = vector.shape_cast %15 : vector<1x16x16x128xbf16> to vector<16x16x128xbf16>
    %17 = vector.shape_cast %14 : vector<16x16x128xbf16> to vector<1x16x16x128xbf16>
    tpu.vector_store %arg5[%c0_11, %c0_12, %c0_13, %c0_14], %17 {strides = array<i32>} : memref<1x16x16x128xbf16, #tpu.memory_space<vmem>>, vector<1x16x16x128xbf16>,
    return
  }
  func.func @transform_0(%arg0: i32, %arg1: i32) -> (i32, i32, i32, i32) {
    %c0_i32 = arith.constant 0 : i32
    %c0_i32_0 = arith.constant 0 : i32
    %c0_i32_1 = arith.constant 0 : i32
    %c0_i32_2 = arith.constant 0 : i32
    return %arg0, %c0_i32, %c0_i32_0, %c0_i32_1 : i32, i32, i32, i32
  }
  func.func @transform_1(%arg0: i32, %arg1: i32) -> (i32, i32, i32, i32) {
    %c0_i32 = arith.constant 0 : i32
    %c0_i32_0 = arith.constant 0 : i32
    %c0_i32_1 = arith.constant 0 : i32
    %c0_i32_2 = arith.constant 0 : i32
    %c0_i32_3 = arith.constant 0 : i32
    return %c0_i32, %c0_i32_0, %c0_i32_1, %c0_i32_2 : i32, i32, i32, i32
  }
  func.func @transform_2(%arg0: i32, %arg1: i32) -> (i32, i32) {
    %c0_i32 = arith.constant 0 : i32
    %c0_i32_0 = arith.constant 0 : i32
    %c0_i32_1 = arith.constant 0 : i32
    return %c0_i32, %c0_i32_0 : i32, i32
  }
  func.func @transform_3(%arg0: i32, %arg1: i32) -> (i32, i32, i32, i32) {
    %c0_i32 = arith.constant 0 : i32
    %c0_i32_0 = arith.constant 0 : i32
    %c0_i32_1 = arith.constant 0 : i32
    return %arg0, %arg1, %c0_i32, %c0_i32_0 : i32, i32, i32, i32
  }
}

module attributes {stable_mosaic.version = 11 : i64} {
  func.func @_conv_bn_relu_kernel(%arg0: i32, %arg1: i32, %arg2: memref<1x18x32x128xbf16, #tpu.memory_space<vmem>>, %arg3: memref<3x3x128x128xbf16, #tpu.memory_space<vmem>>, %arg4: memref<1x128xf32, #tpu.memory_space<vmem>>, %arg5: memref<1x16x16x128xbf16, #tpu.memory_space<vmem>>) attributes {dimension_semantics = [#tpu.dimension_semantics<parallel>, #tpu.dimension_semantics<parallel>], iteration_bounds = array<i64: 2, 1>, scalar_prefetch = 0 : i64, scratch_operands = 0 : i64, tpu.core_type = #tpu.core_type<tc>, window_params = [{transform_indices = @transform_0, window_bounds = array<i64: 1, 18, 32, 128>}, {pipeline_mode = #tpu.pipeline_mode<synchronous>, transform_indices = @transform_1, window_bounds = array<i64: 3, 3, 128, 128>}, {pipeline_mode = #tpu.pipeline_mode<synchronous>, transform_indices = @transform_2, window_bounds = array<i64: 1, 128>}, {transform_indices = @transform_3, window_bounds = array<i64: 1, 16, 16, 128>}]} {
    %c0 = arith.constant 0 : index
    %c0_0 = arith.constant 0 : index
    %0 = vector.load %arg4[%c0, %c0_0] : memref<1x128xf32, #tpu.memory_space<vmem>>, vector<1x128xf32>
    %cst = arith.constant 0.000000e+00 : f32
    %1 = vector.broadcast %cst : f32 to vector<256x128xf32>
    %c0_1 = arith.constant 0 : index
    %c0_2 = arith.constant 0 : index
    %c0_3 = arith.constant 0 : index
    %c0_4 = arith.constant 0 : index
    %2 = vector.load %arg2[%c0_1, %c0_2, %c0_3, %c0_4] : memref<1x18x32x128xbf16, #tpu.memory_space<vmem>>, vector<1x16x16x128xbf16>
    %3 = vector.shape_cast %2 : vector<1x16x16x128xbf16> to vector<16x16x128xbf16>
    %4 = vector.shape_cast %3 : vector<16x16x128xbf16> to vector<256x128xbf16>
    %c0_5 = arith.constant 0 : index
    %c0_6 = arith.constant 0 : index
    %c0_7 = arith.constant 0 : index
    %c0_8 = arith.constant 0 : index
    %5 = vector.load %arg3[%c0_5, %c0_6, %c0_7, %c0_8] : memref<3x3x128x128xbf16, #tpu.memory_space<vmem>>, vector<1x1x128x128xbf16>
    %6 = vector.shape_cast %5 : vector<1x1x128x128xbf16> to vector<128x128xbf16>
    %cst_9 = arith.constant dense<0.000000e+00> : vector<256x128xf32>
    %7 = tpu.matmul %4, %6, %cst_9 {dimension_numbers = #tpu.dot_dimension_numbers<[1], [0], [0], [1], [0, 0, 1, 1], [], []>} : vector<256x128xbf16>, vector<128x128xbf16>, vector<256x128xf32> -> vector<256x128xf32>
    %8 = arith.addf %1, %7 : vector<256x128xf32>
    %c0_10 = arith.constant 0 : index
    %c0_11 = arith.constant 0 : index
    %c1 = arith.constant 1 : index
    %c0_12 = arith.constant 0 : index
    %9 = vector.load %arg2[%c0_10, %c0_11, %c1, %c0_12] : memref<1x18x32x128xbf16, #tpu.memory_space<vmem>>, vector<1x16x16x128xbf16>
    %10 = vector.shape_cast %9 : vector<1x16x16x128xbf16> to vector<16x16x128xbf16>
    %11 = vector.shape_cast %10 : vector<16x16x128xbf16> to vector<256x128xbf16>
    %c0_13 = arith.constant 0 : index
    %c1_14 = arith.constant 1 : index
    %c0_15 = arith.constant 0 : index
    %c0_16 = arith.constant 0 : index
    %12 = vector.load %arg3[%c0_13, %c1_14, %c0_15, %c0_16] : memref<3x3x128x128xbf16, #tpu.memory_space<vmem>>, vector<1x1x128x128xbf16>
    %13 = vector.shape_cast %12 : vector<1x1x128x128xbf16> to vector<128x128xbf16>
    %cst_17 = arith.constant dense<0.000000e+00> : vector<256x128xf32>
    %14 = tpu.matmul %11, %13, %cst_17 {dimension_numbers = #tpu.dot_dimension_numbers<[1], [0], [0], [1], [0, 0, 1, 1], [], []>} : vector<256x128xbf16>, vector<128x128xbf16>, vector<256x128xf32> -> vector<256x128xf32>
    %15 = arith.addf %8, %14 : vector<256x128xf32>
    %c0_18 = arith.constant 0 : index
    %c0_19 = arith.constant 0 : index
    %c2 = arith.constant 2 : index
    %c0_20 = arith.constant 0 : index
    %16 = vector.load %arg2[%c0_18, %c0_19, %c2, %c0_20] : memref<1x18x32x128xbf16, #tpu.memory_space<vmem>>, vector<1x16x16x128xbf16>
    %17 = vector.shape_cast %16 : vector<1x16x16x128xbf16> to vector<16x16x128xbf16>
    %18 = vector.shape_cast %17 : vector<16x16x128xbf16> to vector<256x128xbf16>
    %c0_21 = arith.constant 0 : index
    %c2_22 = arith.constant 2 : index
    %c0_23 = arith.constant 0 : index
    %c0_24 = arith.constant 0 : index
    %19 = vector.load %arg3[%c0_21, %c2_22, %c0_23, %c0_24] : memref<3x3x128x128xbf16, #tpu.memory_space<vmem>>, vector<1x1x128x128xbf16>
    %20 = vector.shape_cast %19 : vector<1x1x128x128xbf16> to vector<128x128xbf16>
    %cst_25 = arith.constant dense<0.000000e+00> : vector<256x128xf32>
    %21 = tpu.matmul %18, %20, %cst_25 {dimension_numbers = #tpu.dot_dimension_numbers<[1], [0], [0], [1], [0, 0, 1, 1], [], []>} : vector<256x128xbf16>, vector<128x128xbf16>, vector<256x128xf32> -> vector<256x128xf32>
    %22 = arith.addf %15, %21 : vector<256x128xf32>
    %c0_26 = arith.constant 0 : index
    %c1_27 = arith.constant 1 : index
    %c0_28 = arith.constant 0 : index
    %c0_29 = arith.constant 0 : index
    %23 = vector.load %arg2[%c0_26, %c1_27, %c0_28, %c0_29] : memref<1x18x32x128xbf16, #tpu.memory_space<vmem>>, vector<1x16x16x128xbf16>
    %24 = vector.shape_cast %23 : vector<1x16x16x128xbf16> to vector<16x16x128xbf16>
    %25 = vector.shape_cast %24 : vector<16x16x128xbf16> to vector<256x128xbf16>
    %c1_30 = arith.constant 1 : index
    %c0_31 = arith.constant 0 : index
    %c0_32 = arith.constant 0 : index
    %c0_33 = arith.constant 0 : index
    %26 = vector.load %arg3[%c1_30, %c0_31, %c0_32, %c0_33] : memref<3x3x128x128xbf16, #tpu.memory_space<vmem>>, vector<1x1x128x128xbf16>
    %27 = vector.shape_cast %26 : vector<1x1x128x128xbf16> to vector<128x128xbf16>
    %cst_34 = arith.constant dense<0.000000e+00> : vector<256x128xf32>
    %28 = tpu.matmul %25, %27, %cst_34 {dimension_numbers = #tpu.dot_dimension_numbers<[1], [0], [0], [1], [0, 0, 1, 1], [], []>} : vector<256x128xbf16>, vector<128x128xbf16>, vector<256x128xf32> -> vector<256x128xf32>
    %29 = arith.addf %22, %28 : vector<256x128xf32>
    %c0_35 = arith.constant 0 : index
    %c1_36 = arith.constant 1 : index
    %c1_37 = arith.constant 1 : index
    %c0_38 = arith.constant 0 : index
    %30 = vector.load %arg2[%c0_35, %c1_36, %c1_37, %c0_38] : memref<1x18x32x128xbf16, #tpu.memory_space<vmem>>, vector<1x16x16x128xbf16>
    %31 = vector.shape_cast %30 : vector<1x16x16x128xbf16> to vector<16x16x128xbf16>
    %32 = vector.shape_cast %31 : vector<16x16x128xbf16> to vector<256x128xbf16>
    %c1_39 = arith.constant 1 : index
    %c1_40 = arith.constant 1 : index
    %c0_41 = arith.constant 0 : index
    %c0_42 = arith.constant 0 : index
    %33 = vector.load %arg3[%c1_39, %c1_40, %c0_41, %c0_42] : memref<3x3x128x128xbf16, #tpu.memory_space<vmem>>, vector<1x1x128x128xbf16>
    %34 = vector.shape_cast %33 : vector<1x1x128x128xbf16> to vector<128x128xbf16>
    %cst_43 = arith.constant dense<0.000000e+00> : vector<256x128xf32>
    %35 = tpu.matmul %32, %34, %cst_43 {dimension_numbers = #tpu.dot_dimension_numbers<[1], [0], [0], [1], [0, 0, 1, 1], [], []>} : vector<256x128xbf16>, vector<128x128xbf16>, vector<256x128xf32> -> vector<256x128xf32>
    %36 = arith.addf %29, %35 : vector<256x128xf32>
    %c0_44 = arith.constant 0 : index
    %c1_45 = arith.constant 1 : index
    %c2_46 = arith.constant 2 : index
    %c0_47 = arith.constant 0 : index
    %37 = vector.load %arg2[%c0_44, %c1_45, %c2_46, %c0_47] : memref<1x18x32x128xbf16, #tpu.memory_space<vmem>>, vector<1x16x16x128xbf16>
    %38 = vector.shape_cast %37 : vector<1x16x16x128xbf16> to vector<16x16x128xbf16>
    %39 = vector.shape_cast %38 : vector<16x16x128xbf16> to vector<256x128xbf16>
    %c1_48 = arith.constant 1 : index
    %c2_49 = arith.constant 2 : index
    %c0_50 = arith.constant 0 : index
    %c0_51 = arith.constant 0 : index
    %40 = vector.load %arg3[%c1_48, %c2_49, %c0_50, %c0_51] : memref<3x3x128x128xbf16, #tpu.memory_space<vmem>>, vector<1x1x128x128xbf16>
    %41 = vector.shape_cast %40 : vector<1x1x128x128xbf16> to vector<128x128xbf16>
    %cst_52 = arith.constant dense<0.000000e+00> : vector<256x128xf32>
    %42 = tpu.matmul %39, %41, %cst_52 {dimension_numbers = #tpu.dot_dimension_numbers<[1], [0], [0], [1], [0, 0, 1, 1], [], []>} : vector<256x128xbf16>, vector<128x128xbf16>, vector<256x128xf32> -> vector<256x128xf32>
    %43 = arith.addf %36, %42 : vector<256x128xf32>
    %c0_53 = arith.constant 0 : index
    %c2_54 = arith.constant 2 : index
    %c0_55 = arith.constant 0 : index
    %c0_56 = arith.constant 0 : index
    %44 = vector.load %arg2[%c0_53, %c2_54, %c0_55, %c0_56] : memref<1x18x32x128xbf16, #tpu.memory_space<vmem>>, vector<1x16x16x128xbf16>
    %45 = vector.shape_cast %44 : vector<1x16x16x128xbf16> to vector<16x16x128xbf16>
    %46 = vector.shape_cast %45 : vector<16x16x128xbf16> to vector<256x128xbf16>
    %c2_57 = arith.constant 2 : index
    %c0_58 = arith.constant 0 : index
    %c0_59 = arith.constant 0 : index
    %c0_60 = arith.constant 0 : index
    %47 = vector.load %arg3[%c2_57, %c0_58, %c0_59, %c0_60] : memref<3x3x128x128xbf16, #tpu.memory_space<vmem>>, vector<1x1x128x128xbf16>
    %48 = vector.shape_cast %47 : vector<1x1x128x128xbf16> to vector<128x128xbf16>
    %cst_61 = arith.constant dense<0.000000e+00> : vector<256x128xf32>
    %49 = tpu.matmul %46, %48, %cst_61 {dimension_numbers = #tpu.dot_dimension_numbers<[1], [0], [0], [1], [0, 0, 1, 1], [], []>} : vector<256x128xbf16>, vector<128x128xbf16>, vector<256x128xf32> -> vector<256x128xf32>
    %50 = arith.addf %43, %49 : vector<256x128xf32>
    %c0_62 = arith.constant 0 : index
    %c2_63 = arith.constant 2 : index
    %c1_64 = arith.constant 1 : index
    %c0_65 = arith.constant 0 : index
    %51 = vector.load %arg2[%c0_62, %c2_63, %c1_64, %c0_65] : memref<1x18x32x128xbf16, #tpu.memory_space<vmem>>, vector<1x16x16x128xbf16>
    %52 = vector.shape_cast %51 : vector<1x16x16x128xbf16> to vector<16x16x128xbf16>
    %53 = vector.shape_cast %52 : vector<16x16x128xbf16> to vector<256x128xbf16>
    %c2_66 = arith.constant 2 : index
    %c1_67 = arith.constant 1 : index
    %c0_68 = arith.constant 0 : index
    %c0_69 = arith.constant 0 : index
    %54 = vector.load %arg3[%c2_66, %c1_67, %c0_68, %c0_69] : memref<3x3x128x128xbf16, #tpu.memory_space<vmem>>, vector<1x1x128x128xbf16>
    %55 = vector.shape_cast %54 : vector<1x1x128x128xbf16> to vector<128x128xbf16>
    %cst_70 = arith.constant dense<0.000000e+00> : vector<256x128xf32>
    %56 = tpu.matmul %53, %55, %cst_70 {dimension_numbers = #tpu.dot_dimension_numbers<[1], [0], [0], [1], [0, 0, 1, 1], [], []>} : vector<256x128xbf16>, vector<128x128xbf16>, vector<256x128xf32> -> vector<256x128xf32>
    %57 = arith.addf %50, %56 : vector<256x128xf32>
    %c0_71 = arith.constant 0 : index
    %c2_72 = arith.constant 2 : index
    %c2_73 = arith.constant 2 : index
    %c0_74 = arith.constant 0 : index
    %58 = vector.load %arg2[%c0_71, %c2_72, %c2_73, %c0_74] : memref<1x18x32x128xbf16, #tpu.memory_space<vmem>>, vector<1x16x16x128xbf16>
    %59 = vector.shape_cast %58 : vector<1x16x16x128xbf16> to vector<16x16x128xbf16>
    %60 = vector.shape_cast %59 : vector<16x16x128xbf16> to vector<256x128xbf16>
    %c2_75 = arith.constant 2 : index
    %c2_76 = arith.constant 2 : index
    %c0_77 = arith.constant 0 : index
    %c0_78 = arith.constant 0 : index
    %61 = vector.load %arg3[%c2_75, %c2_76, %c0_77, %c0_78] : memref<3x3x128x128xbf16, #tpu.memory_space<vmem>>, vector<1x1x128x128xbf16>
    %62 = vector.shape_cast %61 : vector<1x1x128x128xbf16> to vector<128x128xbf16>
    %cst_79 = arith.constant dense<0.000000e+00> : vector<256x128xf32>
    %63 = tpu.matmul %60, %62, %cst_79 {dimension_numbers = #tpu.dot_dimension_numbers<[1], [0], [0], [1], [0, 0, 1, 1], [], []>} : vector<256x128xbf16>, vector<128x128xbf16>, vector<256x128xf32> -> vector<256x128xf32>
    %64 = arith.addf %57, %63 : vector<256x128xf32>
    %65 = vector.broadcast %0 : vector<1x128xf32> to vector<256x128xf32>
    %66 = arith.addf %64, %65 : vector<256x128xf32>
    %cst_80 = arith.constant 0.000000e+00 : f32
    %67 = vector.broadcast %cst_80 : f32 to vector<256x128xf32>
    %68 = arith.maximumf %66, %67 : vector<256x128xf32>
    %69 = vector.shape_cast %68 : vector<256x128xf32> to vector<16x16x128xf32>
    %70 = arith.truncf %69 : vector<16x16x128xf32> to vector<16x16x128xbf16>
    %c0_81 = arith.constant 0 : index
    %c0_82 = arith.constant 0 : index
    %c0_83 = arith.constant 0 : index
    %c0_84 = arith.constant 0 : index
    %71 = vector.load %arg5[%c0_81, %c0_82, %c0_83, %c0_84] : memref<1x16x16x128xbf16, #tpu.memory_space<vmem>>, vector<1x16x16x128xbf16>
    %72 = vector.shape_cast %71 : vector<1x16x16x128xbf16> to vector<16x16x128xbf16>
    %73 = vector.shape_cast %70 : vector<16x16x128xbf16> to vector<1x16x16x128xbf16>
    tpu.vector_store %arg5[%c0_81, %c0_82, %c0_83, %c0_84], %73 {strides = array<i32>} : memref<1x16x16x128xbf16, #tpu.memory_space<vmem>>, vector<1x16x16x128xbf16>,
    return
  }
  func.func @transform_0(%arg0: i32, %arg1: i32) -> (i32, i32, i32, i32) {
    %c0_i32 = arith.constant 0 : i32
    %c0_i32_0 = arith.constant 0 : i32
    %c0_i32_1 = arith.constant 0 : i32
    %c0_i32_2 = arith.constant 0 : i32
    return %arg0, %c0_i32, %c0_i32_0, %c0_i32_1 : i32, i32, i32, i32
  }
  func.func @transform_1(%arg0: i32, %arg1: i32) -> (i32, i32, i32, i32) {
    %c0_i32 = arith.constant 0 : i32
    %c0_i32_0 = arith.constant 0 : i32
    %c0_i32_1 = arith.constant 0 : i32
    %c0_i32_2 = arith.constant 0 : i32
    %c0_i32_3 = arith.constant 0 : i32
    return %c0_i32, %c0_i32_0, %c0_i32_1, %c0_i32_2 : i32, i32, i32, i32
  }
  func.func @transform_2(%arg0: i32, %arg1: i32) -> (i32, i32) {
    %c0_i32 = arith.constant 0 : i32
    %c0_i32_0 = arith.constant 0 : i32
    %c0_i32_1 = arith.constant 0 : i32
    return %c0_i32, %c0_i32_0 : i32, i32
  }
  func.func @transform_3(%arg0: i32, %arg1: i32) -> (i32, i32, i32, i32) {
    %c0_i32 = arith.constant 0 : i32
    %c0_i32_0 = arith.constant 0 : i32
    %c0_i32_1 = arith.constant 0 : i32
    return %arg0, %arg1, %c0_i32, %c0_i32_0 : i32, i32, i32, i32
  }
}

</mosaic_0001>

<bundles_post_ra>
// kernel: _lambda_.2
= control target key start
LH: loop header
LB: loop body
LE: loop exit
PB: predicated region body
PF: predicated region fallthrough
CT: control target
= control target key end

     0   :  { %s1213_s12 = smov 0   ;;  %s1215_s13 = smov 0   ;;  %s1350_s0 = inlined_call_operand.vmem [shape: bf16[2,16,16,128], index: 0, kind: input, shape index: {}]   ;;  %s1351_s1 = inlined_call_operand.vmem [shape: bf16[1,1,128,128], index: 1, kind: input, shape index: {}]   ;;  %s1352_s2 = inlined_call_operand.vmem [shape: f32[1,128], index: 2, kind: input, shape index: {}]   ;;  %s1353_s3 = inlined_call_operand.vmem [shape: bf16[2,16,16,128], index: 3, kind: output, shape index: {}]  }
   0x1   :  { %s1217_s14 = smov 0  }
   0x2 LB: > { %s25_s15 = sadd.s32 1, %s1187_s13  ;;  %p840_p0 = scmp.ge.s32.totalorder %s1191_s14, 1  ;;  %s1191_s14 = sphi %s1217_s14, %s13_s14   ;;  %s1187_s13 = sphi %s1215_s13, %s1355_s13   ;;  %s1183_s12 = sphi %s1213_s12, %s1354_s12  }
   0x3   : > { %p27_p1 = scmp.ge.s32.totalorder %s25_s15, 2  ;;  %p151_p2 = scmp.lt.s32.totalorder %s1191_s14, 3 }
   0x5   : > { %s1357_s15 = smov (%p27_p1, %s25_s15), 0  ;;  %p152_p3 = pnand %p840_p0, %p151_p2 }
   0x6   : > { %v1145_v0 = vld [vmem:[%s1351_s1] sm:$0xff] (!%p152_p3)   ;;  %p180_p4 = scmp.lt.s32.totalorder (!%p152_p3), %s1183_s12, 1  ;;  %v1146_v1 = vld [vmem:[%s1351_s1 + $0x8] sm:$0xff] (!%p152_p3)   ;;  %v1147_v2 = vld [vmem:[%s1351_s1 + $0x10] sm:$0xff] (!%p152_p3)  }
   0x7   : > { %155 = sbr.rel (%p152_p3) target bundleno = 285 (0x11d), region = 32  ;;  %1057 = vmatprep.subr.bf16.mxu0 (!%p152_p3), %v1145_v0  ;;  %1105 = vmatprep.subr.bf16.mxu1 (!%p152_p3), %v1145_v0  ;;  %v1148_v3 = vld [vmem:[%s1351_s1 + $0x18] sm:$0xff] (!%p152_p3)   ;;  %v1149_v6 = vld [vmem:[%s1351_s1 + $0x20] sm:$0xff] (!%p152_p3)   ;;  %v1150_v7 = vld [vmem:[%s1351_s1 + $0x28] sm:$0xff] (!%p152_p3)  }
   0x8   : > { %1058 = vmatpush3.bf16.msra.mxu0 (!%p152_p3), %v1145_v0  ;;  %1113 = vmatpush3.bf16.msra.mxu1 (!%p152_p3), %v1145_v0  ;;  %v1151_v8 = vld [vmem:[%s1351_s1 + $0x30] sm:$0xff] (!%p152_p3)   ;;  %v1152_v9 = vld [vmem:[%s1351_s1 + $0x38] sm:$0xff] (!%p152_p3)   ;;  %v1284_v24 = vld [vmem:[%s1352_s2] ss:$0 sm:$0xff] (!%p152_p3) }
   0x9   : > { %1059 = vmatprep.subr.bf16.mxu0 (!%p152_p3), %v1146_v1  ;;  %1106 = vmatprep.subr.bf16.mxu1 (!%p152_p3), %v1146_v1 }
   0xc   : > { %1060 = vmatpush3.bf16.msra.mxu0 (!%p152_p3), %v1146_v1  ;;  %1114 = vmatpush3.bf16.msra.mxu1 (!%p152_p3), %v1146_v1 }
   0xd   : > { %1061 = vmatprep.subr.bf16.mxu0 (!%p152_p3), %v1147_v2  ;;  %1107 = vmatprep.subr.bf16.mxu1 (!%p152_p3), %v1147_v2 }
   0xe   : > { %s1359_s12 = smov (!%p180_p4, %s1183_s12), 1 }
   0xf   : > { %s904_s22 = sshll.u32 %s1359_s12, 7 }
  0x10   : > { %s1248_s25 = scalar_lea.vmem %s1350_s0, %s904_s22  ;;  %1062 = vmatpush3.bf16.msra.mxu0 %v1147_v2  ;;  %1115 = vmatpush3.bf16.msra.mxu1 %v1147_v2  ;;  %s1299_s17 = scalar_lea.vmem %s1353_s3, %s904_s22 }
  0x11   : > { %v1153_v4 = vld [vmem:[%s1248_s25] sm:$0xff]   ;;  %1063 = vmatprep.subr.bf16.mxu0 %v1148_v3  ;;  %1108 = vmatprep.subr.bf16.mxu1 %v1148_v3  ;;  %v1155_v10 = vld [vmem:[%s1248_s25 + $0x8] sm:$0xff]   ;;  %v1157_v12 = vld [vmem:[%s1248_s25 + $0x10] sm:$0xff]  }
  0x12   : > { %v1154_v5 = vld [vmem:[%s1248_s25 + $0x40] sm:$0xff]   ;;  %1073 = vmatprep.mubr.bf16.mxu0 %v1153_v4  ;;  %v1156_v11 = vld [vmem:[%s1248_s25 + $0x48] sm:$0xff]   ;;  %v1158_v13 = vld [vmem:[%s1248_s25 + $0x50] sm:$0xff]  }
  0x13   : > { %1089 = vmatprep.mubr.bf16.mxu1 %v1154_v5  ;;  %v1159_v14 = vld [vmem:[%s1248_s25 + $0x18] sm:$0xff]   ;;  %v1161_v16 = vld [vmem:[%s1248_s25 + $0x20] sm:$0xff]   ;;  %v1163_v18 = vld [vmem:[%s1248_s25 + $0x28] sm:$0xff]  }
  0x14   : > { %1064 = vmatpush3.bf16.msra.mxu0 %v1148_v3  ;;  %1116 = vmatpush3.bf16.msra.mxu1 %v1148_v3  ;;  %v1160_v15 = vld [vmem:[%s1248_s25 + $0x58] sm:$0xff]   ;;  %v1162_v17 = vld [vmem:[%s1248_s25 + $0x60] sm:$0xff]   ;;  %v1164_v19 = vld [vmem:[%s1248_s25 + $0x68] sm:$0xff]  }
  0x15   : > { %1065 = vmatprep.subr.bf16.mxu0 %v1149_v6  ;;  %1109 = vmatprep.subr.bf16.mxu1 %v1149_v6  ;;  %v1165_v20 = vld [vmem:[%s1248_s25 + $0x30] sm:$0xff]   ;;  %v1167_v22 = vld [vmem:[%s1248_s25 + $0x38] sm:$0xff]  }
  0x16   : > { %v1166_v21 = vld [vmem:[%s1248_s25 + $0x70] sm:$0xff]   ;;  %v1168_v23 = vld [vmem:[%s1248_s25 + $0x78] sm:$0xff]  }
  0x18   : > { %1066 = vmatpush3.bf16.msra.mxu0 %v1149_v6  ;;  %1117 = vmatpush3.bf16.msra.mxu1 %v1149_v6 }
  0x19   : > { %1067 = vmatprep.subr.bf16.mxu0 %v1150_v7  ;;  %1110 = vmatprep.subr.bf16.mxu1 %v1150_v7 }
  0x1c   : > { %1068 = vmatpush3.bf16.msra.mxu0 %v1150_v7  ;;  %1118 = vmatpush3.bf16.msra.mxu1 %v1150_v7 }
  0x1d   : > { %1069 = vmatprep.subr.bf16.mxu0 %v1151_v8  ;;  %1111 = vmatprep.subr.bf16.mxu1 %v1151_v8 }
  0x20   : > { %1070 = vmatpush3.bf16.msra.mxu0 %v1151_v8  ;;  %1119 = vmatpush3.bf16.msra.mxu1 %v1151_v8 }
  0x21   : > { %1071 = vmatprep.subr.bf16.mxu0 %v1152_v9  ;;  %1112 = vmatprep.subr.bf16.mxu1 %v1152_v9 }
  0x24   : > { %1072 = vmatpush3.bf16.msra.mxu0 %v1152_v9  ;;  %1120 = vmatpush3.bf16.msra.mxu1 %v1152_v9 }
  0x27   : > { %1074 = vmatmul.mubr.bf16.vlgmr.msra.gmra.mrb[0].mxu0 %v1155_v10  ;;  %1090 = vmatmul.mubr.bf16.vlgmr.msra.gmra.mrb[0].mxu1 %v1156_v11 }
  0x28   : > { %1077 = vmatprep.mubr.bf16.mxu0 %v1157_v12  ;;  %1093 = vmatprep.mubr.bf16.mxu1 %v1158_v13 }
  0x2f   : > { %1078 = vmatmul.mubr.bf16.gmra.mrb[4].mxu0 %v1159_v14  ;;  %1094 = vmatmul.mubr.bf16.gmra.mrb[4].mxu1 %v1160_v15 }
  0x30   : > { %1081 = vmatprep.mubr.bf16.mxu0 %v1161_v16  ;;  %1097 = vmatprep.mubr.bf16.mxu1 %v1162_v17 }
  0x37   : > { %1082 = vmatmul.mubr.bf16.gmra.mrb[8].mxu0 %v1163_v18  ;;  %1098 = vmatmul.mubr.bf16.gmra.mrb[8].mxu1 %v1164_v19 }
  0x38   : > { %1085 = vmatprep.mubr.bf16.mxu0 %v1165_v20  ;;  %1101 = vmatprep.mubr.bf16.mxu1 %v1166_v21 }
  0x3f   : > { %1086 = vmatmul.mubr.bf16.gmra.mrb[12].mxu0 %v1167_v22  ;;  %1102 = vmatmul.mubr.bf16.gmra.mrb[12].mxu1 %v1168_v23 }
  0xfa   : > { %v1075_v25 = vpop.f32.mrb[0].mxu0  ;;  %v1091_v26 = vpop.f32.mrb[0].mxu1 }
  0xfb   : > { %v439_v27 = vadd.f32 %v1075_v25, %v1284_v24  ;;  %v503_v28 = vadd.f32 %v1091_v26, %v1284_v24  ;;  %v430_v29 = vpop.f32.mrb[1].mxu0  ;;  %v494_v30 = vpop.f32.mrb[1].mxu1 }
  0xfc   : > { %v431_v31 = vadd.f32 %v1284_v24, %v430_v29  ;;  %v495_v32 = vadd.f32 %v1284_v24, %v494_v30  ;;  %v1076_v33 = vpop.f32.mrb[2].mxu0  ;;  %v1092_v34 = vpop.f32.mrb[2].mxu1 }
  0xfd   : > { %v442_v35 = vadd.f32 %v1076_v33, %v1284_v24  ;;  %v506_v36 = vadd.f32 %v1092_v34, %v1284_v24  ;;  %v433_v37 = vpop.f32.mrb[3].mxu0  ;;  %v497_v38 = vpop.f32.mrb[3].mxu1  ;;  %v559_v41 = vmax.f32 %v439_v27, 0.0  ;;  %v575_v42 = vmax.f32 %v503_v28, 0.0 }
  0xfe   : > { %v434_v39 = vadd.f32 %v1284_v24, %v433_v37  ;;  %v498_v40 = vadd.f32 %v1284_v24, %v497_v38  ;;  %v557_v45 = vmax.f32 %v431_v31, 0.0  ;;  %v573_v46 = vmax.f32 %v495_v32, 0.0 }
  0xff   : > { %v560_v43 = vmax.f32 %v442_v35, 0.0  ;;  %v576_v44 = vmax.f32 %v506_v36, 0.0 }
 0x100   : > { %v558_v47 = vmax.f32 %v434_v39, 0.0  ;;  %v574_v48 = vmax.f32 %v498_v40, 0.0 }
 0x101   : > { %v946_v49 = vpack.c.bf16 %v560_v43, %v559_v41  ;;  %v986_v50 = vpack.c.bf16 %v576_v44, %v575_v42 }
 0x102   : > { %v941_v51 = vpack.c.bf16 %v558_v47, %v557_v45  ;;  %v981_v52 = vpack.c.bf16 %v574_v48, %v573_v46  ;;  %v1079_v53 = vpop.f32.mrb[4].mxu0  ;;  %v1095_v54 = vpop.f32.mrb[4].mxu1 }
 0x103   : > { %1018 = vst [vmem:[%s1299_s17 + $0x8] sm:$0xff] %v946_v49   ;;  %1026 = vst [vmem:[%s1299_s17 + $0x48] sm:$0xff] %v986_v50   ;;  %v455_v55 = vadd.f32 %v1079_v53, %v1284_v24  ;;  %v519_v56 = vadd.f32 %v1095_v54, %v1284_v24  ;;  %v446_v57 = vpop.f32.mrb[5].mxu0  ;;  %v510_v58 = vpop.f32.mrb[5].mxu1 }
 0x104   : > { %942 = vst [vmem:[%s1299_s17] sm:$0xff] %v941_v51   ;;  %1025 = vst [vmem:[%s1299_s17 + $0x40] sm:$0xff] %v981_v52   ;;  %v447_v59 = vadd.f32 %v1284_v24, %v446_v57  ;;  %v511_v60 = vadd.f32 %v1284_v24, %v510_v58  ;;  %v1080_v61 = vpop.f32.mrb[6].mxu0  ;;  %v1096_v62 = vpop.f32.mrb[6].mxu1 }
 0x105   : > { %v458_v63 = vadd.f32 %v1080_v61, %v1284_v24  ;;  %v522_v0 = vadd.f32 %v1096_v62, %v1284_v24  ;;  %v449_v1 = vpop.f32.mrb[7].mxu0  ;;  %v513_v2 = vpop.f32.mrb[7].mxu1  ;;  %v563_v5 = vmax.f32 %v455_v55, 0.0  ;;  %v579_v6 = vmax.f32 %v519_v56, 0.0 }
 0x106   : > { %v450_v3 = vadd.f32 %v1284_v24, %v449_v1  ;;  %v514_v4 = vadd.f32 %v1284_v24, %v513_v2  ;;  %v561_v9 = vmax.f32 %v447_v59, 0.0  ;;  %v577_v10 = vmax.f32 %v511_v60, 0.0 }
 0x107   : > { %v564_v7 = vmax.f32 %v458_v63, 0.0  ;;  %v580_v8 = vmax.f32 %v522_v0, 0.0 }
 0x108   : > { %v562_v11 = vmax.f32 %v450_v3, 0.0  ;;  %v578_v12 = vmax.f32 %v514_v4, 0.0 }
 0x109   : > { %v956_v13 = vpack.c.bf16 %v564_v7, %v563_v5  ;;  %v996_v14 = vpack.c.bf16 %v580_v8, %v579_v6 }
 0x10a   : > { %v951_v15 = vpack.c.bf16 %v562_v11, %v561_v9  ;;  %v991_v16 = vpack.c.bf16 %v578_v12, %v577_v10  ;;  %v1083_v17 = vpop.f32.mrb[8].mxu0  ;;  %v1099_v18 = vpop.f32.mrb[8].mxu1 }
 0x10b   : > { %1020 = vst [vmem:[%s1299_s17 + $0x18] sm:$0xff] %v956_v13   ;;  %1028 = vst [vmem:[%s1299_s17 + $0x58] sm:$0xff] %v996_v14   ;;  %v471_v19 = vadd.f32 %v1083_v17, %v1284_v24  ;;  %v535_v20 = vadd.f32 %v1099_v18, %v1284_v24  ;;  %v462_v21 = vpop.f32.mrb[9].mxu0  ;;  %v526_v22 = vpop.f32.mrb[9].mxu1 }
 0x10c   : > { %1019 = vst [vmem:[%s1299_s17 + $0x10] sm:$0xff] %v951_v15   ;;  %1027 = vst [vmem:[%s1299_s17 + $0x50] sm:$0xff] %v991_v16   ;;  %v463_v23 = vadd.f32 %v1284_v24, %v462_v21  ;;  %v527_v25 = vadd.f32 %v1284_v24, %v526_v22  ;;  %v1084_v26 = vpop.f32.mrb[10].mxu0  ;;  %v1100_v27 = vpop.f32.mrb[10].mxu1 }
 0x10d   : > { %v474_v28 = vadd.f32 %v1084_v26, %v1284_v24  ;;  %v538_v29 = vadd.f32 %v1100_v27, %v1284_v24  ;;  %v465_v30 = vpop.f32.mrb[11].mxu0  ;;  %v529_v31 = vpop.f32.mrb[11].mxu1  ;;  %v567_v34 = vmax.f32 %v471_v19, 0.0  ;;  %v583_v35 = vmax.f32 %v535_v20, 0.0 }
 0x10e   : > { %v466_v32 = vadd.f32 %v1284_v24, %v465_v30  ;;  %v530_v33 = vadd.f32 %v1284_v24, %v529_v31  ;;  %v565_v38 = vmax.f32 %v463_v23, 0.0  ;;  %v581_v39 = vmax.f32 %v527_v25, 0.0 }
 0x10f   : > { %v568_v36 = vmax.f32 %v474_v28, 0.0  ;;  %v584_v37 = vmax.f32 %v538_v29, 0.0 }
 0x110   : > { %v566_v40 = vmax.f32 %v466_v32, 0.0  ;;  %v582_v41 = vmax.f32 %v530_v33, 0.0 }
 0x111   : > { %v966_v42 = vpack.c.bf16 %v568_v36, %v567_v34  ;;  %v1006_v43 = vpack.c.bf16 %v584_v37, %v583_v35 }
 0x112   : > { %v961_v44 = vpack.c.bf16 %v566_v40, %v565_v38  ;;  %v1001_v45 = vpack.c.bf16 %v582_v41, %v581_v39  ;;  %v1087_v46 = vpop.f32.mrb[12].mxu0  ;;  %v1103_v47 = vpop.f32.mrb[12].mxu1 }
 0x113   : > { %1022 = vst [vmem:[%s1299_s17 + $0x28] sm:$0xff] %v966_v42   ;;  %1030 = vst [vmem:[%s1299_s17 + $0x68] sm:$0xff] %v1006_v43   ;;  %v487_v48 = vadd.f32 %v1087_v46, %v1284_v24  ;;  %v551_v49 = vadd.f32 %v1103_v47, %v1284_v24  ;;  %v478_v50 = vpop.f32.mrb[13].mxu0  ;;  %v542_v51 = vpop.f32.mrb[13].mxu1 }
 0x114   : > { %1021 = vst [vmem:[%s1299_s17 + $0x20] sm:$0xff] %v961_v44   ;;  %1029 = vst [vmem:[%s1299_s17 + $0x60] sm:$0xff] %v1001_v45   ;;  %v479_v52 = vadd.f32 %v1284_v24, %v478_v50  ;;  %v543_v53 = vadd.f32 %v1284_v24, %v542_v51  ;;  %v1088_v54 = vpop.f32.mrb[14].mxu0  ;;  %v1104_v55 = vpop.f32.mrb[14].mxu1 }
 0x115   : > { %v490_v56 = vadd.f32 %v1088_v54, %v1284_v24  ;;  %v554_v57 = vadd.f32 %v1104_v55, %v1284_v24  ;;  %v481_v58 = vpop.f32.mrb[15].mxu0  ;;  %v545_v59 = vpop.f32.mrb[15].mxu1  ;;  %v571_v62 = vmax.f32 %v487_v48, 0.0  ;;  %v587_v63 = vmax.f32 %v551_v49, 0.0 }
 0x116   : > { %v482_v60 = vadd.f32 %v1284_v24, %v481_v58  ;;  %v546_v61 = vadd.f32 %v1284_v24, %v545_v59  ;;  %v569_v2 = vmax.f32 %v479_v52, 0.0  ;;  %v585_v3 = vmax.f32 %v543_v53, 0.0 }
 0x117   : > { %v572_v0 = vmax.f32 %v490_v56, 0.0  ;;  %v588_v1 = vmax.f32 %v554_v57, 0.0 }
 0x118   : > { %v570_v4 = vmax.f32 %v482_v60, 0.0  ;;  %v586_v5 = vmax.f32 %v546_v61, 0.0 }
 0x119   : > { %v976_v6 = vpack.c.bf16 %v572_v0, %v571_v62  ;;  %v1016_v7 = vpack.c.bf16 %v588_v1, %v587_v63 }
 0x11a   : > { %v971_v8 = vpack.c.bf16 %v570_v4, %v569_v2  ;;  %v1011_v9 = vpack.c.bf16 %v586_v5, %v585_v3 }
 0x11b   : > { %1024 = vst [vmem:[%s1299_s17 + $0x38] sm:$0xff] %v976_v6   ;;  %1032 = vst [vmem:[%s1299_s17 + $0x78] sm:$0xff] %v1016_v7  }
 0x11c   : > { %1023 = vst [vmem:[%s1299_s17 + $0x30] sm:$0xff] %v971_v8   ;;  %1031 = vst [vmem:[%s1299_s17 + $0x70] sm:$0xff] %v1011_v9  }
 0x11d PF: > { %s13_s14 = sadd.s32 1, %s1191_s14   ;;  %s1354_s12 = smov %s1187_s13 }
 0x11e   : > { %p10_p5 = scmp.ge.s32.totalorder %s13_s14, 4   ;;  %s1355_s13 = smov %s1357_s15 }
 0x120   :  { %12 = sbr.rel (!%p10_p5) target bundleno = 2 (0x2), region = 62 }

// kernel: _lambda_.3
= control target key start
LH: loop header
LB: loop body
LE: loop exit
PB: predicated region body
PF: predicated region fallthrough
CT: control target
= control target key end

     0   :  { %s7258_s12 = smov 0   ;;  %s7260_s13 = smov 0   ;;  %s9120_s0 = inlined_call_operand.vmem [shape: bf16[2,18,32,128], index: 0, kind: input, shape index: {}]   ;;  %s9121_s1 = inlined_call_operand.vmem [shape: bf16[3,3,128,128], index: 1, kind: input, shape index: {}]   ;;  %s9122_s2 = inlined_call_operand.vmem [shape: f32[1,128], index: 2, kind: input, shape index: {}]   ;;  %s9123_s3 = inlined_call_operand.vmem [shape: bf16[2,16,16,128], index: 3, kind: output, shape index: {}]  }
   0x1   :  { %s7262_s14 = smov 0  }
   0x2 LB: > { %s25_s15 = sadd.s32 1, %s7232_s13  ;;  %p5328_p0 = scmp.ge.s32.totalorder %s7236_s14, 1  ;;  %s7236_s14 = sphi %s7262_s14, %s13_s14   ;;  %s7232_s13 = sphi %s7260_s13, %s9191_s13   ;;  %s7228_s12 = sphi %s7258_s12, %s9190_s12  }
   0x3   : > { %p27_p1 = scmp.ge.s32.totalorder %s25_s15, 2  ;;  %p151_p2 = scmp.lt.s32.totalorder %s7236_s14, 3 }
   0x5   : > { %s9193_s15 = smov (%p27_p1, %s25_s15), 0  ;;  %p152_p3 = pnand %p5328_p0, %p151_p2 }
   0x7   : > { %155 = sbr.rel (%p152_p3) target bundleno = 590 (0x24e), region = 32 }
   0xe   : > { %v7024_v0 = vld [vmem:[%s9121_s1 + $0x40] sm:$0xff]   ;;  %p180_p4 = scmp.lt.s32.totalorder %s7228_s12, 1  ;;  %v7026_v2 = vld [vmem:[%s9121_s1 + $0x48] sm:$0xff]   ;;  %v7028_v4 = vld [vmem:[%s9121_s1 + $0x50] sm:$0xff]   ;;  %vm262_vm0 = vsmask.f32 3328 }
   0xf   : > { %v7025_v1 = vld [vmem:[%s9121_s1 + $0x100] sm:$0xff]   ;;  %6295 = vmatprep.subr.bf16.mxu1 %v7024_v0  ;;  %v7027_v3 = vld [vmem:[%s9121_s1 + $0x108] sm:$0xff]   ;;  %v7029_v5 = vld [vmem:[%s9121_s1 + $0x110] sm:$0xff]   ;;  %vm263_vm1 = vsmask.f32 7440  ;;  %vm1292_vm3 = vcmask 1042432  }
  0x10   : > { %6487 = vmatprep.subr.bf16.mxu0 %v7025_v1  ;;  %6296 = vmatpush3.bf16.msra.mxu1 %v7024_v0  ;;  %s9195_s12 = smov (!%p180_p4, %s7228_s12), 1  ;;  %v7030_v6 = vld [vmem:[%s9121_s1 + $0x58] sm:$0xff]   ;;  %v7032_v8 = vld [vmem:[%s9121_s1 + $0x60] sm:$0xff]   ;;  %v7034_v10 = vld [vmem:[%s9121_s1 + $0x68] sm:$0xff]   ;;  %vm1293_vm4 = vcmask 1046532  }
  0x11   : > { %6488 = vmatpush3.bf16.msra.mxu0 %v7025_v1  ;;  %6297 = vmatprep.subr.bf16.mxu1 %v7026_v2  ;;  %v7031_v7 = vld [vmem:[%s9121_s1 + $0x118] sm:$0xff]   ;;  %s6999_s5 = smul.u32 288, %s9195_s12  ;;  %v7033_v9 = vld [vmem:[%s9121_s1 + $0x120] sm:$0xff]   ;;  %v7035_v11 = vld [vmem:[%s9121_s1 + $0x128] sm:$0xff]   ;;  %s5951_s26 = sshll.u32 %s9195_s12, 7 }
  0x12   : > { %6489 = vmatprep.subr.bf16.mxu0 %v7027_v3  ;;  %v7036_v25 = vld [vmem:[%s9121_s1 + $0x70] sm:$0xff]   ;;  %v7038_v36 = vld [vmem:[%s9121_s1 + $0x78] sm:$0xff]   ;;  %vm7344_vm2 = vmor %vm262_vm0, %vm263_vm1  ;;  %s9061_s29 = scalar_lea.vmem %s9123_s3, %s5951_s26 }
  0x13   : > { %s7312_s16 = scalar_lea.vmem %s9120_s0, %s6999_s5  ;;  %v7037_v30 = vld [vmem:[%s9121_s1 + $0x130] sm:$0xff]   ;;  %v7039_v51 = vld [vmem:[%s9121_s1 + $0x138] sm:$0xff]   ;;  %vm7590_vm5 = vmor %vm1292_vm3, %vm1293_vm4 }
  0x14   : > { %6298 = vmatpush3.bf16.msra.mxu1 %v7026_v2  ;;  %v198_v12 = vld [vmem:[%s7312_s16] sm:$0xf]  ;;  %v199_v13 = vld [vmem:[%s7312_s16 + $0x4] sm:$0xf]  ;;  %v246_v14 = vld [vmem:[%s7312_s16 + $0x8] sm:$0x1] }
  0x15   : > { %6490 = vmatpush3.bf16.msra.mxu0 %v7027_v3  ;;  %6299 = vmatprep.subr.bf16.mxu1 %v7028_v4  ;;  %v266_v15 = vshrl.u32 %v198_v12, 16  ;;  %v269_v16 = vshll.u32 %v198_v12, 16  ;;  %v275_v17 = vshll.u32 %v199_v13, 16  ;;  %v279_v18 = vshrl.u32 %v199_v13, 16  ;;  %v5524_v20 = vld [vmem:[%s7312_s16 + $0x10] sm:$0xf] }
  0x16   : > { %6491 = vmatprep.subr.bf16.mxu0 %v7029_v5  ;;  %v285_v19 = vshll.u32 %v246_v14, 16  ;;  %v7325_v23 = vld [vmem:[%s7312_s16 + $0x14] sm:$0xf]  ;;  %v7328_v24 = vld [vmem:[%s7312_s16 + $0x18] sm:$0x1]  ;;  %v2165_v29 = vshrl.u32 %v5524_v20, 16 }
  0x17   : > { %v268_v21 = vrot.slane %v266_v15, 4  ;;  %v271_v22 = vrot.slane %v269_v16, 5  ;;  %v277_v26 = vrot.slane %v275_v17, 5  ;;  %v281_v27 = vrot.slane %v279_v18, 4  ;;  %v200_v35 = vld [vmem:[%s7312_s16 + $0x10] sm:$0xf] }
  0x18   : > { %6300 = vmatpush3.bf16.msra.mxu1 %v7028_v4  ;;  %v287_v28 = vrot.slane %v285_v19, 5  ;;  %v2168_v32 = vshll.u32 %v5524_v20, 16  ;;  %v2174_v33 = vshll.u32 %v7325_v23, 16  ;;  %v2178_v34 = vshrl.u32 %v7325_v23, 16  ;;  %v201_v42 = vld [vmem:[%s7312_s16 + $0x14] sm:$0xf] }
  0x19   : > { %6492 = vmatpush3.bf16.msra.mxu0 %v7029_v5  ;;  %6301 = vmatprep.subr.bf16.mxu1 %v7030_v6  ;;  %v272_v31 = vor.u32 %v271_v22, %v268_v21  ;;  %v282_v38 = vor.u32 %v281_v27, %v277_v26  ;;  %v2167_v39 = vrot.slane %v2165_v29, 4  ;;  %v2184_v40 = vshll.u32 %v7328_v24, 16  ;;  %v247_v55 = vld [vmem:[%s7312_s16 + $0x18] sm:$0x1]  ;;  %v5527_v57 = vld [vmem:[%s7312_s16 + $0x20] sm:$0xf] }
  0x1a   : > { %6493 = vmatprep.subr.bf16.mxu0 %v7031_v7  ;;  %v2939_v41 = vrot.slane %v7328_v24, 5  ;;  %v2170_v44 = vrot.slane %v2168_v32, 5  ;;  %v2176_v45 = vrot.slane %v2174_v33, 5  ;;  %v2180_v46 = vrot.slane %v2178_v34, 4  ;;  %v7361_v62 = vld [vmem:[%s7312_s16 + $0x24] sm:$0xf] }
  0x1b   : > { %v273_v43 = vrot.slane %v272_v31, 4  ;;  %v283_v47 = vrot.slane %v282_v38, 4  ;;  %v2186_v48 = vrot.slane %v2184_v40, 5  ;;  %v290_v49 = vshrl.u32 %v200_v35, 16  ;;  %v7040_v3 = vld [vmem:[%s9121_s1] sm:$0xff]  }
  0x1c   : > { %6302 = vmatpush3.bf16.msra.mxu1 %v7030_v6  ;;  %v293_v50 = vshll.u32 %v200_v35, 16  ;;  %v2171_v53 = vor.u32 %v2170_v44, %v2167_v39  ;;  %v2181_v54 = vor.u32 %v2180_v46, %v2176_v45  ;;  %v299_v56 = vshll.u32 %v201_v42, 16  ;;  %v7369_v4 = vld [vmem:[%s9121_s1 + $0x140] sm:$0xff]   ;;  %v248_v33 = vld [vmem:[%s7312_s16 + $0x28] sm:$0x1] }
  0x1d   : > { %6494 = vmatpush3.bf16.msra.mxu0 %v7031_v7  ;;  %6303 = vmatprep.subr.bf16.mxu1 %v7032_v8  ;;  %v278_v52 = vsel %vm7344_vm2, %v273_v43, %v277_v26  ;;  %v288_v58 = vsel %vm7344_vm2, %v283_v47, %v287_v28  ;;  %v292_v59 = vrot.slane %v290_v49, 4  ;;  %v303_v61 = vshrl.u32 %v201_v42, 16  ;;  %v202_v21 = vld [vmem:[%s7312_s16 + $0x20] sm:$0xf]  ;;  %v203_v28 = vld [vmem:[%s7312_s16 + $0x24] sm:$0xf] }
  0x1e   : > { %6495 = vmatprep.subr.bf16.mxu0 %v7033_v9  ;;  %v295_v60 = vrot.slane %v293_v50, 5  ;;  %v5348_v63 = vcombine.low %v278_v52, %v288_v58  ;;  %v2172_v0 = vrot.slane %v2171_v53, 4  ;;  %v2182_v1 = vrot.slane %v2181_v54, 4  ;;  %v5530_v39 = vld [vmem:[%s7312_s16 + $0x30] sm:$0xf]  ;;  %v7043_v46 = vld [vmem:[%s9121_s1 + $0x8] sm:$0xff]  }
  0x1f   : > { %v301_v2 = vrot.slane %v299_v56, 5  ;;  %v305_v6 = vrot.slane %v303_v61, 4  ;;  %v309_v7 = vshll.u32 %v247_v55, 16  ;;  %v2192_v12 = vshll.u32 %v5527_v57, 16  ;;  %v204_v52 = vld [vmem:[%s7312_s16 + $0x30] sm:$0xf] }
  0x20   : > { %6304 = vmatpush3.bf16.msra.mxu1 %v7032_v8  ;;  %v296_v5 = vor.u32 %v295_v60, %v292_v59  ;;  %v7372_v8 = vld [vmem:[%s7312_s16 + $0x28] sm:$0x1]  ;;  %6311 = vmatprep.mubr.bf16.mxu1 %v5348_v63  ;;  %v2198_v19 = vshll.u32 %v7361_v62, 16  ;;  %v2202_v20 = vshrl.u32 %v7361_v62, 16  ;;  %v2943_v27 = vrot.slane %v7361_v62, 5 }
  0x21   : > { %6496 = vmatpush3.bf16.msra.mxu0 %v7033_v9  ;;  %6305 = vmatprep.subr.bf16.mxu1 %v7034_v10  ;;  %v2177_v9 = vsel %vm7344_vm2, %v2172_v0, %v2176_v45  ;;  %v306_v15 = vor.u32 %v305_v6, %v301_v2  ;;  %v311_v16 = vrot.slane %v309_v7, 5  ;;  %v2194_v18 = vrot.slane %v2192_v12, 5  ;;  %v7397_v45 = vld [vmem:[%s7312_s16 + $0x34] sm:$0xf]  ;;  %v7042_v63 = vld [vmem:[%s9121_s1 + $0x148] sm:$0xff]  }
  0x22   : > { %6497 = vmatprep.subr.bf16.mxu0 %v7035_v11  ;;  %v297_v14 = vrot.slane %v296_v5, 4  ;;  %v2208_v26 = vshll.u32 %v7372_v8, 16  ;;  %v2204_v31 = vrot.slane %v2202_v20, 4  ;;  %v2946_v32 = vrot.slane %v7372_v8, 5  ;;  %v205_v5 = vld [vmem:[%s7312_s16 + $0x34] sm:$0xf] }
  0x23   : > { %v314_v38 = vshrl.u32 %v202_v21, 16  ;;  %v317_v44 = vshll.u32 %v202_v21, 16  ;;  %v327_v49 = vshrl.u32 %v203_v28, 16  ;;  %v333_v50 = vshll.u32 %v248_v33, 16  ;;  %v7428_v33 = vld [vmem:[%s7312_s16 + $0x44] sm:$0xf] }
  0x24   : > { %6306 = vmatpush3.bf16.msra.mxu1 %v7034_v10  ;;  %v2187_v10 = vsel %vm7344_vm2, %v2182_v1, %v2186_v48  ;;  %v302_v22 = vsel %vm7344_vm2, %v297_v14, %v301_v2  ;;  %v2210_v35 = vrot.slane %v2208_v26, 5  ;;  %v323_v48 = vshll.u32 %v203_v28, 16 }
  0x25   : > { %6498 = vmatpush3.bf16.msra.mxu0 %v7035_v11  ;;  %6307 = vmatprep.subr.bf16.mxu1 %v7036_v25  ;;  %v2189_v11 = vshrl.u32 %v5527_v57, 16  ;;  %v5588_v13 = vcombine.low %v2177_v9, %v2187_v10  ;;  %v316_v47 = vrot.slane %v314_v38, 4  ;;  %v319_v55 = vrot.slane %v317_v44, 5 }
  0x26   : > { %6499 = vmatprep.subr.bf16.mxu0 %v7037_v30  ;;  %v2213_v56 = vshrl.u32 %v5530_v39, 16  ;;  %v325_v57 = vrot.slane %v323_v48, 5  ;;  %v329_v58 = vrot.slane %v327_v49, 4  ;;  %v335_v59 = vrot.slane %v333_v50, 5  ;;  %v7045_v48 = vld [vmem:[%s9121_s1 + $0x158] sm:$0xff]  }
  0x27   : > { %v2191_v17 = vrot.slane %v2189_v11, 4  ;;  %6503 = vmatprep.mubr.bf16.mxu0 %v5588_v13  ;;  %v2216_v60 = vshll.u32 %v5530_v39, 16  ;;  %v320_v0 = vor.u32 %v319_v55, %v316_v47  ;;  %v2222_v2 = vshll.u32 %v7397_v45, 16  ;;  %v249_v11 = vld [vmem:[%s7312_s16 + $0x38] sm:$0x1] }
  0x28   : > { %6308 = vmatpush3.bf16.msra.mxu1 %v7036_v25  ;;  %v307_v25 = vrot.slane %v306_v15, 4  ;;  %v2215_v1 = vrot.slane %v2213_v56, 4  ;;  %v330_v7 = vor.u32 %v329_v58, %v325_v57  ;;  %v2226_v10 = vshrl.u32 %v7397_v45, 16 }
  0x29   : > { %6500 = vmatpush3.bf16.msra.mxu0 %v7037_v30  ;;  %6309 = vmatprep.subr.bf16.mxu1 %v7038_v36  ;;  %v2195_v29 = vor.u32 %v2194_v18, %v2191_v17  ;;  %v2200_v30 = vrot.slane %v2198_v19, 5  ;;  %v2218_v9 = vrot.slane %v2216_v60, 5  ;;  %v321_v12 = vrot.slane %v320_v0, 4  ;;  %v7052_v60 = vld [vmem:[%s9121_s1 + $0x20] sm:$0xff]  }
  0x2a   : > { %6501 = vmatprep.subr.bf16.mxu0 %v7039_v51  ;;  %v312_v34 = vsel %vm7344_vm2, %v307_v25, %v311_v16  ;;  %v2224_v13 = vrot.slane %v2222_v2, 5  ;;  %v338_v15 = vshrl.u32 %v204_v52, 16  ;;  %v5533_v16 = vld [vmem:[%s7312_s16 + $0x40] sm:$0xf]  ;;  %v331_v17 = vrot.slane %v330_v7, 4 }
  0x2b   : > { %v5349_v40 = vcombine.low %v302_v22, %v312_v34  ;;  %v2196_v42 = vrot.slane %v2195_v29, 4  ;;  %v2205_v43 = vor.u32 %v2204_v31, %v2200_v30  ;;  %v2219_v18 = vor.u32 %v2218_v9, %v2215_v1  ;;  %v7049_v34 = vld [vmem:[%s9121_s1 + $0x18] sm:$0xff]   ;;  %v250_v2 = vld [vmem:[%s7312_s16 + $0x48] sm:$0x1]  ;;  %v5536_v9 = vld [vmem:[%s7312_s16 + $0x50] sm:$0xf] }
  0x2c   : > { %6310 = vmatpush3.bf16.msra.mxu1 %v7038_v36  ;;  %v7393_v36 = vrot.slane %v2943_v27, 4  ;;  %v2228_v19 = vrot.slane %v2226_v10, 4  ;;  %v341_v20 = vshll.u32 %v204_v52, 16  ;;  %v326_v21 = vsel %vm7344_vm2, %v321_v12, %v325_v57 }
  0x2d   : > { %6502 = vmatpush3.bf16.msra.mxu0 %v7039_v51  ;;  %6343 = vmatprep.subr.bf16.mxu1 %v7040_v3  ;;  %v7403_v51 = vld [vmem:[%s7312_s16 + $0x38] sm:$0x1]  ;;  %v2201_v53 = vsel %vm7344_vm2, %v2196_v42, %v2200_v30  ;;  %v2206_v54 = vrot.slane %v2205_v43, 4  ;;  %v340_v25 = vrot.slane %v338_v15, 4  ;;  %v347_v26 = vshll.u32 %v205_v5, 16 }
  0x2e   : > { %6535 = vmatprep.subr.bf16.mxu0 %v7369_v4  ;;  %v2232_v14 = vshll.u32 %v7403_v51, 16  ;;  %v336_v28 = vsel %vm7344_vm2, %v331_v17, %v335_v59  ;;  %v2220_v29 = vrot.slane %v2219_v18, 4  ;;  %v2229_v30 = vor.u32 %v2228_v19, %v2224_v13  ;;  %v207_v59 = vld [vmem:[%s7312_s16 + $0x44] sm:$0xf]  ;;  %v7462_v19 = vld [vmem:[%s7312_s16 + $0x54] sm:$0xf] }
  0x2f   : > { %6312 = vmatmul.mubr.bf16.vlgmr.msra.gmra.mrb[0].mxu1 %v5349_v40  ;;  %v2211_v61 = vsel %vm7344_vm2, %v2206_v54, %v2210_v35  ;;  %v343_v31 = vrot.slane %v341_v20, 5  ;;  %v5350_v35 = vcombine.low %v326_v21, %v336_v28  ;;  %v349_v38 = vrot.slane %v347_v26, 5  ;;  %v206_v54 = vld [vmem:[%s7312_s16 + $0x40] sm:$0xf]  ;;  %v7470_v28 = vld [vmem:[%s7312_s16 + $0x58] sm:$0x1] }
  0x30   : > { %6344 = vmatpush3.bf16.msra.mxu1 %v7040_v3  ;;  %v7046_v3 = vld [vmem:[%s9121_s1 + $0x10] sm:$0xff]   ;;  %v5589_v6 = vcombine.low %v2201_v53, %v2211_v61  ;;  %v2234_v22 = vrot.slane %v2232_v14, 5  ;;  %v351_v39 = vshrl.u32 %v205_v5, 16  ;;  %v357_v40 = vshll.u32 %v249_v11, 16  ;;  %v7054_v14 = vld [vmem:[%s9121_s1 + $0x28] sm:$0xff]   ;;  %v7047_v20 = vld [vmem:[%s9121_s1 + $0x160] sm:$0xff]  }
  0x31   : > { %6345 = vmatprep.subr.bf16.mxu1 %v7043_v46  ;;  %v2225_v42 = vsel %vm7344_vm2, %v2220_v29, %v2224_v13  ;;  %v2230_v43 = vrot.slane %v2229_v30, 4  ;;  %v344_v44 = vor.u32 %v343_v31, %v340_v25  ;;  %v2237_v47 = vshrl.u32 %v5533_v16, 16  ;;  %6315 = vmatprep.mubr.bf16.mxu1 %v5350_v35  ;;  %v7056_v35 = vld [vmem:[%s9121_s1 + $0x30] sm:$0xff]  }
  0x32   : > { %6504 = vmatmul.mubr.bf16.vlgmr.msra.gmra.mrb[0].mxu0 %v5589_v6  ;;  %v353_v49 = vrot.slane %v351_v39, 4  ;;  %v359_v50 = vrot.slane %v357_v40, 5  ;;  %v2240_v52 = vshll.u32 %v5533_v16, 16  ;;  %v2246_v53 = vshll.u32 %v7428_v33, 16 }
  0x33   : > { %6536 = vmatpush3.bf16.msra.mxu0 %v7369_v4  ;;  %v7044_v4 = vld [vmem:[%s9121_s1 + $0x150] sm:$0xff]   ;;  %v2235_v55 = vsel %vm7344_vm2, %v2230_v43, %v2234_v22  ;;  %v345_v56 = vrot.slane %v344_v44, 4  ;;  %v2239_v57 = vrot.slane %v2237_v47, 4  ;;  %v2250_v58 = vshrl.u32 %v7428_v33, 16 }
  0x34   : > { %6346 = vmatpush3.bf16.msra.mxu1 %v7043_v46  ;;  %6537 = vmatprep.subr.bf16.mxu0 %v7042_v63  ;;  %v7439_v46 = vld [vmem:[%s7312_s16 + $0x48] sm:$0x1]  ;;  %v5590_v61 = vcombine.low %v2225_v42, %v2235_v55  ;;  %v2242_v0 = vrot.slane %v2240_v52, 5  ;;  %v2248_v1 = vrot.slane %v2246_v53, 5  ;;  %v362_v7 = vshrl.u32 %v206_v54, 16 }
  0x35   : > { %6347 = vmatprep.subr.bf16.mxu1 %v7046_v3  ;;  %v350_v5 = vsel %vm7344_vm2, %v345_v56, %v349_v38  ;;  %v2256_v6 = vshll.u32 %v7439_v46, 16  ;;  %v365_v12 = vshll.u32 %v206_v54, 16  ;;  %v371_v13 = vshll.u32 %v207_v59, 16  ;;  %v209_v55 = vld [vmem:[%s7312_s16 + $0x54] sm:$0xf] }
  0x36   : > { %6507 = vmatprep.mubr.bf16.mxu0 %v5590_v61  ;;  %v2243_v11 = vor.u32 %v2242_v0, %v2239_v57  ;;  %v364_v17 = vrot.slane %v362_v7, 4  ;;  %v375_v18 = vshrl.u32 %v207_v59, 16  ;;  %v2261_v40 = vshrl.u32 %v5536_v9, 16 }
  0x37   : > { %6538 = vmatpush3.bf16.msra.mxu0 %v7042_v63  ;;  %v354_v63 = vor.u32 %v353_v49, %v349_v38  ;;  %v2258_v16 = vrot.slane %v2256_v6, 5  ;;  %v367_v25 = vrot.slane %v365_v12, 5  ;;  %v373_v26 = vrot.slane %v371_v13, 5 }
  0x38   : > { %6348 = vmatpush3.bf16.msra.mxu1 %v7046_v3  ;;  %6539 = vmatprep.subr.bf16.mxu0 %v7044_v4  ;;  %v2252_v3 = vrot.slane %v2250_v58, 4  ;;  %v2244_v22 = vrot.slane %v2243_v11, 4  ;;  %v377_v31 = vrot.slane %v375_v18, 4  ;;  %v2264_v42 = vshll.u32 %v5536_v9, 16  ;;  %v5539_v9 = vld [vmem:[%s7312_s16 + $0x60] sm:$0xf] }
  0x39   : > { %6349 = vmatprep.subr.bf16.mxu1 %v7049_v34  ;;  %v355_v10 = vrot.slane %v354_v63, 4  ;;  %v368_v39 = vor.u32 %v367_v25, %v364_v17  ;;  %v2270_v49 = vshll.u32 %v7462_v19, 16  ;;  %v2263_v53 = vrot.slane %v2261_v40, 4  ;;  %v251_v63 = vld [vmem:[%s7312_s16 + $0x58] sm:$0x1] }
  0x3a   : > { %v2253_v15 = vor.u32 %v2252_v3, %v2248_v1  ;;  %v2249_v38 = vsel %vm7344_vm2, %v2244_v22, %v2248_v1  ;;  %v378_v44 = vor.u32 %v377_v31, %v373_v26  ;;  %v2266_v54 = vrot.slane %v2264_v42, 5  ;;  %v7503_v22 = vld [vmem:[%s7312_s16 + $0x68] sm:$0x1]  ;;  %v7051_v31 = vld [vmem:[%s9121_s1 + $0x178] sm:$0xff]  }
  0x3b   : > { %6540 = vmatpush3.bf16.msra.mxu0 %v7044_v4  ;;  %v360_v21 = vsel %vm7344_vm2, %v355_v10, %v359_v50  ;;  %v381_v4 = vshll.u32 %v250_v2, 16  ;;  %v369_v52 = vrot.slane %v368_v39, 4  ;;  %v2272_v57 = vrot.slane %v2270_v49, 5  ;;  %v7058_v2 = vld [vmem:[%s9121_s1 + $0x38] sm:$0xff]  }
  0x3c   : > { %6350 = vmatpush3.bf16.msra.mxu1 %v7049_v34  ;;  %6541 = vmatprep.subr.bf16.mxu0 %v7045_v48  ;;  %v5351_v29 = vcombine.low %v350_v5, %v360_v21  ;;  %v2254_v30 = vrot.slane %v2253_v15, 4  ;;  %v208_v34 = vld [vmem:[%s7312_s16 + $0x50] sm:$0xf]  ;;  %v379_v56 = vrot.slane %v378_v44, 4  ;;  %v2274_v58 = vshrl.u32 %v7462_v19, 16 }
  0x3d   : > { %6351 = vmatprep.subr.bf16.mxu1 %v7052_v60  ;;  %v383_v47 = vrot.slane %v381_v4, 5  ;;  %v2280_v59 = vshll.u32 %v7470_v28, 16  ;;  %v2267_v61 = vor.u32 %v2266_v54, %v2263_v53  ;;  %v386_v0 = vshrl.u32 %v208_v34, 16  ;;  %v7050_v15 = vld [vmem:[%s9121_s1 + $0x170] sm:$0xff]   ;;  %v7514_v4 = vld [vmem:[%s9121_s1 + $0x80] sm:$0xff]  }
  0x3e   : > { %6316 = vmatmul.mubr.bf16.gmra.mrb[4].mxu1 %v5351_v29  ;;  %v2259_v43 = vsel %vm7344_vm2, %v2254_v30, %v2258_v16  ;;  %v389_v1 = vshll.u32 %v208_v34, 16  ;;  %v2276_v3 = vrot.slane %v2274_v58, 4  ;;  %v395_v7 = vshll.u32 %v209_v55, 16  ;;  %v210_v30 = vld [vmem:[%s7312_s16 + $0x60] sm:$0xf] }
  0x3f   : > { %6542 = vmatpush3.bf16.msra.mxu0 %v7045_v48  ;;  %v5591_v50 = vcombine.low %v2249_v38, %v2259_v43  ;;  %v7048_v48 = vld [vmem:[%s9121_s1 + $0x168] sm:$0xff]   ;;  %v384_v5 = vsel %vm7344_vm2, %v379_v56, %v383_v47  ;;  %v2282_v6 = vrot.slane %v2280_v59, 5  ;;  %v2268_v11 = vrot.slane %v2267_v61, 4  ;;  %v211_v53 = vld [vmem:[%s7312_s16 + $0x64] sm:$0xf] }
  0x40   : > { %6352 = vmatpush3.bf16.msra.mxu1 %v7052_v60  ;;  %6543 = vmatprep.subr.bf16.mxu0 %v7047_v20  ;;  %v374_v60 = vsel %vm7344_vm2, %v369_v52, %v373_v26  ;;  %v388_v12 = vrot.slane %v386_v0, 4  ;;  %v391_v13 = vrot.slane %v389_v1, 5  ;;  %v2277_v16 = vor.u32 %v2276_v3, %v2272_v57  ;;  %v252_v54 = vld [vmem:[%s7312_s16 + $0x68] sm:$0x1]  ;;  %v5542_v58 = vld [vmem:[%s7312_s16 + $0x70] sm:$0xf] }
  0x41   : > { %6353 = vmatprep.subr.bf16.mxu1 %v7054_v14  ;;  %6508 = vmatmul.mubr.bf16.gmra.mrb[4].mxu0 %v5591_v50  ;;  %v5352_v10 = vcombine.low %v374_v60, %v384_v5  ;;  %v397_v17 = vrot.slane %v395_v7, 5  ;;  %v399_v18 = vshrl.u32 %v209_v55, 16  ;;  %v405_v21 = vshll.u32 %v251_v63, 16  ;;  %v7528_v0 = vld [vmem:[%s7312_s16 + $0x74] sm:$0xf] }
  0x42   : > { %v392_v25 = vor.u32 %v391_v13, %v388_v12  ;;  %v2285_v26 = vshrl.u32 %v5539_v9, 16  ;;  %v2288_v29 = vshll.u32 %v5539_v9, 16  ;;  %v2278_v34 = vrot.slane %v2277_v16, 4 }
  0x43   : > { %6544 = vmatpush3.bf16.msra.mxu0 %v7047_v20  ;;  %6319 = vmatprep.mubr.bf16.mxu1 %v5352_v10  ;;  %v2273_v20 = vsel %vm7344_vm2, %v2268_v11, %v2272_v57  ;;  %v407_v38 = vrot.slane %v405_v21, 5  ;;  %v2304_v52 = vshll.u32 %v7503_v22, 16  ;;  %v410_v61 = vshrl.u32 %v210_v30, 16 }
  0x44   : > { %6354 = vmatpush3.bf16.msra.mxu1 %v7054_v14  ;;  %v7497_v14 = vld [vmem:[%s7312_s16 + $0x64] sm:$0xf]  ;;  %6545 = vmatprep.subr.bf16.mxu0 %v7048_v48  ;;  %v393_v40 = vrot.slane %v392_v25, 4  ;;  %v2287_v42 = vrot.slane %v2285_v26, 4  ;;  %v2290_v43 = vrot.slane %v2288_v29, 5  ;;  %v2283_v47 = vsel %vm7344_vm2, %v2278_v34, %v2282_v6 }
  0x45   : > { %6355 = vmatprep.subr.bf16.mxu1 %v7056_v35  ;;  %v2294_v39 = vshll.u32 %v7497_v14, 16  ;;  %v2298_v44 = vshrl.u32 %v7497_v14, 16  ;;  %v5592_v55 = vcombine.low %v2273_v20, %v2283_v47  ;;  %v2306_v60 = vrot.slane %v2304_v52, 5  ;;  %v7533_v6 = vld [vmem:[%s9121_s1 + $0x180] sm:$0xff]   ;;  %v7540_v20 = vld [vmem:[%s7312_s16 + $0x78] sm:$0x1] }
  0x46   : > { %v2291_v56 = vor.u32 %v2290_v43, %v2287_v42  ;;  %v413_v63 = vshll.u32 %v210_v30, 16  ;;  %v423_v3 = vshrl.u32 %v211_v53, 16  ;;  %v412_v9 = vrot.slane %v410_v61, 4  ;;  %v213_v43 = vld [vmem:[%s7312_s16 + $0x74] sm:$0xf] }
  0x47   : > { %6546 = vmatpush3.bf16.msra.mxu0 %v7048_v48  ;;  %v2296_v50 = vrot.slane %v2294_v39, 5  ;;  %v398_v48 = vsel %vm7344_vm2, %v393_v40, %v397_v17  ;;  %v2300_v57 = vrot.slane %v2298_v44, 4  ;;  %6511 = vmatprep.mubr.bf16.mxu0 %v5592_v55  ;;  %v429_v11 = vshll.u32 %v252_v54, 16  ;;  %v5545_v52 = vld [vmem:[%s7312_s16 + $0x80] sm:$0xf] }
  0x48   : > { %6356 = vmatpush3.bf16.msra.mxu1 %v7056_v35  ;;  %v401_v35 = vrot.slane %v399_v18, 4  ;;  %6547 = vmatprep.subr.bf16.mxu0 %v7050_v15  ;;  %v2292_v1 = vrot.slane %v2291_v56, 4  ;;  %v415_v10 = vrot.slane %v413_v63, 5  ;;  %v425_v18 = vrot.slane %v423_v3, 4 }
  0x49   : > { %6357 = vmatprep.subr.bf16.mxu1 %v7058_v2  ;;  %v2301_v5 = vor.u32 %v2300_v57, %v2296_v50  ;;  %v431_v21 = vrot.slane %v429_v11, 5  ;;  %v2309_v25 = vshrl.u32 %v5542_v58, 16  ;;  %v2312_v29 = vshll.u32 %v5542_v58, 16 }
  0x4a   : > { %v402_v49 = vor.u32 %v401_v35, %v397_v17  ;;  %v2297_v13 = vsel %vm7344_vm2, %v2292_v1, %v2296_v50  ;;  %v416_v17 = vor.u32 %v415_v10, %v412_v9  ;;  %v2318_v30 = vshll.u32 %v7528_v0, 16  ;;  %v212_v35 = vld [vmem:[%s7312_s16 + $0x70] sm:$0xf]  ;;  %v253_v50 = vld [vmem:[%s7312_s16 + $0x78] sm:$0x1] }
  0x4b   : > { %6548 = vmatpush3.bf16.msra.mxu0 %v7050_v15  ;;  %v2302_v15 = vrot.slane %v2301_v5, 4  ;;  %v2322_v34 = vshrl.u32 %v7528_v0, 16  ;;  %v2311_v42 = vrot.slane %v2309_v25, 4  ;;  %v434_v55 = vshrl.u32 %v212_v35, 16  ;;  %v7568_v25 = vld [vmem:[%s7312_s16 + $0x80] sm:$0xf] }
  0x4c   : > { %6358 = vmatpush3.bf16.msra.mxu1 %v7058_v2  ;;  %v403_v59 = vrot.slane %v402_v49, 4  ;;  %v419_v2 = vshll.u32 %v211_v53, 16  ;;  %6549 = vmatprep.subr.bf16.mxu0 %v7051_v31  ;;  %v417_v39 = vrot.slane %v416_v17, 4  ;;  %v2320_v44 = vrot.slane %v2318_v30, 5  ;;  %v7564_v17 = vld [vmem:[%s7312_s16 + $0x88] sm:$0x1] }
  0x4d   : > { %6391 = vmatprep.subr.bf16.mxu1 %v7514_v4  ;;  %v2307_v26 = vsel %vm7344_vm2, %v2302_v15, %v2306_v60  ;;  %v2324_v47 = vrot.slane %v2322_v34, 4  ;;  %v2328_v49 = vshll.u32 %v7540_v20, 16  ;;  %v7555_v60 = vld [vmem:[%s7312_s16 + $0x84] sm:$0xf]  ;;  %v436_v63 = vrot.slane %v434_v55, 4 }
  0x4e   : > { %v408_v7 = vsel %vm7344_vm2, %v403_v59, %v407_v38  ;;  %v421_v16 = vrot.slane %v419_v2, 5  ;;  %v5593_v38 = vcombine.low %v2297_v13, %v2307_v26  ;;  %v443_v59 = vshll.u32 %v213_v43, 16 }
  0x4f   : > { %v5353_v12 = vcombine.low %v398_v48, %v408_v7  ;;  %6550 = vmatpush3.bf16.msra.mxu0 %v7051_v31  ;;  %v2314_v31 = vrot.slane %v2312_v29, 5  ;;  %v437_v48 = vshll.u32 %v212_v35, 16  ;;  %v2325_v57 = vor.u32 %v2324_v47, %v2320_v44  ;;  %v7571_v35 = vld [vmem:[%s7312_s16 + $0x84] sm:$0xf] }
  0x50   : > { %6583 = vmatprep.subr.bf16.mxu0 %v7533_v6  ;;  %v426_v40 = vor.u32 %v425_v18, %v421_v16  ;;  %6512 = vmatmul.mubr.bf16.gmra.mrb[8].mxu0 %v5593_v38  ;;  %v422_v53 = vsel %vm7344_vm2, %v417_v39, %v421_v16  ;;  %v2330_v58 = vrot.slane %v2328_v49, 5  ;;  %v447_v5 = vshrl.u32 %v213_v43, 16  ;;  %v254_v43 = vld [vmem:[%s7312_s16 + $0x88] sm:$0x1] }
  0x51   : > { %6320 = vmatmul.mubr.bf16.gmra.mrb[8].mxu1 %v5353_v12  ;;  %v2315_v56 = vor.u32 %v2314_v31, %v2311_v42  ;;  %v439_v1 = vrot.slane %v437_v48, 5  ;;  %v2326_v7 = vrot.slane %v2325_v57, 4  ;;  %v445_v9 = vrot.slane %v443_v59, 5 }
  0x52   : > { %v427_v54 = vrot.slane %v426_v40, 4  ;;  %v449_v11 = vrot.slane %v447_v5, 4  ;;  %v453_v12 = vshll.u32 %v253_v50, 16  ;;  %v2333_v13 = vshrl.u32 %v5545_v52, 16  ;;  %v5612_v50 = vld [vmem:[%s7312_s16 + $0x10] sm:$0xe] }
  0x53   : > { %v2316_v3 = vrot.slane %v2315_v56, 4  ;;  %v440_v10 = vor.u32 %v439_v1, %v436_v63  ;;  %v2331_v16 = vsel %vm7344_vm2, %v2326_v7, %v2330_v58  ;;  %v2336_v18 = vshll.u32 %v5545_v52, 16  ;;  %v7586_v5 = vld [vmem:[%s7312_s16 + $0x90] sm:$0xf] }
  0x54   : > { %v432_v61 = vsel %vm7344_vm2, %v427_v54, %v431_v21  ;;  %v2342_v21 = vshll.u32 %v7555_v60, 16  ;;  %v450_v30 = vor.u32 %v449_v11, %v445_v9  ;;  %v455_v34 = vrot.slane %v453_v12, 5 }
  0x55   : > { %v5354_v2 = vcombine.low %v422_v53, %v432_v61  ;;  %v2321_v15 = vsel %vm7344_vm2, %v2316_v3, %v2320_v44  ;;  %v441_v29 = vrot.slane %v440_v10, 4  ;;  %v2335_v38 = vrot.slane %v2333_v13, 4 }
  0x56   : > { %v5594_v26 = vcombine.low %v2321_v15, %v2331_v16  ;;  %v2338_v39 = vrot.slane %v2336_v18, 5  ;;  %v2344_v40 = vrot.slane %v2342_v21, 5  ;;  %v2346_v42 = vshrl.u32 %v7555_v60, 16  ;;  %v7598_v21 = vld [vmem:[%s7312_s16 + $0x94] sm:$0xf] }
  0x57   : > { %6323 = vmatprep.mubr.bf16.mxu1 %v5354_v2  ;;  %v446_v31 = vsel %vm7344_vm2, %v441_v29, %v445_v9  ;;  %v451_v44 = vrot.slane %v450_v30, 4  ;;  %v2352_v47 = vshll.u32 %v7564_v17, 16  ;;  %v458_v49 = vshrl.u32 %v7568_v25, 16  ;;  %v7142_v9 = vld [vmem:[%s7312_s16 + $0xf0] sm:$0xff]  }
  0x58   : > { %6515 = vmatprep.mubr.bf16.mxu0 %v5594_v26  ;;  %v2339_v52 = vor.u32 %v2338_v39, %v2335_v38  ;;  %v2348_v53 = vrot.slane %v2346_v42, 4  ;;  %v461_v54 = vshll.u32 %v7568_v25, 16  ;;  %v467_v55 = vshll.u32 %v7571_v35, 16 }
  0x59   : > { %v456_v48 = vsel %vm7344_vm2, %v451_v44, %v455_v34  ;;  %v2354_v56 = vrot.slane %v2352_v47, 5  ;;  %v460_v57 = vrot.slane %v458_v49, 4  ;;  %v471_v58 = vshrl.u32 %v7571_v35, 16  ;;  %v7609_v47 = vld [vmem:[%s7312_s16 + $0xa0] sm:$0xf] }
  0x5a   : > { %v5355_v59 = vcombine.low %v446_v31, %v456_v48  ;;  %v2340_v61 = vrot.slane %v2339_v52, 4  ;;  %v2349_v63 = vor.u32 %v2348_v53, %v2344_v40  ;;  %v463_v1 = vrot.slane %v461_v54, 5  ;;  %v7620_v54 = vld [vmem:[%s7312_s16 + $0xa4] sm:$0xf] }
  0x5b   : > { %v469_v2 = vrot.slane %v467_v55, 5  ;;  %v473_v3 = vrot.slane %v471_v58, 4  ;;  %v477_v7 = vshll.u32 %v254_v43, 16  ;;  %v5628_v10 = vrot.slane %v5612_v50, 9  ;;  %v256_v58 = vld [vmem:[%s7312_s16 + $0xa8] sm:$0x1] }
  0x5c   : > { %6324 = vmatmul.mubr.bf16.gmra.mrb[12].mxu1 %v5355_v59  ;;  %v2345_v11 = vsel %vm7344_vm2, %v2340_v61, %v2344_v40  ;;  %v2350_v12 = vrot.slane %v2349_v63, 4  ;;  %v464_v13 = vor.u32 %v463_v1, %v460_v57  ;;  %v2936_v15 = vrot.slane %v7325_v23, 5  ;;  %v255_v40 = vld [vmem:[%s7312_s16 + $0x98] sm:$0x1]  ;;  %v5613_v23 = vld [vmem:[%s7312_s16 + $0x20] sm:$0xe] }
  0x5d   : > { %v474_v16 = vor.u32 %v473_v3, %v469_v2  ;;  %v479_v18 = vrot.slane %v477_v7, 5  ;;  %v482_v26 = vshrl.u32 %v7586_v5, 16  ;;  %v485_v29 = vshll.u32 %v7586_v5, 16 }
  0x5e   : > { %v2355_v30 = vsel %vm7344_vm2, %v2350_v12, %v2354_v56  ;;  %v465_v34 = vrot.slane %v464_v13, 4  ;;  %v2937_v38 = vsel %vm7590_vm5, %v5628_v10, %v2936_v15  ;;  %v2938_v39 = vrot.slane %v2936_v15, 4  ;;  %v5614_v13 = vld [vmem:[%s7312_s16 + $0x30] sm:$0xe] }
  0x5f   : > { %v5595_v42 = vcombine.low %v2345_v11, %v2355_v30  ;;  %v475_v43 = vrot.slane %v474_v16, 4  ;;  %v484_v31 = vrot.slane %v482_v26, 4  ;;  %v487_v44 = vrot.slane %v485_v29, 5  ;;  %v7642_v16 = vld [vmem:[%s7312_s16 + $0xb0] sm:$0xf]  ;;  %v7055_v29 = vld [vmem:[%s9121_s1 + $0x188] sm:$0xff]  }
  0x60   : > { %v470_v49 = vsel %vm7344_vm2, %v465_v34, %v469_v2  ;;  %v2940_v50 = vsel %vm7590_vm5, %v2938_v39, %v2939_v41  ;;  %v491_v52 = vshll.u32 %v7598_v21, 16  ;;  %v495_v53 = vshrl.u32 %v7598_v21, 16 }
  0x61   : > { %6516 = vmatmul.mubr.bf16.gmra.mrb[12].mxu0 %v5595_v42  ;;  %v480_v55 = vsel %vm7344_vm2, %v475_v43, %v479_v18  ;;  %v5660_v48 = vcombine.low %v2937_v38, %v2940_v50  ;;  %v488_v56 = vor.u32 %v487_v44, %v484_v31  ;;  %v501_v57 = vshll.u32 %v255_v40, 16  ;;  %v7650_v40 = vld [vmem:[%s7312_s16 + $0xb4] sm:$0xf]  ;;  %v257_v31 = vld [vmem:[%s7312_s16 + $0xb8] sm:$0x1] }
  0x62   : > { %v5356_v59 = vcombine.low %v470_v49, %v480_v55  ;;  %v493_v24 = vrot.slane %v491_v52, 5  ;;  %v497_v61 = vrot.slane %v495_v53, 4  ;;  %v5629_v63 = vrot.slane %v5613_v23, 9 }
  0x63   : > { %6551 = vmatprep.mubr.bf16.mxu0 %v5660_v48  ;;  %v489_v41 = vrot.slane %v488_v56, 4  ;;  %v503_v1 = vrot.slane %v501_v57, 5  ;;  %v2947_v2 = vsel %vm7590_vm5, %v7393_v36, %v2946_v32  ;;  %v506_v3 = vshrl.u32 %v7609_v47, 16 }
  0x64   : > { %6327 = vmatprep.mubr.bf16.mxu1 %v5356_v59  ;;  %v498_v7 = vor.u32 %v497_v61, %v493_v24  ;;  %v2944_v10 = vsel %vm7590_vm5, %v5629_v63, %v2943_v27  ;;  %v509_v11 = vshll.u32 %v7609_v47, 16  ;;  %v515_v12 = vshll.u32 %v7620_v54, 16 }
  0x65   : > { %v494_v8 = vsel %vm7344_vm2, %v489_v41, %v493_v24  ;;  %v5661_v15 = vcombine.low %v2944_v10, %v2947_v2  ;;  %v508_v32 = vrot.slane %v506_v3, 4  ;;  %v519_v36 = vshrl.u32 %v7620_v54, 16  ;;  %v7671_v2 = vld [vmem:[%s7312_s16 + $0xc0] sm:$0xf]  ;;  %v7674_v3 = vld [vmem:[%s7312_s16 + $0xc4] sm:$0xf] }
  0x66   : > { %v499_v62 = vrot.slane %v498_v7, 4  ;;  %v511_v18 = vrot.slane %v509_v11, 5  ;;  %v517_v26 = vrot.slane %v515_v12, 5  ;;  %v525_v27 = vshll.u32 %v256_v58, 16 }
  0x67   : > { %v521_v30 = vrot.slane %v519_v36, 4  ;;  %v5630_v34 = vrot.slane %v5614_v13, 9  ;;  %v2950_v38 = vrot.slane %v7397_v45, 5  ;;  %v2953_v39 = vrot.slane %v7403_v51, 5  ;;  %v5615_v45 = vld [vmem:[%s7312_s16 + $0x40] sm:$0xe] }
  0x68   : > { %v504_v23 = vsel %vm7344_vm2, %v499_v62, %v503_v1  ;;  %v512_v42 = vor.u32 %v511_v18, %v508_v32  ;;  %v527_v43 = vrot.slane %v525_v27, 5  ;;  %v530_v44 = vshrl.u32 %v7642_v16, 16  ;;  %v258_v62 = vld [vmem:[%s7312_s16 + $0xc8] sm:$0x1] }
  0x69   : > { %v5357_v49 = vcombine.low %v494_v8, %v504_v23  ;;  %6552 = vmatmul.mubr.bf16.vlgmr.msra.gmra.mrb[0].mxu0 %v5661_v15  ;;  %v522_v50 = vor.u32 %v521_v30, %v517_v26  ;;  %v2951_v52 = vsel %vm7590_vm5, %v5630_v34, %v2950_v38  ;;  %v2952_v53 = vrot.slane %v2950_v38, 4  ;;  %v7059_v30 = vld [vmem:[%s9121_s1 + $0x198] sm:$0xff]   ;;  %v5616_v38 = vld [vmem:[%s7312_s16 + $0x50] sm:$0xe] }
  0x6a   : > { %6584 = vmatpush3.bf16.msra.mxu0 %v7533_v6  ;;  %v513_v51 = vrot.slane %v512_v42, 4  ;;  %v532_v55 = vrot.slane %v530_v44, 4  ;;  %v533_v48 = vshll.u32 %v7642_v16, 16  ;;  %v539_v56 = vshll.u32 %v7650_v40, 16  ;;  %v7057_v6 = vld [vmem:[%s9121_s1 + $0x190] sm:$0xff]  }
  0x6b   : > { %6328 = vmatmul.mubr.bf16.gmra.mrb[16].mxu1 %v5357_v49  ;;  %v523_v57 = vrot.slane %v522_v50, 4  ;;  %v2954_v58 = vsel %vm7590_vm5, %v2952_v53, %v2953_v39  ;;  %v543_v59 = vshrl.u32 %v7650_v40, 16  ;;  %v549_v24 = vshll.u32 %v257_v31, 16  ;;  %6585 = vmatprep.subr.bf16.mxu0 %v7055_v29  ;;  %v7692_v31 = vld [vmem:[%s7312_s16 + $0xd0] sm:$0xf] }
  0x6c   : > { %v518_v61 = vsel %vm7344_vm2, %v513_v51, %v517_v26  ;;  %v5662_v63 = vcombine.low %v2951_v52, %v2954_v58  ;;  %v535_v41 = vrot.slane %v533_v48, 5  ;;  %v541_v1 = vrot.slane %v539_v56, 5  ;;  %v7701_v48 = vld [vmem:[%s7312_s16 + $0xd4] sm:$0xf]  ;;  %v7063_v56 = vld [vmem:[%s9121_s1 + $0x1a0] sm:$0xff]  }
  0x6d   : > { %v528_v7 = vsel %vm7344_vm2, %v523_v57, %v527_v43  ;;  %v545_v10 = vrot.slane %v543_v59, 4  ;;  %v551_v11 = vrot.slane %v549_v24, 5  ;;  %v5631_v12 = vrot.slane %v5615_v45, 9 }
  0x6e   : > { %v5358_v13 = vcombine.low %v518_v61, %v528_v7  ;;  %6555 = vmatprep.mubr.bf16.mxu0 %v5662_v63  ;;  %v536_v8 = vor.u32 %v535_v41, %v532_v55  ;;  %v2957_v15 = vrot.slane %v7428_v33, 5  ;;  %v2960_v32 = vrot.slane %v7439_v46, 5  ;;  %6586 = vmatpush3.bf16.msra.mxu0 %v7055_v29  ;;  %v259_v61 = vld [vmem:[%s7312_s16 + $0xd8] sm:$0x1] }
  0x6f   : > { %v546_v36 = vor.u32 %v545_v10, %v541_v1  ;;  %v554_v18 = vshrl.u32 %v7671_v2, 16  ;;  %v557_v26 = vshll.u32 %v7671_v2, 16  ;;  %v563_v27 = vshll.u32 %v7674_v3, 16  ;;  %6587 = vmatprep.subr.bf16.mxu0 %v7057_v6 }
  0x70   : > { %6331 = vmatprep.mubr.bf16.mxu1 %v5358_v13  ;;  %v537_v34 = vrot.slane %v536_v8, 4  ;;  %v2958_v33 = vsel %vm7590_vm5, %v5631_v12, %v2957_v15  ;;  %v2959_v46 = vrot.slane %v2957_v15, 4  ;;  %v567_v29 = vshrl.u32 %v7674_v3, 16  ;;  %v5617_v15 = vld [vmem:[%s7312_s16 + $0x60] sm:$0xe] }
  0x71   : > { %v547_v39 = vrot.slane %v546_v36, 4  ;;  %v556_v23 = vrot.slane %v554_v18, 4  ;;  %v559_v42 = vrot.slane %v557_v26, 5  ;;  %v565_v43 = vrot.slane %v563_v27, 5  ;;  %v7726_v27 = vld [vmem:[%s7312_s16 + $0xe0] sm:$0xf] }
  0x72   : > { %v542_v44 = vsel %vm7344_vm2, %v537_v34, %v541_v1  ;;  %v2961_v49 = vsel %vm7590_vm5, %v2959_v46, %v2960_v32  ;;  %v569_v50 = vrot.slane %v567_v29, 4  ;;  %v573_v52 = vshll.u32 %v258_v62, 16  ;;  %6588 = vmatpush3.bf16.msra.mxu0 %v7057_v6  ;;  %v7067_v32 = vld [vmem:[%s9121_s1 + $0x1a8] sm:$0xff]   ;;  %v7729_v29 = vld [vmem:[%s7312_s16 + $0xe4] sm:$0xf] }
  0x73   : > { %v552_v53 = vsel %vm7344_vm2, %v547_v39, %v551_v11  ;;  %v5663_v45 = vcombine.low %v2958_v33, %v2961_v49  ;;  %v560_v51 = vor.u32 %v559_v42, %v556_v23  ;;  %v5632_v55 = vrot.slane %v5616_v38, 9  ;;  %6589 = vmatprep.subr.bf16.mxu0 %v7059_v30 }
  0x74   : > { %v5359_v57 = vcombine.low %v542_v44, %v552_v53  ;;  %v570_v58 = vor.u32 %v569_v50, %v565_v43  ;;  %v575_v59 = vrot.slane %v573_v52, 5  ;;  %v2964_v24 = vrot.slane %v7462_v19, 5  ;;  %v5618_v53 = vld [vmem:[%s7312_s16 + $0x70] sm:$0xe] }
  0x75   : > { %6556 = vmatmul.mubr.bf16.gmra.mrb[4].mxu0 %v5663_v45  ;;  %v561_v6 = vrot.slane %v560_v51, 4  ;;  %v2967_v63 = vrot.slane %v7470_v28, 5  ;;  %v578_v41 = vshrl.u32 %v7692_v31, 16  ;;  %v581_v1 = vshll.u32 %v7692_v31, 16  ;;  %v7071_v45 = vld [vmem:[%s9121_s1 + $0x1b0] sm:$0xff]  }
  0x76   : > { %6332 = vmatmul.mubr.bf16.gmra.mrb[20].mxu1 %v5359_v57  ;;  %v571_v7 = vrot.slane %v570_v58, 4  ;;  %v2965_v10 = vsel %vm7590_vm5, %v5632_v55, %v2964_v24  ;;  %v2966_v11 = vrot.slane %v2964_v24, 4  ;;  %v587_v12 = vshll.u32 %v7701_v48, 16  ;;  %6590 = vmatpush3.bf16.msra.mxu0 %v7059_v30 }
  0x77   : > { %v566_v19 = vsel %vm7344_vm2, %v561_v6, %v565_v43  ;;  %v580_v13 = vrot.slane %v578_v41, 4  ;;  %v583_v28 = vrot.slane %v581_v1, 5  ;;  %v591_v8 = vshrl.u32 %v7701_v48, 16  ;;  %6591 = vmatprep.subr.bf16.mxu0 %v7063_v56  ;;  %v260_v43 = vld [vmem:[%s7312_s16 + $0xe8] sm:$0x1] }
  0x78   : > { %v576_v36 = vsel %vm7344_vm2, %v571_v7, %v575_v59  ;;  %v2968_v62 = vsel %vm7590_vm5, %v2966_v11, %v2967_v63  ;;  %v589_v18 = vrot.slane %v587_v12, 5  ;;  %v597_v26 = vshll.u32 %v259_v61, 16  ;;  %v7749_v41 = vld [vmem:[%s7312_s16 + $0xf0] sm:$0xf]  ;;  %v7754_v12 = vld [vmem:[%s7312_s16 + $0xf4] sm:$0xf] }
  0x79   : > { %v5360_v30 = vcombine.low %v566_v19, %v576_v36  ;;  %v5664_v34 = vcombine.low %v2965_v10, %v2968_v62  ;;  %v584_v33 = vor.u32 %v583_v28, %v580_v13  ;;  %v593_v46 = vrot.slane %v591_v8, 4  ;;  %v261_v19 = vld [vmem:[%s7312_s16 + $0xf8] sm:$0x1] }
  0x7a   : > { %v599_v38 = vrot.slane %v597_v26, 5  ;;  %v5633_v39 = vrot.slane %v5617_v15, 9  ;;  %v2971_v23 = vrot.slane %v7497_v14, 5  ;;  %v2974_v42 = vrot.slane %v7503_v22, 5  ;;  %6592 = vmatpush3.bf16.msra.mxu0 %v7063_v56  ;;  %v7075_v13 = vld [vmem:[%s9121_s1 + $0x1b8] sm:$0xff]  }
  0x7b   : > { %6335 = vmatprep.mubr.bf16.mxu1 %v5360_v30  ;;  %6559 = vmatprep.mubr.bf16.mxu0 %v5664_v34  ;;  %v585_v44 = vrot.slane %v584_v33, 4  ;;  %v594_v49 = vor.u32 %v593_v46, %v589_v18  ;;  %v602_v50 = vshrl.u32 %v7726_v27, 16  ;;  %v605_v52 = vshll.u32 %v7726_v27, 16  ;;  %v5619_v30 = vld [vmem:[%s7312_s16 + $0x80] sm:$0xe] }
  0x7c   : > { %v2972_v14 = vsel %vm7590_vm5, %v5633_v39, %v2971_v23  ;;  %v2973_v22 = vrot.slane %v2971_v23, 4  ;;  %v611_v51 = vshll.u32 %v7729_v29, 16  ;;  %v615_v55 = vshrl.u32 %v7729_v29, 16  ;;  %6593 = vmatprep.subr.bf16.mxu0 %v7067_v32  ;;  %v5549_v39 = vld [vmem:[%s7312_s16 + $0x94] sm:$0xf] }
  0x7d   : > { %v590_v56 = vsel %vm7344_vm2, %v585_v44, %v589_v18  ;;  %v595_v57 = vrot.slane %v594_v49, 4  ;;  %v604_v58 = vrot.slane %v602_v50, 4  ;;  %v607_v59 = vrot.slane %v605_v52, 5  ;;  %v7776_v44 = vld [vmem:[%s9121_s1 + $0x1c0] sm:$0xff]  }
  0x7e   : > { %v2975_v24 = vsel %vm7590_vm5, %v2973_v22, %v2974_v42  ;;  %v613_v61 = vrot.slane %v611_v51, 5  ;;  %v617_v6 = vrot.slane %v615_v55, 4  ;;  %v621_v63 = vshll.u32 %v260_v43, 16  ;;  %6594 = vmatpush3.bf16.msra.mxu0 %v7067_v32  ;;  %v5620_v43 = vld [vmem:[%s7312_s16 + $0x90] sm:$0xe] }
  0x7f   : > { %v600_v1 = vsel %vm7344_vm2, %v595_v57, %v599_v38  ;;  %v5665_v7 = vcombine.low %v2972_v14, %v2975_v24  ;;  %v608_v10 = vor.u32 %v607_v59, %v604_v58  ;;  %v5634_v11 = vrot.slane %v5618_v53, 9  ;;  %6595 = vmatprep.subr.bf16.mxu0 %v7071_v45  ;;  %v5550_v55 = vld [vmem:[%s7312_s16 + $0x98] sm:$0x1]  ;;  %v5621_v24 = vld [vmem:[%s7312_s16 + $0xa0] sm:$0xe] }
  0x80   : > { %v5361_v28 = vcombine.low %v590_v56, %v600_v1  ;;  %v618_v8 = vor.u32 %v617_v6, %v613_v61  ;;  %v623_v15 = vrot.slane %v621_v63, 5  ;;  %v2978_v32 = vrot.slane %v7528_v0, 5 }
  0x81   : > { %6560 = vmatmul.mubr.bf16.gmra.mrb[8].mxu0 %v5665_v7  ;;  %v609_v36 = vrot.slane %v608_v10, 4  ;;  %v2981_v62 = vrot.slane %v7540_v20, 5  ;;  %v626_v18 = vshrl.u32 %v7749_v41, 16  ;;  %v629_v26 = vshll.u32 %v7749_v41, 16 }
  0x82   : > { %6336 = vmatmul.mubr.bf16.gmra.mrb[24].mxu1 %v5361_v28  ;;  %v619_v34 = vrot.slane %v618_v8, 4  ;;  %v2979_v33 = vsel %vm7590_vm5, %v5634_v11, %v2978_v32  ;;  %v2980_v46 = vrot.slane %v2978_v32, 4  ;;  %v635_v38 = vshll.u32 %v7754_v12, 16  ;;  %6596 = vmatpush3.bf16.msra.mxu0 %v7071_v45  ;;  %v7789_v11 = vld [vmem:[%s7312_s16 + $0xa4] sm:$0xf] }
  0x83   : > { %v614_v0 = vsel %vm7344_vm2, %v609_v36, %v613_v61  ;;  %v628_v20 = vrot.slane %v626_v18, 4  ;;  %v631_v23 = vrot.slane %v629_v26, 5  ;;  %v639_v42 = vshrl.u32 %v7754_v12, 16  ;;  %6597 = vmatprep.subr.bf16.mxu0 %v7075_v13  ;;  %v7144_v36 = vld [vmem:[%s7312_s16] sm:$0xf] }
  0x84   : > { %v624_v49 = vsel %vm7344_vm2, %v619_v34, %v623_v15  ;;  %v2982_v50 = vsel %vm7590_vm5, %v2980_v46, %v2981_v62  ;;  %v637_v52 = vrot.slane %v635_v38, 5  ;;  %v645_v53 = vshll.u32 %v261_v19, 16  ;;  %v5555_v15 = vld [vmem:[%s7312_s16 + $0xb4] sm:$0xf]  ;;  %v7804_v62 = vld [vmem:[%s7312_s16 + $0x4] sm:$0xf] }
  0x85   : > { %v5362_v45 = vcombine.low %v614_v0, %v624_v49  ;;  %v5666_v14 = vcombine.low %v2979_v33, %v2982_v50  ;;  %v632_v22 = vor.u32 %v631_v23, %v628_v20  ;;  %v641_v51 = vrot.slane %v639_v42, 4  ;;  %v5556_v26 = vld [vmem:[%s7312_s16 + $0xb8] sm:$0x1]  ;;  %v5559_v23 = vld [vmem:[%s7312_s16 + $0xc8] sm:$0x1] }
  0x86   : > { %v647_v56 = vrot.slane %v645_v53, 5  ;;  %v5635_v57 = vrot.slane %v5619_v30, 9  ;;  %v2985_v58 = vrot.slane %v7555_v60, 5  ;;  %v2988_v59 = vrot.slane %v7564_v17, 5  ;;  %6598 = vmatpush3.bf16.msra.mxu0 %v7075_v13  ;;  %v7792_v17 = vld [vmem:[%s7312_s16 + $0xa8] sm:$0x1] }
  0x87   : > { %6339 = vmatprep.mubr.bf16.mxu1 %v5362_v45  ;;  %6563 = vmatprep.mubr.bf16.mxu0 %v5666_v14  ;;  %v633_v61 = vrot.slane %v632_v22, 4  ;;  %v642_v6 = vor.u32 %v641_v51, %v637_v52  ;;  %v5636_v63 = vrot.slane %v5620_v43, 9  ;;  %v2992_v1 = vrot.slane %v5549_v39, 5  ;;  %v5622_v30 = vld [vmem:[%s7312_s16 + $0xb0] sm:$0xe] }
  0x88   : > { %v2986_v7 = vsel %vm7590_vm5, %v5635_v57, %v2985_v58  ;;  %v2987_v10 = vrot.slane %v2985_v58, 4  ;;  %v2995_v60 = vrot.slane %v5550_v55, 5  ;;  %6631 = vmatprep.subr.bf16.mxu0 %v7776_v44  ;;  %v5372_v18 = vcombine.low %v7144_v36, %v7804_v62  ;;  %v5558_v39 = vld [vmem:[%s7312_s16 + $0xc4] sm:$0xf]  ;;  %v5623_v42 = vld [vmem:[%s7312_s16 + $0xc0] sm:$0xe] }
  0x89   : > { %v638_v19 = vsel %vm7344_vm2, %v633_v61, %v637_v52  ;;  %v643_v13 = vrot.slane %v642_v6, 4  ;;  %v2993_v28 = vsel %vm7590_vm5, %v5636_v63, %v2992_v1  ;;  %v2994_v8 = vrot.slane %v2992_v1, 4  ;;  %v5624_v50 = vld [vmem:[%s7312_s16 + $0xd0] sm:$0xe]  ;;  %v5561_v14 = vld [vmem:[%s7312_s16 + $0xd4] sm:$0xf] }
  0x8a   : > { %v2989_v32 = vsel %vm7590_vm5, %v2987_v10, %v2988_v59  ;;  %v5637_v38 = vrot.slane %v5621_v24, 9  ;;  %v2999_v43 = vrot.slane %v7789_v11, 5  ;;  %v3002_v49 = vrot.slane %v7792_v17, 5  ;;  %v5562_v22 = vld [vmem:[%s7312_s16 + $0xd8] sm:$0x1] }
  0x8b   : > { %v648_v34 = vsel %vm7344_vm2, %v643_v13, %v647_v56  ;;  %v5667_v33 = vcombine.low %v2986_v7, %v2989_v32  ;;  %v2996_v46 = vsel %vm7590_vm5, %v2994_v8, %v2995_v60  ;;  %v5638_v52 = vrot.slane %v5622_v30, 9  ;;  %v5564_v59 = vld [vmem:[%s7312_s16 + $0xe4] sm:$0xf]  ;;  %v7146_v24 = vld [vmem:[%s7312_s16 + $0x10] sm:$0xf] }
  0x8c   : > { %v5363_v0 = vcombine.low %v638_v19, %v648_v34  ;;  %v5668_v20 = vcombine.low %v2993_v28, %v2996_v46  ;;  %v3006_v53 = vrot.slane %v5555_v15, 5  ;;  %v3009_v45 = vrot.slane %v5556_v26, 5  ;;  %v7828_v61 = vld [vmem:[%s7312_s16 + $0x14] sm:$0xf]  ;;  %v7066_v19 = vld [vmem:[%s9121_s1 + $0x88] sm:$0xff]  }
  0x8d   : > { %6564 = vmatmul.mubr.bf16.gmra.mrb[12].mxu0 %v5667_v33  ;;  %v3000_v51 = vsel %vm7590_vm5, %v5637_v38, %v2999_v43  ;;  %v3001_v55 = vrot.slane %v2999_v43, 4  ;;  %v3013_v58 = vrot.slane %v5558_v39, 5  ;;  %v5373_v6 = vcombine.low %v7146_v24, %v7828_v61  ;;  %v7148_v8 = vld [vmem:[%s7312_s16 + $0x20] sm:$0xf]  ;;  %v7840_v15 = vld [vmem:[%s7312_s16 + $0x24] sm:$0xf] }
  0x8e   : > { %6340 = vmatmul.mubr.bf16.gmra.mrb[28].mxu1 %v5363_v0  ;;  %6567 = vmatprep.mubr.bf16.mxu0 %v5668_v20  ;;  %v3007_v56 = vsel %vm7590_vm5, %v5638_v52, %v3006_v53  ;;  %v3008_v57 = vrot.slane %v3006_v53, 4  ;;  %v5639_v1 = vrot.slane %v5623_v42, 9  ;;  %v3016_v7 = vrot.slane %v5559_v23, 5  ;;  %v5565_v30 = vld [vmem:[%s7312_s16 + $0xe8] sm:$0x1] }
  0x8f   : > { %6359 = vmatprep.mubr.bf16.mxu1 %v5372_v18  ;;  %v3003_v63 = vsel %vm7590_vm5, %v3001_v55, %v3002_v49  ;;  %v3015_v13 = vrot.slane %v3013_v58, 4  ;;  %v5640_v28 = vrot.slane %v5624_v50, 9  ;;  %v5374_v32 = vcombine.low %v7148_v8, %v7840_v15  ;;  %v5625_v34 = vld [vmem:[%s7312_s16 + $0xe0] sm:$0xe]  ;;  %v5567_v33 = vld [vmem:[%s7312_s16 + $0xf4] sm:$0xf] }
  0x90   : > { %v5669_v10 = vcombine.low %v3000_v51, %v3003_v63  ;;  %v3010_v60 = vsel %vm7590_vm5, %v3008_v57, %v3009_v45  ;;  %v3020_v18 = vrot.slane %v5561_v14, 5  ;;  %v3023_v26 = vrot.slane %v5562_v22, 5  ;;  %v5568_v20 = vld [vmem:[%s7312_s16 + $0xf8] sm:$0x1]  ;;  %v5626_v23 = vld [vmem:[%s7312_s16 + $0xf0] sm:$0xe] }
  0x91   : > { %v5670_v36 = vcombine.low %v3007_v56, %v3010_v60  ;;  %v3027_v38 = vrot.slane %v5564_v59, 5  ;;  %v3014_v39 = vsel %vm7590_vm5, %v5639_v1, %v3013_v58  ;;  %v3017_v0 = vsel %vm7590_vm5, %v3015_v13, %v3016_v7  ;;  %v7070_v50 = vld [vmem:[%s9121_s1 + $0x90] sm:$0xff]   ;;  %v5570_v53 = vld [vmem:[%s7312_s16 + $0x104] sm:$0xf]  ;;  %v7152_v57 = vld [vmem:[%s7312_s16 + $0x40] sm:$0xf] }
  0x92   : > { %v3022_v46 = vrot.slane %v3020_v18, 4  ;;  %v3021_v42 = vsel %vm7590_vm5, %v5640_v28, %v3020_v18  ;;  %v3034_v49 = vrot.slane %v5567_v33, 5  ;;  %v5641_v52 = vrot.slane %v5625_v34, 9  ;;  %v7150_v22 = vld [vmem:[%s7312_s16 + $0x30] sm:$0xf]  ;;  %v7074_v1 = vld [vmem:[%s9121_s1 + $0x98] sm:$0xff]  }
  0x93   : > { %v5671_v45 = vcombine.low %v3014_v39, %v3017_v0  ;;  %v3029_v14 = vrot.slane %v3027_v38, 4  ;;  %v7863_v51 = vld [vmem:[%s7312_s16 + $0x34] sm:$0xf]  ;;  %v7868_v58 = vld [vmem:[%s7312_s16 + $0x44] sm:$0xf]  ;;  %v5642_v24 = vrot.slane %v5626_v23, 9 }
  0x94   : > { %v3024_v43 = vsel %vm7590_vm5, %v3022_v46, %v3023_v26  ;;  %v5375_v55 = vcombine.low %v7150_v22, %v7863_v51  ;;  %v5376_v59 = vcombine.low %v7152_v57, %v7868_v58  ;;  %v3037_v63 = vrot.slane %v5568_v20, 5  ;;  %v5627_v7 = vld [vmem:[%s7312_s16 + $0x100] sm:$0xe]  ;;  %v5571_v8 = vld [vmem:[%s7312_s16 + $0x108] sm:$0x1] }
  0x95   : > { %6568 = vmatmul.mubr.bf16.gmra.mrb[16].mxu0 %v5669_v10  ;;  %v5672_v56 = vcombine.low %v3021_v42, %v3024_v43  ;;  %v3041_v10 = vrot.slane %v5570_v53, 5  ;;  %v3028_v60 = vsel %vm7590_vm5, %v5641_v52, %v3027_v38  ;;  %v3035_v13 = vsel %vm7590_vm5, %v5642_v24, %v3034_v49  ;;  %v7154_v26 = vld [vmem:[%s7312_s16 + $0x50] sm:$0xf]  ;;  %v7156_v39 = vld [vmem:[%s7312_s16 + $0x60] sm:$0xf]  ;;  %v7085_v23 = vld [vmem:[%s9121_s1 + $0xa8] sm:$0xff]  }
  0x96   : > { %6360 = vmatmul.mubr.bf16.vlgmr.msra.gmra.mrb[0].mxu1 %v5373_v6  ;;  %6571 = vmatprep.mubr.bf16.mxu0 %v5670_v36  ;;  %v3036_v6 = vrot.slane %v3034_v49, 4  ;;  %v5643_v18 = vrot.slane %v5627_v7, 9  ;;  %v3044_v38 = vrot.slane %v5571_v8, 5  ;;  %v7894_v0 = vld [vmem:[%s7312_s16 + $0x64] sm:$0xf]  ;;  %v7091_v49 = vld [vmem:[%s9121_s1 + $0xb0] sm:$0xff]  }
  0x97   : > { %6392 = vmatpush3.bf16.msra.mxu1 %v7514_v4  ;;  %6363 = vmatprep.mubr.bf16.mxu1 %v5374_v32  ;;  %v3030_v4 = vrot.slane %v5565_v30, 5  ;;  %v7079_v32 = vld [vmem:[%s9121_s1 + $0xa0] sm:$0xff]   ;;  %v7889_v30 = vld [vmem:[%s7312_s16 + $0x54] sm:$0xf]  ;;  %v3043_v46 = vrot.slane %v3041_v10, 4  ;;  %v5378_v20 = vcombine.low %v7156_v39, %v7894_v0  ;;  %v2394_v52 = vshrl.u32 %v7789_v11, 16 }
  0x98   : > { %6393 = vmatprep.subr.bf16.mxu1 %v7066_v19  ;;  %v3038_v28 = vsel %vm7590_vm5, %v3036_v6, %v3037_v63  ;;  %v5377_v34 = vcombine.low %v7154_v26, %v7889_v30  ;;  %v3042_v42 = vsel %vm7590_vm5, %v5643_v18, %v3041_v10  ;;  %v7077_v22 = vld [vmem:[%s7312_s16 + $0x20] sm:$0xff]   ;;  %v7080_v6 = vld [vmem:[%s7312_s16 + $0x30] sm:$0xff]   ;;  %v1304_v7 = vrot.slane %v7828_v61, 5 }
  0x99   : > { %v5674_v33 = vcombine.low %v3035_v13, %v3038_v28  ;;  %v3045_v43 = vsel %vm7590_vm5, %v3043_v46, %v3044_v38  ;;  %v7922_v57 = vrot.slane %v2394_v52, 4  ;;  %v1244_v63 = vld [vmem:[%s7312_s16] sm:$0xe]  ;;  %v1245_v10 = vld [vmem:[%s7312_s16 + $0x10] sm:$0xe]  ;;  %v1311_v13 = vrot.slane %v7840_v15, 5 }
  0x9a   : > { %v5675_v53 = vcombine.low %v3042_v42, %v3045_v43  ;;  %v2400_v8 = vshll.u32 %v7792_v17, 16  ;;  %v1247_v61 = vld [vmem:[%s7312_s16 + $0x30] sm:$0xe]  ;;  %v7083_v18 = vld [vmem:[%s7312_s16 + $0x40] sm:$0xff]   ;;  %v5383_v15 = vcombine.low %v7642_v16, %v7650_v40  ;;  %v5384_v26 = vcombine.low %v7671_v2, %v7674_v3  ;;  %v7162_v38 = vld [vmem:[%s7312_s16 + $0x28] sm:$0x1] }
  0x9b   : > { %6394 = vmatpush3.bf16.msra.mxu1 %v7066_v19  ;;  %v3031_v19 = vsel %vm7590_vm5, %v3029_v14, %v3030_v4  ;;  %v7911_v14 = vld [vmem:[%s7312_s16 + $0x74] sm:$0xf]  ;;  %v5396_v17 = vrot.slane %v1244_v63, 9  ;;  %v1313_v46 = vrot.slane %v1311_v13, 4  ;;  %v1314_v39 = vrot.slane %v7162_v38, 5  ;;  %v7095_v3 = vld [vmem:[%s7312_s16 + $0x80] sm:$0xff]  }
  0x9c   : > { %6395 = vmatprep.subr.bf16.mxu1 %v7070_v50  ;;  %v5673_v36 = vcombine.low %v3028_v60, %v3031_v19  ;;  %v7937_v60 = vld [vmem:[%s9121_s1 + $0xc0] sm:$0xff]   ;;  %v7163_v43 = vld [vmem:[%s7312_s16 + $0x38] sm:$0x1]  ;;  %v7166_v38 = vld [vmem:[%s7312_s16 + $0x68] sm:$0x1]  ;;  %v1346_v16 = vrot.slane %v7911_v14, 5 }
  0x9d   : > { %6572 = vmatmul.mubr.bf16.gmra.mrb[20].mxu0 %v5671_v45  ;;  %v7158_v45 = vld [vmem:[%s7312_s16 + $0x70] sm:$0xf]  ;;  %v1246_v19 = vld [vmem:[%s7312_s16 + $0x20] sm:$0xe]  ;;  %v8060_v40 = vld [vmem:[%s7312_s16 + $0x84] sm:$0xf] }
  0x9e   : > { %6364 = vmatmul.mubr.bf16.gmra.mrb[4].mxu1 %v5375_v55  ;;  %6575 = vmatprep.mubr.bf16.mxu0 %v5672_v56  ;;  %v5379_v4 = vcombine.low %v7158_v45, %v7911_v14  ;;  %v5380_v55 = vcombine.low %v7568_v25, %v7571_v35  ;;  %v7097_v56 = vld [vmem:[%s9121_s1 + $0xb8] sm:$0xff]   ;;  %v7092_v2 = vld [vmem:[%s7312_s16 + $0x70] sm:$0xff]  }
  0x9f   : > { %6367 = vmatprep.mubr.bf16.mxu1 %v5376_v59  ;;  %6396 = vmatpush3.bf16.msra.mxu1 %v7070_v50  ;;  %v2390_v50 = vshll.u32 %v7789_v11, 16  ;;  %v7925_v59 = vld [vmem:[%s7312_s16 + $0x8] sm:$0x1]  ;;  %v7161_v25 = vld [vmem:[%s7312_s16 + $0x18] sm:$0x1] }
  0xa0   : > { %6397 = vmatprep.subr.bf16.mxu1 %v7074_v1  ;;  %v1300_v24 = vrot.slane %v7925_v59, 5  ;;  %v1307_v35 = vrot.slane %v7161_v25, 5 }
  0xa1   : > { %v7920_v11 = vrot.slane %v2390_v50, 5 }
  0xa3   : > { %6398 = vmatpush3.bf16.msra.mxu1 %v7074_v1  ;;  %v1297_v1 = vrot.slane %v7804_v62, 5  ;;  %v5381_v62 = vcombine.low %v7586_v5, %v7598_v21  ;;  %v5397_v21 = vrot.slane %v1245_v10, 9  ;;  %v5756_v10 = vld [vmem:[%s7312_s16 + $0x20] sm:$0xf] }
  0xa4   : > { %6399 = vmatprep.subr.bf16.mxu1 %v7079_v32 }
  0xa5   : > { %6576 = vmatmul.mubr.bf16.gmra.mrb[24].mxu0 %v5673_v36  ;;  %v5382_v36 = vcombine.low %v7609_v47, %v7620_v54  ;;  %v1299_v5 = vrot.slane %v1297_v1, 4  ;;  %v7087_v47 = vld [vmem:[%s9121_s1 + $0x1c8] sm:$0xff]   ;;  %v5398_v54 = vrot.slane %v1246_v19, 9  ;;  %v7980_v59 = vsel %vm7590_vm5, %v5396_v17, %v1297_v1  ;;  %v5757_v19 = vld [vmem:[%s7312_s16 + $0x24] sm:$0xf] }
  0xa6   : > { %6368 = vmatmul.mubr.bf16.gmra.mrb[8].mxu1 %v5377_v34  ;;  %6579 = vmatprep.mubr.bf16.mxu0 %v5674_v33  ;;  %v1325_v34 = vrot.slane %v7868_v58, 5  ;;  %v1306_v33 = vrot.slane %v1304_v7, 4  ;;  %v5399_v58 = vrot.slane %v1247_v61, 9  ;;  %v1339_v1 = vrot.slane %v7894_v0, 5  ;;  %v7089_v0 = vld [vmem:[%s7312_s16 + $0x60] sm:$0xff]  }
  0xa7   : > { %6371 = vmatprep.mubr.bf16.mxu1 %v5378_v20  ;;  %6400 = vmatpush3.bf16.msra.mxu1 %v7079_v32  ;;  %v1318_v32 = vrot.slane %v7863_v51, 5  ;;  %v1248_v51 = vld [vmem:[%s7312_s16 + $0x40] sm:$0xe]  ;;  %v5385_v20 = vcombine.low %v7692_v31, %v7701_v48  ;;  %v7988_v25 = vsel %vm7590_vm5, %v1299_v5, %v1300_v24  ;;  %v7996_v63 = vsel %vm7590_vm5, %v5398_v54, %v1311_v13  ;;  %v7098_v48 = vld [vmem:[%s7312_s16 + $0x90] sm:$0xff]  }
  0xa8   : > { %6401 = vmatprep.subr.bf16.mxu1 %v7085_v23  ;;  %v5400_v50 = vrot.slane %v1248_v51, 9  ;;  %v1327_v52 = vrot.slane %v1325_v34, 4  ;;  %v1250_v13 = vld [vmem:[%s7312_s16 + $0x60] sm:$0xe]  ;;  %v3804_v5 = vshrl.u32 %v5756_v10, 16  ;;  %v3817_v51 = vshrl.u32 %v5757_v19, 16 }
  0xa9   : > { %v1320_v42 = vrot.slane %v1318_v32, 4  ;;  %v8008_v24 = vsel %vm7590_vm5, %v5399_v58, %v1318_v32  ;;  %v7165_v32 = vld [vmem:[%s7312_s16 + $0x58] sm:$0x1]  ;;  %v5402_v54 = vrot.slane %v1250_v13, 9  ;;  %v5760_v13 = vld [vmem:[%s7312_s16 + $0x34] sm:$0xf] }
  0xaa   : > { %v8018_v61 = vsel %vm7590_vm5, %v5400_v50, %v1325_v34  ;;  %v1335_v17 = vrot.slane %v7165_v32, 5  ;;  %v5758_v50 = vld [vmem:[%s7312_s16 + $0x28] sm:$0x1]  ;;  %v1252_v32 = vld [vmem:[%s7312_s16 + $0x80] sm:$0xe] }
  0xab   : > { %6402 = vmatpush3.bf16.msra.mxu1 %v7085_v23  ;;  %v5386_v23 = vcombine.low %v7726_v27, %v7729_v29 }
  0xac   : > { %6403 = vmatprep.subr.bf16.mxu1 %v7091_v49 }
  0xad   : > { %6580 = vmatmul.mubr.bf16.gmra.mrb[28].mxu0 %v5675_v53  ;;  %v7164_v53 = vld [vmem:[%s7312_s16 + $0x48] sm:$0x1] }
  0xae   : > { %6372 = vmatmul.mubr.bf16.gmra.mrb[12].mxu1 %v5379_v4  ;;  %6599 = vmatprep.mubr.bf16.mxu0 %v7077_v22  ;;  %v1328_v45 = vrot.slane %v7164_v53, 5  ;;  %v1249_v4 = vld [vmem:[%s7312_s16 + $0x50] sm:$0xe]  ;;  %v1332_v22 = vrot.slane %v7889_v30, 5  ;;  %v7984_v30 = vsel %vm7590_vm5, %v5397_v21, %v1304_v7  ;;  %v3807_v21 = vshll.u32 %v5756_v10, 16  ;;  %v7103_v53 = vld [vmem:[%s9121_s1 + $0x1e0] sm:$0xff]  }
  0xaf   : > { %6375 = vmatprep.mubr.bf16.mxu1 %v5380_v55  ;;  %6404 = vmatpush3.bf16.msra.mxu1 %v7091_v49  ;;  %v1321_v49 = vrot.slane %v7163_v43, 5  ;;  %v7971_v55 = vrot.slane %v2400_v8, 5  ;;  %v7086_v7 = vld [vmem:[%s7312_s16 + $0x50] sm:$0xff]   ;;  %v8004_v8 = vsel %vm7590_vm5, %v1313_v46, %v1314_v39  ;;  %v1341_v46 = vrot.slane %v1339_v1, 4  ;;  %v5762_v43 = vld [vmem:[%s7312_s16 + $0x40] sm:$0xf] }
  0xb0   : > { %6405 = vmatprep.subr.bf16.mxu1 %v7097_v56  ;;  %v1342_v39 = vrot.slane %v7166_v38, 5  ;;  %v3806_v10 = vrot.slane %v3804_v5, 4 }
  0xb1   : > { %9142 = vst [vmem:[#allocation2_spill] sm:$0xff] %v7971_v55 }
  0xb3   : > { %6406 = vmatpush3.bf16.msra.mxu1 %v7097_v56  ;;  %v7093_v56 = vld [vmem:[%s9121_s1 + $0x1d0] sm:$0xff]  }
  0xb4   : > { %6439 = vmatprep.subr.bf16.mxu1 %v7937_v60 }
  0xb5   : > { %6600 = vmatmul.mubr.bf16.vlgmr.msra.gmra.mrb[0].mxu0 %v7080_v6  ;;  %v7992_v6 = vsel %vm7590_vm5, %v1306_v33, %v1307_v35  ;;  %v8012_v35 = vsel %vm7590_vm5, %v1320_v42, %v1321_v49  ;;  %v3813_v33 = vshll.u32 %v5757_v19, 16  ;;  %v3809_v19 = vrot.slane %v3807_v21, 5  ;;  %v1253_v21 = vld [vmem:[%s7312_s16 + $0x90] sm:$0xe] }
  0xb6   : > { %6376 = vmatmul.mubr.bf16.gmra.mrb[16].mxu1 %v5381_v62  ;;  %6632 = vmatpush3.bf16.msra.mxu0 %v7776_v44  ;;  %v5401_v62 = vrot.slane %v1249_v4, 9  ;;  %v5405_v58 = vrot.slane %v1253_v21, 9 }
  0xb7   : > { %6379 = vmatprep.mubr.bf16.mxu1 %v5382_v36  ;;  %6603 = vmatprep.mubr.bf16.mxu0 %v7083_v18  ;;  %v8022_v36 = vsel %vm7590_vm5, %v1327_v52, %v1328_v45  ;;  %v1334_v18 = vrot.slane %v1332_v22, 4  ;;  %v5759_v52 = vld [vmem:[%s7312_s16 + $0x30] sm:$0xf]  ;;  %v3841_v45 = vshrl.u32 %v5760_v13, 16 }
  0xb8   : > { %6633 = vmatprep.subr.bf16.mxu0 %v7087_v47  ;;  %v8039_v49 = vsel %vm7590_vm5, %v5401_v62, %v1332_v22  ;;  %v8056_v22 = vld [vmem:[%s7312_s16 + $0x70] sm:$0xe]  ;;  %v3819_v62 = vrot.slane %v3817_v51, 4  ;;  %v3828_v38 = vshrl.u32 %v5759_v52, 16  ;;  %v3831_v28 = vshll.u32 %v5759_v52, 16 }
  0xb9   : > { %v8053_v4 = vsel %vm7590_vm5, %v1334_v18, %v1335_v17  ;;  %v3823_v17 = vshll.u32 %v5758_v50, 16  ;;  %v5403_v5 = vrot.slane %v8056_v22, 9  ;;  %v7107_v50 = vld [vmem:[%s9121_s1 + $0x1e8] sm:$0xff]   ;;  %v1348_v52 = vrot.slane %v1346_v16, 4 }
  0xba   : > { %6634 = vmatpush3.bf16.msra.mxu0 %v7087_v47  ;;  %v7099_v47 = vld [vmem:[%s9121_s1 + $0x1d8] sm:$0xff]   ;;  %v3810_v22 = vor.u32 %v3809_v19, %v3806_v10  ;;  %v3830_v34 = vrot.slane %v3828_v38, 4  ;;  %v3833_v44 = vrot.slane %v3831_v28, 5  ;;  %v3843_v28 = vrot.slane %v3841_v45, 4 }
  0xbb   : > { %6635 = vmatprep.subr.bf16.mxu0 %v7093_v56  ;;  %v8094_v42 = vrot.slane %v3823_v17, 5  ;;  %v7171_v10 = vld [vmem:[%s7312_s16 + $0x98] sm:$0x1]  ;;  %v3852_v38 = vshrl.u32 %v5762_v43, 16  ;;  %v8119_v27 = vsel %vm7590_vm5, %v5403_v5, %v1346_v16 }
  0xbc   : > { %v1363_v19 = vrot.slane %v7171_v10, 5  ;;  %v3811_v21 = vrot.slane %v3810_v22, 4 }
  0xbd   : > { %6604 = vmatmul.mubr.bf16.gmra.mrb[4].mxu0 %v7086_v7  ;;  %v8066_v7 = vrot.slane %v3813_v33, 5  ;;  %v7169_v33 = vld [vmem:[%s7312_s16 + $0x94] sm:$0xf] }
  0xbe   : > { %6380 = vmatmul.mubr.bf16.gmra.mrb[20].mxu1 %v5383_v15  ;;  %6607 = vmatprep.mubr.bf16.mxu0 %v7089_v0  ;;  %v1353_v15 = vrot.slane %v8060_v40, 5  ;;  %v7168_v0 = vld [vmem:[%s7312_s16 + $0x78] sm:$0x1]  ;;  %v1360_v51 = vrot.slane %v7169_v33, 5 }
  0xbf   : > { %6383 = vmatprep.mubr.bf16.mxu1 %v5384_v26  ;;  %6636 = vmatpush3.bf16.msra.mxu0 %v7093_v56  ;;  %v1349_v18 = vrot.slane %v7168_v0, 5  ;;  %v8075_v26 = vsel %vm7590_vm5, %v5402_v54, %v1339_v1  ;;  %v8079_v56 = vsel %vm7590_vm5, %v1341_v46, %v1342_v39  ;;  %v7170_v1 = vld [vmem:[%s7312_s16 + $0x88] sm:$0x1]  ;;  %v3837_v0 = vshll.u32 %v5760_v13, 16  ;;  %v7115_v40 = vld [vmem:[%s9121_s1 + $0x1f8] sm:$0xff]  }
  0xc0   : > { %6637 = vmatprep.subr.bf16.mxu0 %v7099_v47  ;;  %v1356_v54 = vrot.slane %v7170_v1, 5  ;;  %v5404_v46 = vrot.slane %v1252_v32, 9  ;;  %v1355_v39 = vrot.slane %v1353_v15, 4  ;;  %v3820_v33 = vor.u32 %v3819_v62, %v8066_v7  ;;  %v5763_v1 = vld [vmem:[%s7312_s16 + $0x44] sm:$0xf] }
  0xc1   : > { %v1362_v32 = vrot.slane %v1360_v51, 4  ;;  %v5761_v62 = vld [vmem:[%s7312_s16 + $0x38] sm:$0x1]  ;;  %v8106_v17 = vrot.slane %v3837_v0, 5  ;;  %v3861_v13 = vshll.u32 %v5763_v1, 16  ;;  %v3865_v31 = vshrl.u32 %v5763_v1, 16 }
  0xc2   : > { %v3821_v10 = vrot.slane %v3820_v33, 4  ;;  %v8123_v29 = vsel %vm7590_vm5, %v1348_v52, %v1349_v18  ;;  %v8130_v45 = vsel %vm7590_vm5, %v5404_v46, %v1353_v15  ;;  %v8134_v14 = vsel %vm7590_vm5, %v1355_v39, %v1356_v54  ;;  %v1254_v18 = vld [vmem:[%s7312_s16 + $0xa0] sm:$0xe] }
  0xc3   : > { %6638 = vmatpush3.bf16.msra.mxu0 %v7099_v47  ;;  %v8138_v16 = vsel %vm7590_vm5, %v5405_v58, %v1360_v51  ;;  %v8148_v15 = vsel %vm7590_vm5, %v1362_v32, %v1363_v19  ;;  %v3844_v5 = vor.u32 %v3843_v28, %v8106_v17  ;;  %v3854_v52 = vrot.slane %v3852_v38, 4  ;;  %v5765_v58 = vld [vmem:[%s7312_s16 + $0x50] sm:$0xf]  ;;  %v5766_v51 = vld [vmem:[%s7312_s16 + $0x54] sm:$0xf] }
  0xc4   : > { %6639 = vmatprep.subr.bf16.mxu0 %v7103_v53  ;;  %v3816_v0 = vsel %vm7344_vm2, %v3811_v21, %v8066_v7  ;;  %v3826_v46 = vsel %vm7344_vm2, %v3821_v10, %v8094_v42  ;;  %v8159_v39 = vrot.slane %v3861_v13, 5  ;;  %v3867_v22 = vrot.slane %v3865_v31, 4  ;;  %v7173_v19 = vld [vmem:[%s7312_s16 + $0xa8] sm:$0x1]  ;;  %v8175_v21 = vld [vmem:[%s9121_s1 + $0x200] sm:$0xff]  }
  0xc5   : > { %6608 = vmatmul.mubr.bf16.gmra.mrb[8].mxu0 %v7092_v2  ;;  %v3855_v2 = vshll.u32 %v5762_v43, 16  ;;  %v3847_v43 = vshll.u32 %v5761_v62, 16  ;;  %v5406_v32 = vrot.slane %v1254_v18, 9  ;;  %v1255_v62 = vld [vmem:[%s7312_s16 + $0xb0] sm:$0xe]  ;;  %v3876_v28 = vshrl.u32 %v5765_v58, 16 }
  0xc6   : > { %6384 = vmatmul.mubr.bf16.gmra.mrb[24].mxu1 %v5385_v20  ;;  %6611 = vmatprep.mubr.bf16.mxu0 %v7095_v3  ;;  %v7111_v20 = vld [vmem:[%s9121_s1 + $0x1f0] sm:$0xff]   ;;  %v7172_v3 = vld [vmem:[%s7312_s16 + $0xa4] sm:$0xf]  ;;  %v3879_v7 = vshll.u32 %v5765_v58, 16  ;;  %v3885_v38 = vshll.u32 %v5766_v51, 16  ;;  %v9143_v42 = vcombine.low %v7749_v41, %v7754_v12  ;;  %v8170_v13 = vrot.slane %v3844_v5, 4 }
  0xc7   : > { %6387 = vmatprep.mubr.bf16.mxu1 %v5386_v23  ;;  %6640 = vmatpush3.bf16.msra.mxu0 %v7103_v53  ;;  %v3834_v23 = vor.u32 %v3833_v44, %v3830_v34  ;;  %v7100_v53 = vld [vmem:[%s7312_s16 + $0xa0] sm:$0xff]   ;;  %v1367_v44 = vrot.slane %v7172_v3, 5  ;;  %v5764_v34 = vld [vmem:[%s7312_s16 + $0x48] sm:$0x1]  ;;  %v3857_v54 = vrot.slane %v3855_v2, 5  ;;  %v8163_v1 = vrot.slane %v3847_v43, 5 }
  0xc8   : > { %6641 = vmatprep.subr.bf16.mxu0 %v7107_v50  ;;  %v3889_v2 = vshrl.u32 %v5766_v51, 16  ;;  %v7102_v43 = vld [vmem:[%s7312_s16 + $0xb0] sm:$0xff]   ;;  %v3868_v12 = vor.u32 %v3867_v22, %v8159_v39  ;;  %v5767_v5 = vld [vmem:[%s7312_s16 + $0x58] sm:$0x1]  ;;  %v3881_v58 = vrot.slane %v3879_v7, 5  ;;  %v8197_v51 = vrot.slane %v3885_v38, 5 }
  0xc9   : > { %v8161_v33 = vrot.slane %v3834_v23, 4  ;;  %v1369_v10 = vrot.slane %v1367_v44, 4  ;;  %v3858_v31 = vor.u32 %v3857_v54, %v3854_v52  ;;  %v9144_v23 = vcombine.low %v7980_v59, %v7988_v25  ;;  %v7174_v18 = vld [vmem:[%s7312_s16 + $0xb4] sm:$0xf]  ;;  %v5768_v52 = vld [vmem:[%s7312_s16 + $0x60] sm:$0xf] }
  0xca   : > { %v1374_v3 = vrot.slane %v7174_v18, 5  ;;  %v8188_v59 = vcombine.low %v3816_v0, %v3826_v46  ;;  %v3878_v54 = vrot.slane %v3876_v28, 4  ;;  %v3891_v22 = vrot.slane %v3889_v2, 4  ;;  %v7180_v41 = vld [vmem:[%s7312_s16 + $0xe4] sm:$0xf] }
  0xcb   : > { %6642 = vmatpush3.bf16.msra.mxu0 %v7107_v50  ;;  %v1370_v50 = vrot.slane %v7173_v19, 5  ;;  %v7104_v19 = vld [vmem:[%s7312_s16 + $0xc0] sm:$0xff]   ;;  %v3840_v0 = vsel %vm7344_vm2, %v8161_v33, %v8106_v17  ;;  %v3859_v46 = vrot.slane %v3858_v31, 4  ;;  %v3850_v28 = vsel %vm7344_vm2, %v8170_v13, %v8163_v1  ;;  %v5771_v17 = vld [vmem:[%s7312_s16 + $0x70] sm:$0xf]  ;;  %v7105_v31 = vld [vmem:[%s9121_s1 + $0xc8] sm:$0xff]  }
  0xcc   : > { %6643 = vmatprep.subr.bf16.mxu0 %v7111_v20  ;;  %v3869_v38 = vrot.slane %v3868_v12, 4  ;;  %v1376_v2 = vrot.slane %v1374_v3, 4  ;;  %v8219_v33 = vld [vmem:[%s7312_s16 + $0x74] sm:$0xf]  ;;  %v3895_v1 = vshll.u32 %v5767_v5, 16  ;;  %v3900_v13 = vshrl.u32 %v5768_v52, 16 }
  0xcd   : > { %6612 = vmatmul.mubr.bf16.gmra.mrb[12].mxu0 %v7098_v48  ;;  %v3871_v48 = vshll.u32 %v5764_v34, 16  ;;  %v8215_v7 = vsel %vm7590_vm5, %v1369_v10, %v1370_v50  ;;  %v3903_v50 = vshll.u32 %v5768_v52, 16  ;;  %v3882_v10 = vor.u32 %v3881_v58, %v3878_v54  ;;  %v7106_v54 = vld [vmem:[%s7312_s16 + $0xd0] sm:$0xff]   ;;  %v8318_v47 = vld [vmem:[%s7312_s16 + $0x88] sm:$0x1] }
  0xce   : > { %6388 = vmatmul.mubr.bf16.gmra.mrb[28].mxu1 %v9143_v42  ;;  %6615 = vmatprep.mubr.bf16.mxu0 %v7100_v53  ;;  %v5407_v53 = vrot.slane %v1255_v62, 9  ;;  %v7175_v42 = vld [vmem:[%s7312_s16 + $0xb8] sm:$0x1]  ;;  %v3933_v5 = vshll.u32 %v8219_v33, 16  ;;  %v9146_v52 = vcombine.low %v7996_v63, %v8004_v8  ;;  %v8255_v63 = vld [vmem:[%s7312_s16 + $0x68] sm:$0x1] }
  0xcf   : > { %6407 = vmatprep.mubr.bf16.mxu1 %v9144_v23  ;;  %6644 = vmatpush3.bf16.msra.mxu0 %v7111_v20  ;;  %v8194_v20 = vsel %vm7590_vm5, %v5406_v32, %v1367_v44  ;;  %v3873_v62 = vrot.slane %v3871_v48, 5  ;;  %v1377_v23 = vrot.slane %v7175_v42, 5  ;;  %v1256_v44 = vld [vmem:[%s7312_s16 + $0xc0] sm:$0xe]  ;;  %v8207_v32 = vld [vmem:[%s7312_s16 + $0x64] sm:$0xf]  ;;  %v3892_v48 = vor.u32 %v3891_v22, %v8197_v51 }
  0xd0   : > { %6645 = vmatprep.subr.bf16.mxu0 %v7115_v40  ;;  %v3909_v12 = vshll.u32 %v8207_v32, 16  ;;  %v3913_v18 = vshrl.u32 %v8207_v32, 16  ;;  %v9145_v42 = vcombine.low %v7984_v30, %v7992_v6  ;;  %v7109_v30 = vld [vmem:[%s9121_s1 + $0xd0] sm:$0xff]   ;;  %v3864_v6 = vsel %vm7344_vm2, %v3859_v46, %v8159_v39  ;;  %v7108_v8 = vld [vmem:[%s7312_s16 + $0xe0] sm:$0xff]   ;;  %v8262_v39 = vld [vmem:[%s7312_s16 + $0x78] sm:$0x1] }
  0xd1   : > { %v3874_v58 = vsel %vm7344_vm2, %v3869_v38, %v3873_v62  ;;  %v5408_v22 = vrot.slane %v1256_v44, 9  ;;  %v3905_v25 = vrot.slane %v3903_v50, 5  ;;  %9147 = vst [vmem:[#allocation3_spill] sm:$0xff] %v8262_v39  ;;  %v3883_v46 = vrot.slane %v3882_v10, 4  ;;  %9151 = vst [vmem:[#allocation5_spill] sm:$0xff] %v8318_v47 }
  0xd2   : > { %v3893_v62 = vrot.slane %v3892_v48, 4  ;;  %v8264_v38 = vrot.slane %v3909_v12, 5  ;;  %v8266_v34 = vrot.slane %v3933_v5, 5  ;;  %v8271_v50 = vcombine.low %v3840_v0, %v3850_v28  ;;  %v5774_v28 = vld [vmem:[%s7312_s16 + $0x80] sm:$0xf] }
  0xd3   : > { %6646 = vmatpush3.bf16.msra.mxu0 %v7115_v40  ;;  %v8227_v40 = vsel %vm7590_vm5, %v5407_v53, %v1374_v3  ;;  %v3924_v53 = vshrl.u32 %v5771_v17, 16  ;;  %v3927_v3 = vshll.u32 %v5771_v17, 16  ;;  %v7176_v17 = vld [vmem:[%s7312_s16 + $0xc4] sm:$0xf]  ;;  %v8275_v48 = vcombine.low %v3864_v6, %v3874_v58 }
  0xd4   : > { %6679 = vmatprep.subr.bf16.mxu0 %v8175_v21  ;;  %v3919_v0 = vshll.u32 %v8255_v63, 16  ;;  %v3888_v6 = vsel %vm7344_vm2, %v3883_v46, %v8197_v51  ;;  %v9150_v46 = vcombine.low %v8018_v61, %v8022_v36 }
  0xd5   : > { %6616 = vmatmul.mubr.bf16.gmra.mrb[16].mxu0 %v7102_v43  ;;  %v3937_v43 = vshrl.u32 %v8219_v33, 16  ;;  %v3926_v44 = vrot.slane %v3924_v53, 4  ;;  %v7177_v53 = vld [vmem:[%s7312_s16 + $0xc8] sm:$0x1] }
  0xd6   : > { %6408 = vmatmul.mubr.bf16.vlgmr.msra.gmra.mrb[0].mxu1 %v9145_v42  ;;  %6619 = vmatprep.mubr.bf16.mxu0 %v7104_v19  ;;  %v8258_v19 = vrot.slane %v3895_v1, 5  ;;  %v1381_v42 = vrot.slane %v7176_v17, 5  ;;  %v7178_v17 = vld [vmem:[%s7312_s16 + $0xd4] sm:$0xf]  ;;  %v3921_v36 = vrot.slane %v3919_v0, 5 }
  0xd7   : > { %6440 = vmatpush3.bf16.msra.mxu1 %v7937_v60  ;;  %6411 = vmatprep.mubr.bf16.mxu1 %v9146_v52  ;;  %v8252_v60 = vsel %vm7590_vm5, %v1376_v2, %v1377_v23  ;;  %v3902_v52 = vrot.slane %v3900_v13, 4  ;;  %v3915_v23 = vrot.slane %v3913_v18, 4  ;;  %v3929_v2 = vrot.slane %v3927_v3, 5  ;;  %v7113_v13 = vld [vmem:[%s9121_s1 + $0xd8] sm:$0xff]   ;;  %v1257_v18 = vld [vmem:[%s7312_s16 + $0xd0] sm:$0xe] }
  0xd8   : > { %6441 = vmatprep.subr.bf16.mxu1 %v7105_v31  ;;  %v3939_v1 = vrot.slane %v3937_v43, 4  ;;  %v1384_v3 = vrot.slane %v7177_v53, 5  ;;  %v8288_v43 = vld [vmem:[%s7312_s16 + $0x84] sm:$0xf]  ;;  %v1388_v12 = vrot.slane %v7178_v17, 5 }
  0xd9   : > { %v3906_v5 = vor.u32 %v3905_v25, %v3902_v52  ;;  %9148 = vst [vmem:[#allocation4_spill] sm:$0xff] %v8288_v43  ;;  %v3916_v58 = vor.u32 %v3915_v23, %v8264_v38  ;;  %v9149_v25 = vcombine.low %v8008_v24, %v8012_v35  ;;  %v1383_v52 = vrot.slane %v1381_v42, 4  ;;  %v7110_v23 = vld [vmem:[%s7312_s16 + $0xf0] sm:$0xff]   ;;  %v7116_v24 = vld [vmem:[%s9121_s1 + $0xe0] sm:$0xff]  }
  0xda   : > { %v3930_v53 = vor.u32 %v3929_v2, %v3926_v44  ;;  %v3940_v51 = vor.u32 %v3939_v1, %v8266_v34  ;;  %v3948_v35 = vshrl.u32 %v5774_v28, 16  ;;  %v5409_v44 = vrot.slane %v1257_v18, 9  ;;  %v7179_v2 = vld [vmem:[%s7312_s16 + $0xd8] sm:$0x1]  ;;  %v5777_v17 = vld [vmem:[%s7312_s16 + $0x90] sm:$0xf] }
  0xdb   : > { %6442 = vmatpush3.bf16.msra.mxu1 %v7105_v31  ;;  %v8282_v31 = vsel %vm7590_vm5, %v5408_v22, %v1381_v42  ;;  %v3943_v22 = vshll.u32 %v8262_v39, 16  ;;  %v3961_v42 = vshrl.u32 %v8288_v43, 16  ;;  %v3907_v61 = vrot.slane %v3906_v5, 4  ;;  %v8457_v39 = vld [vmem:[%s7312_s16 + $0xc8] sm:$0x1] }
  0xdc   : > { %6443 = vmatprep.subr.bf16.mxu1 %v7109_v30  ;;  %v1391_v1 = vrot.slane %v7179_v2, 5  ;;  %v3931_v5 = vrot.slane %v3930_v53, 4  ;;  %v3941_v18 = vrot.slane %v3940_v51, 4  ;;  %v3950_v0 = vrot.slane %v3948_v35, 4  ;;  %9164 = vst [vmem:[#allocation14_spill] sm:$0xff] %v8457_v39 }
  0xdd   : > { %6620 = vmatmul.mubr.bf16.gmra.mrb[20].mxu0 %v7106_v54  ;;  %v3898_v54 = vsel %vm7344_vm2, %v3893_v62, %v8258_v19  ;;  %v3957_v19 = vshll.u32 %v8288_v43, 16  ;;  %v7112_v62 = vld [vmem:[%s7312_s16 + $0x100] sm:$0xff]   ;;  %v3945_v10 = vrot.slane %v3943_v22, 5  ;;  %v8324_v43 = vsel %vm7590_vm5, %v1383_v52, %v1384_v3 }
  0xde   : > { %6412 = vmatmul.mubr.bf16.gmra.mrb[4].mxu1 %v9149_v25  ;;  %6623 = vmatprep.mubr.bf16.mxu0 %v7108_v8  ;;  %v3951_v8 = vshll.u32 %v5774_v28, 16  ;;  %v3917_v25 = vrot.slane %v3916_v58, 4  ;;  %v1395_v28 = vrot.slane %v7180_v41, 5  ;;  %v8320_v55 = vcombine.low %v3888_v6, %v3898_v54  ;;  %v7118_v41 = vld [vmem:[%s9121_s1 + $0xe8] sm:$0xff]  }
  0xdf   : > { %6415 = vmatprep.mubr.bf16.mxu1 %v9150_v46  ;;  %6444 = vmatpush3.bf16.msra.mxu1 %v7109_v30  ;;  %v1258_v30 = vld [vmem:[%s7312_s16 + $0xe0] sm:$0xe]  ;;  %v1390_v46 = vrot.slane %v1388_v12, 4  ;;  %v8326_v58 = vrot.slane %v3957_v19, 5  ;;  %v3963_v22 = vrot.slane %v3961_v42, 4  ;;  %v3912_v3 = vsel %vm7344_vm2, %v3907_v61, %v8264_v38 }
  0xe0   : > { %6445 = vmatprep.subr.bf16.mxu1 %v7113_v13  ;;  %v3953_v2 = vrot.slane %v3951_v8, 5  ;;  %v8336_v6 = vsel %vm7590_vm5, %v5409_v44, %v1388_v12  ;;  %v3972_v54 = vshrl.u32 %v5777_v17, 16  ;;  %v3975_v52 = vshll.u32 %v5777_v17, 16  ;;  %v7181_v38 = vld [vmem:[%s7312_s16 + $0xe8] sm:$0x1] }
  0xe1   : > { %v3922_v53 = vsel %vm7344_vm2, %v3917_v25, %v3921_v36  ;;  %v8345_v51 = vsel %vm7590_vm5, %v1390_v46, %v1391_v1  ;;  %v5410_v35 = vrot.slane %v1258_v30, 9  ;;  %v1398_v8 = vrot.slane %v7181_v38, 5  ;;  %v1259_v19 = vld [vmem:[%s7312_s16 + $0xf0] sm:$0xe]  ;;  %v8367_v30 = vld [vmem:[%s7312_s16 + $0x98] sm:$0x1] }
  0xe2   : > { %v9153_v12 = vcombine.low %v8039_v49, %v8053_v4  ;;  %v3936_v42 = vsel %vm7344_vm2, %v3931_v5, %v8266_v34  ;;  %v3946_v61 = vsel %vm7344_vm2, %v3941_v18, %v3945_v10  ;;  %v1397_v36 = vrot.slane %v1395_v28, 4  ;;  %v7114_v4 = vld [vmem:[%s7312_s16 + $0x110] sm:$0xff]   ;;  %9155 = vst [vmem:[#allocation7_spill] sm:$0xff] %v8367_v30 }
  0xe3   : > { %6446 = vmatpush3.bf16.msra.mxu1 %v7113_v13  ;;  %v8339_v13 = vld [vmem:[%s7312_s16 + $0x94] sm:$0xf]  ;;  %v3967_v44 = vshll.u32 %v8318_v47, 16  ;;  %v9154_v49 = vcombine.low %v8075_v26, %v8079_v56  ;;  %v3964_v1 = vor.u32 %v3963_v22, %v8326_v58  ;;  %v5411_v17 = vrot.slane %v1259_v19, 9  ;;  %v8384_v22 = vld [vmem:[%s7312_s16 + $0xa4] sm:$0xf] }
  0xe4   : > { %6447 = vmatprep.subr.bf16.mxu1 %v7116_v24  ;;  %9152 = vst [vmem:[#allocation6_spill] sm:$0xff] %v8339_v13  ;;  %v3981_v34 = vshll.u32 %v8339_v13, 16  ;;  %v3985_v10 = vshrl.u32 %v8339_v13, 16  ;;  %v7182_v25 = vld [vmem:[%s7312_s16 + $0xf4] sm:$0xf]  ;;  %v3974_v26 = vrot.slane %v3972_v54, 4  ;;  %v8375_v18 = vcombine.low %v3912_v3, %v3922_v53 }
  0xe5   : > { %6624 = vmatmul.mubr.bf16.gmra.mrb[24].mxu0 %v7110_v23  ;;  %v7120_v23 = vld [vmem:[%s9121_s1 + $0xf0] sm:$0xff]   ;;  %v1402_v46 = vrot.slane %v7182_v25, 5  ;;  %v3977_v56 = vrot.slane %v3975_v52, 5  ;;  %9156 = vst [vmem:[#allocation8_spill] sm:$0xff] %v8384_v22  ;;  %v8387_v19 = vcombine.low %v3936_v42, %v3946_v61  ;;  %v8391_v54 = vsel %vm7590_vm5, %v1397_v36, %v1398_v8  ;;  %v7183_v3 = vld [vmem:[%s7312_s16 + $0xf8] sm:$0x1] }
  0xe6   : > { %6416 = vmatmul.mubr.bf16.gmra.mrb[8].mxu1 %v9153_v12  ;;  %6627 = vmatprep.mubr.bf16.mxu0 %v7112_v62  ;;  %v3954_v62 = vor.u32 %v3953_v2, %v3950_v0  ;;  %v8381_v2 = vsel %vm7590_vm5, %v5410_v35, %v1395_v28  ;;  %v5783_v38 = vld [vmem:[%s7312_s16 + $0xb0] sm:$0xf]  ;;  %v8393_v52 = vrot.slane %v3967_v44, 5  ;;  %v1405_v53 = vrot.slane %v7183_v3, 5  ;;  %v7122_v12 = vld [vmem:[%s9121_s1 + $0xf8] sm:$0xff]  }
  0xe7   : > { %6419 = vmatprep.mubr.bf16.mxu1 %v9154_v49  ;;  %6448 = vmatpush3.bf16.msra.mxu1 %v7116_v24  ;;  %v5780_v24 = vld [vmem:[%s7312_s16 + $0xa0] sm:$0xf]  ;;  %v8400_v28 = vld [vmem:[%s7312_s16 + $0xb4] sm:$0xf]  ;;  %v8404_v42 = vrot.slane %v3964_v1, 4  ;;  %v8406_v61 = vrot.slane %v3981_v34, 5  ;;  %v8410_v36 = vsel %vm7590_vm5, %v5411_v17, %v1402_v46  ;;  %v3978_v49 = vor.u32 %v3977_v56, %v3974_v26 }
  0xe8   : > { %6449 = vmatprep.subr.bf16.mxu1 %v7118_v41  ;;  %9157 = vst [vmem:[#allocation9_spill] sm:$0xff] %v8400_v28  ;;  %v8402_v35 = vrot.slane %v3954_v62, 4  ;;  %v3987_v8 = vrot.slane %v3985_v10, 4  ;;  %v1404_v44 = vrot.slane %v1402_v46, 4  ;;  %v3991_v25 = vshll.u32 %v8367_v30, 16 }
  0xe9   : > { %v5786_v3 = vld [vmem:[%s7312_s16 + $0xc0] sm:$0xf]  ;;  %v3999_v0 = vshll.u32 %v5780_v24, 16  ;;  %v4005_v62 = vshll.u32 %v8384_v22, 16  ;;  %v4009_v1 = vshrl.u32 %v8384_v22, 16  ;;  %v9159_v10 = vcombine.low %v8119_v27, %v8123_v29 }
  0xea   : > { %v8417_v34 = vld [vmem:[%s7312_s16 + $0xc4] sm:$0xf]  ;;  %v4020_v17 = vshrl.u32 %v5783_v38, 16  ;;  %v4023_v46 = vshll.u32 %v5783_v38, 16  ;;  %v4033_v26 = vshrl.u32 %v8400_v28, 16  ;;  %v9160_v56 = vcombine.low %v8130_v45, %v8134_v14 }
  0xeb   : > { %6450 = vmatpush3.bf16.msra.mxu1 %v7118_v41  ;;  %v3996_v41 = vshrl.u32 %v5780_v24, 16  ;;  %9158 = vst [vmem:[#allocation10_spill] sm:$0xff] %v8417_v34  ;;  %v3988_v29 = vor.u32 %v3987_v8, %v8406_v61  ;;  %v4047_v24 = vshll.u32 %v5786_v3, 16  ;;  %v5789_v38 = vld [vmem:[%s7312_s16 + $0xd0] sm:$0xf]  ;;  %v8436_v5 = vrot.slane %v3991_v25, 5 }
  0xec   : > { %6451 = vmatprep.subr.bf16.mxu1 %v7120_v23  ;;  %v8439_v45 = vld [vmem:[%s7312_s16 + $0xa8] sm:$0x1]  ;;  %v4053_v14 = vshll.u32 %v8417_v34, 16  ;;  %v4001_v27 = vrot.slane %v3999_v0, 5  ;;  %v4011_v8 = vrot.slane %v4009_v1, 4  ;;  %v4022_v25 = vrot.slane %v4020_v17, 4 }
  0xed   : > { %6628 = vmatmul.mubr.bf16.gmra.mrb[28].mxu0 %v7114_v4  ;;  %v4029_v4 = vshll.u32 %v8400_v28, 16  ;;  %9161 = vst [vmem:[#allocation11_spill] sm:$0xff] %v8439_v45  ;;  %v8443_v28 = vrot.slane %v4005_v62, 5  ;;  %v8449_v22 = vld [vmem:[%s7312_s16 + $0xd4] sm:$0xf]  ;;  %v4025_v30 = vrot.slane %v4023_v46, 5  ;;  %v8466_v62 = vsel %vm7590_vm5, %v1404_v44, %v1405_v53 }
  0xee   : > { %6420 = vmatmul.mubr.bf16.gmra.mrb[12].mxu1 %v9159_v10  ;;  %6647 = vmatprep.mubr.bf16.mxu0 %v8188_v59  ;;  %v4044_v59 = vshrl.u32 %v5786_v3, 16  ;;  %v8434_v10 = vrot.slane %v3978_v49, 4  ;;  %v8446_v3 = vld [vmem:[%s7312_s16 + $0xb8] sm:$0x1]  ;;  %9163 = vst [vmem:[#allocation13_spill] sm:$0xff] %v8449_v22  ;;  %v7119_v49 = vld [vmem:[%s9121_s1 + $0x208] sm:$0xff]  }
  0xef   : > { %6423 = vmatprep.mubr.bf16.mxu1 %v9160_v56  ;;  %6452 = vmatpush3.bf16.msra.mxu1 %v7120_v23  ;;  %v4057_v23 = vshrl.u32 %v8417_v34, 16  ;;  %v3998_v56 = vrot.slane %v3996_v41, 4  ;;  %9162 = vst [vmem:[#allocation12_spill] sm:$0xff] %v8446_v3  ;;  %v8454_v13 = vrot.slane %v4029_v4, 5  ;;  %v4035_v47 = vrot.slane %v4033_v26, 4  ;;  %v8471_v17 = vld [vmem:[%s9121_s1 + $0x100] sm:$0xff]  }
  0xf0   : > { %6453 = vmatprep.subr.bf16.mxu1 %v7122_v12  ;;  %v5792_v41 = vld [vmem:[%s7312_s16 + $0xe0] sm:$0xf]  ;;  %v4046_v1 = vrot.slane %v4044_v59, 4  ;;  %v4049_v34 = vrot.slane %v4047_v24, 5  ;;  %9165 = vst [vmem:[#allocation15_spill] sm:$0xff] %v8471_v17  ;;  %v8474_v46 = vrot.slane %v4053_v14, 5  ;;  %v9166_v24 = vcombine.low %v8138_v16, %v8148_v15 }
  0xf1   : > { %v4059_v4 = vrot.slane %v4057_v23, 4  ;;  %v4068_v26 = vshrl.u32 %v5789_v38, 16  ;;  %v4071_v0 = vshll.u32 %v5789_v38, 16  ;;  %v8477_v53 = vrot.slane %v3988_v29, 4  ;;  %v8489_v29 = vld [vmem:[%s7312_s16 + $0xe4] sm:$0xf] }
  0xf2   : > { %v4077_v44 = vshll.u32 %v8449_v22, 16  ;;  %v4081_v59 = vshrl.u32 %v8449_v22, 16  ;;  %v4002_v14 = vor.u32 %v4001_v27, %v3998_v56  ;;  %v4012_v38 = vor.u32 %v4011_v8, %v8443_v28  ;;  %9167 = vst [vmem:[#allocation16_spill] sm:$0xff] %v8489_v29  ;;  %v7121_v16 = vld [vmem:[%s9121_s1 + $0x210] sm:$0xff]  }
  0xf3   : > { %6454 = vmatpush3.bf16.msra.mxu1 %v7122_v12  ;;  %v4015_v12 = vshll.u32 %v8439_v45, 16  ;;  %v4026_v23 = vor.u32 %v4025_v30, %v4022_v25  ;;  %v4036_v15 = vor.u32 %v4035_v47, %v8454_v13  ;;  %v4092_v27 = vshrl.u32 %v5792_v41, 16  ;;  %v8502_v25 = vld [vmem:[%s7312_s16 + $0xd8] sm:$0x1] }
  0xf4   : > { %6727 = vmatprep.subr.bf16.mxu1 %v8471_v17  ;;  %v9168_v17 = vcombine.low %v8194_v20, %v8215_v7  ;;  %v4095_v30 = vshll.u32 %v5792_v41, 16  ;;  %v4050_v56 = vor.u32 %v4049_v34, %v4046_v1  ;;  %v4060_v8 = vor.u32 %v4059_v4, %v8474_v46 }
  0xf5   : > { %6648 = vmatmul.mubr.bf16.vlgmr.msra.gmra.mrb[0].mxu0 %v8271_v50  ;;  %v4039_v50 = vshll.u32 %v8446_v3, 16  ;;  %v4070_v20 = vrot.slane %v4068_v26, 4  ;;  %v4073_v7 = vrot.slane %v4071_v0, 5  ;;  %v4105_v22 = vshrl.u32 %v8489_v29, 16  ;;  %v7123_v0 = vld [vmem:[%s9121_s1 + $0x218] sm:$0xff]  }
  0xf6   : > { %6424 = vmatmul.mubr.bf16.gmra.mrb[16].mxu1 %v9166_v24  ;;  %6680 = vmatpush3.bf16.msra.mxu0 %v8175_v21  ;;  %v4063_v21 = vshll.u32 %v8457_v39, 16  ;;  %v4101_v24 = vshll.u32 %v8489_v29, 16  ;;  %v4003_v47 = vrot.slane %v4002_v14, 4  ;;  %v4013_v39 = vrot.slane %v4012_v38, 4 }
  0xf7   : > { %6427 = vmatprep.mubr.bf16.mxu1 %v9168_v17  ;;  %6651 = vmatprep.mubr.bf16.mxu0 %v8275_v48  ;;  %v8504_v17 = vrot.slane %v4077_v44, 5  ;;  %v4083_v48 = vrot.slane %v4081_v59, 4  ;;  %v4017_v3 = vrot.slane %v4015_v12, 5  ;;  %v4041_v41 = vrot.slane %v4039_v50, 5 }
  0xf8   : > { %6681 = vmatprep.subr.bf16.mxu0 %v7119_v49  ;;  %v4027_v34 = vrot.slane %v4026_v23, 4  ;;  %v4037_v1 = vrot.slane %v4036_v15, 4  ;;  %v4094_v4 = vrot.slane %v4092_v27, 4  ;;  %v4097_v45 = vrot.slane %v4095_v30, 5  ;;  %v8570_v27 = vld [vmem:[%s7312_s16 + $0xf8] sm:$0x1] }
  0xf9   : > { %v4051_v26 = vrot.slane %v4050_v56, 4  ;;  %v4065_v44 = vrot.slane %v4063_v21, 5  ;;  %v4074_v59 = vor.u32 %v4073_v7, %v4070_v20  ;;  %v4087_v29 = vshll.u32 %v8502_v25, 16  ;;  %v8537_v21 = vld [vmem:[%s7312_s16 + $0xe8] sm:$0x1] }
  0xfa   : > { %6682 = vmatpush3.bf16.msra.mxu0 %v7119_v49  ;;  %v4061_v49 = vrot.slane %v4060_v8, 4  ;;  %v4084_v12 = vor.u32 %v4083_v48, %v8504_v17  ;;  %v8514_v14 = vrot.slane %v4101_v24, 5  ;;  %v4107_v38 = vrot.slane %v4105_v22, 4 }
  0xfb   : > { %6683 = vmatprep.subr.bf16.mxu0 %v7121_v16  ;;  %v9169_v23 = vor.u32 %v7922_v57, %v7920_v11  ;;  %v9170_v15 = vcombine.low %v8227_v40, %v8252_v60  ;;  %v3994_v22 = vsel %vm7344_vm2, %v8477_v53, %v8436_v5  ;;  %v4008_v57 = vsel %vm7344_vm2, %v4003_v47, %v8443_v28 }
  0xfc   : > { %v9171_v40 = vcombine.low %v8282_v31, %v8324_v43  ;;  %v4018_v60 = vsel %vm7344_vm2, %v4013_v39, %v4017_v3  ;;  %v4098_v5 = vor.u32 %v4097_v45, %v4094_v4  ;;  %v4042_v28 = vsel %vm7344_vm2, %v4037_v1, %v4041_v41  ;;  %v7126_v31 = vld [vmem:[%s9121_s1 + $0x220] sm:$0xff]  }
  0xfd   : > { %6652 = vmatmul.mubr.bf16.gmra.mrb[4].mxu0 %v8320_v55  ;;  %v8519_v50 = vrot.slane %v9169_v23, 4  ;;  %v3984_v55 = vsel %vm7344_vm2, %v8434_v10, %v8406_v61  ;;  %v5795_v61 = vld [vmem:[%s7312_s16 + $0xf0] sm:$0xf]  ;;  %v8549_v10 = vld [vmem:[%s7312_s16 + $0xf4] sm:$0xf]  ;;  %v4056_v39 = vsel %vm7344_vm2, %v4051_v26, %v8474_v46  ;;  %v8559_v43 = vrot.slane %v4074_v59, 4 }
  0xfe   : > { %6428 = vmatmul.mubr.bf16.gmra.mrb[20].mxu1 %v9170_v15  ;;  %6655 = vmatprep.mubr.bf16.mxu0 %v8375_v18  ;;  %v4032_v18 = vsel %vm7344_vm2, %v4027_v34, %v8454_v13  ;;  %v8561_v3 = vrot.slane %v4087_v29, 5  ;;  %v4066_v13 = vsel %vm7344_vm2, %v4061_v49, %v4065_v44  ;;  %v8565_v45 = vrot.slane %v4084_v12, 4  ;;  %v5848_v41 = vld [vmem:[%s7312_s16 + $0x60] sm:$0xe]  ;;  %v5849_v26 = vld [vmem:[%s7312_s16 + $0x70] sm:$0xe] }
  0xff   : > { %6431 = vmatprep.mubr.bf16.mxu1 %v9171_v40  ;;  %6684 = vmatpush3.bf16.msra.mxu0 %v7121_v16  ;;  %v4108_v53 = vor.u32 %v4107_v38, %v8514_v14  ;;  %v4111_v16 = vshll.u32 %v8537_v21, 16  ;;  %v9172_v46 = vsel %vm7344_vm2, %v8404_v42, %v8393_v52  ;;  %v9173_v29 = vsel %vm7344_vm2, %v8402_v35, %v8326_v58 }
 0x100   : > { %6685 = vmatprep.subr.bf16.mxu0 %v7123_v0  ;;  %v5826_v30 = vcombine.low %v9173_v29, %v9172_v46  ;;  %v4116_v56 = vshrl.u32 %v5795_v61, 16  ;;  %v4119_v8 = vshll.u32 %v5795_v61, 16  ;;  %v4125_v20 = vshll.u32 %v8549_v10, 16  ;;  %v9177_v29 = vld [vmem:[#allocation5_spill] sm:$0xff] }
 0x101   : > { %v5442_v7 = vcombine.low %v8381_v2, %v8391_v54  ;;  %v5443_v48 = vcombine.low %v8410_v36, %v8466_v62  ;;  %v5827_v24 = vcombine.low %v3984_v55, %v3994_v22  ;;  %v8587_v52 = vrot.slane %v4098_v5, 4  ;;  %v7129_v2 = vld [vmem:[%s9121_s1 + $0x228] sm:$0xff]   ;;  %v5798_v54 = vld [vmem:[%s7312_s16 + $0x100] sm:$0xf] }
 0x102   : > { %v5828_v42 = vcombine.low %v4008_v57, %v4018_v60  ;;  %v8589_v58 = vcombine.low %v4032_v18, %v4042_v28  ;;  %v8591_v35 = vcombine.low %v4056_v39, %v4066_v13  ;;  %v4080_v47 = vsel %vm7344_vm2, %v8559_v43, %v8504_v17  ;;  %v5851_v28 = vld [vmem:[%s7312_s16 + $0x90] sm:$0xe]  ;;  %v9175_v39 = vld [vmem:[#allocation3_spill] sm:$0xff] }
 0x103   : > { %6686 = vmatpush3.bf16.msra.mxu0 %v7123_v0  ;;  %v4090_v34 = vsel %vm7344_vm2, %v8565_v45, %v8561_v3  ;;  %v8607_v1 = vrot.slane %v4108_v53, 4  ;;  %v8609_v4 = vrot.slane %v4111_v16, 5  ;;  %v4129_v0 = vshrl.u32 %v8549_v10, 16  ;;  %v7124_v13 = vld [vmem:[%s7312_s16 + $0x10] sm:$0xff]  }
 0x104   : > { %6687 = vmatprep.subr.bf16.mxu0 %v7126_v31  ;;  %v9174_v44 = vcombine.low %v8336_v6, %v8345_v51  ;;  %v8616_v59 = vrot.slane %v4116_v56, 4  ;;  %v8620_v49 = vrot.slane %v4125_v20, 5  ;;  %v4135_v12 = vshll.u32 %v8570_v27, 16  ;;  %v7132_v6 = vld [vmem:[%s9121_s1 + $0x230] sm:$0xff]   ;;  %v8631_v51 = vld [vmem:[%s7312_s16 + $0x104] sm:$0xf] }
 0x105   : > { %6656 = vmatmul.mubr.bf16.gmra.mrb[8].mxu0 %v8387_v19  ;;  %v8618_v19 = vrot.slane %v4119_v8, 5  ;;  %v4104_v38 = vsel %vm7344_vm2, %v8587_v52, %v8514_v14  ;;  %v4140_v23 = vshrl.u32 %v5798_v54, 16  ;;  %v5864_v15 = vrot.slane %v5848_v41, 9  ;;  %v5850_v14 = vld [vmem:[%s7312_s16 + $0x80] sm:$0xe]  ;;  %v9176_v16 = vld [vmem:[#allocation4_spill] sm:$0xff] }
 0x106   : > { %6432 = vmatmul.mubr.bf16.gmra.mrb[24].mxu1 %v9174_v44  ;;  %6659 = vmatprep.mubr.bf16.mxu0 %v5826_v30  ;;  %v4603_v55 = vrot.slane %v8207_v32, 5  ;;  %v4143_v22 = vshll.u32 %v5798_v54, 16  ;;  %v4606_v57 = vrot.slane %v8255_v63, 5  ;;  %v5865_v40 = vrot.slane %v5849_v26, 9  ;;  %v7135_v56 = vld [vmem:[%s9121_s1 + $0x238] sm:$0xff]   ;;  %v9178_v52 = vld [vmem:[#allocation6_spill] sm:$0xff] }
 0x107   : > { %6435 = vmatprep.mubr.bf16.mxu1 %v5442_v7  ;;  %6688 = vmatpush3.bf16.msra.mxu0 %v7126_v31  ;;  %v4610_v60 = vrot.slane %v8219_v33, 5  ;;  %v4114_v18 = vsel %vm7344_vm2, %v8607_v1, %v8609_v4  ;;  %v8641_v5 = vrot.slane %v4129_v0, 4  ;;  %v4149_v31 = vshll.u32 %v8631_v51, 16  ;;  %v9179_v4 = vld [vmem:[#allocation7_spill] sm:$0xff] }
 0x108   : > { %6689 = vmatprep.subr.bf16.mxu0 %v7129_v2  ;;  %v8645_v61 = vsel %vm7590_vm5, %v5864_v15, %v4603_v55  ;;  %v4605_v32 = vrot.slane %v4603_v55, 4  ;;  %v4613_v3 = vrot.slane %v9175_v39, 5  ;;  %v5866_v53 = vrot.slane %v5850_v14, 9  ;;  %v8682_v26 = vld [vmem:[%s7312_s16 + $0x108] sm:$0x1]  ;;  %v7127_v39 = vld [vmem:[%s7312_s16 + $0x30] sm:$0xff]  }
 0x109   : > { %v8651_v63 = vsel %vm7590_vm5, %v5865_v40, %v4610_v60  ;;  %v4612_v33 = vrot.slane %v4610_v60, 4  ;;  %v4617_v46 = vrot.slane %v9176_v16, 5  ;;  %v4620_v30 = vrot.slane %v9177_v29, 5  ;;  %v7125_v40 = vld [vmem:[%s7312_s16 + $0x20] sm:$0xff]  }
 0x10a   : > { %v8657_v45 = vsel %vm7590_vm5, %v4605_v32, %v4606_v57  ;;  %v5867_v7 = vrot.slane %v5851_v28, 9  ;;  %v4627_v0 = vrot.slane %v9179_v4, 5  ;;  %v8684_v44 = vrot.slane %v4140_v23, 4  ;;  %v5852_v23 = vld [vmem:[%s7312_s16 + $0xa0] sm:$0xe]  ;;  %v9181_v28 = vld [vmem:[#allocation11_spill] sm:$0xff] }
 0x10b   : > { %6690 = vmatpush3.bf16.msra.mxu0 %v7129_v2  ;;  %v5896_v8 = vcombine.low %v8645_v61, %v8657_v45  ;;  %v8668_v20 = vsel %vm7590_vm5, %v4612_v33, %v4613_v3  ;;  %v4624_v2 = vrot.slane %v9178_v52, 5  ;;  %v8675_v41 = vsel %vm7590_vm5, %v5866_v53, %v4617_v46  ;;  %v9182_v53 = vld [vmem:[#allocation2_spill] sm:$0xff] }
 0x10c   : > { %6691 = vmatprep.subr.bf16.mxu0 %v7132_v6  ;;  %v5897_v54 = vcombine.low %v8651_v63, %v8668_v20  ;;  %v4619_v1 = vrot.slane %v4617_v46, 4  ;;  %v8697_v36 = vcombine.low %v4080_v47, %v4090_v34  ;;  %v4122_v62 = vor.u32 %v8618_v19, %v8616_v59  ;;  %v5551_v47 = vld [vmem:[%s7312_s16 + $0xa0] sm:$0xf]  ;;  %v7205_v63 = vld [vmem:[%s7312_s16 + $0xb8] sm:$0x1] }
 0x10d   : > { %6660 = vmatmul.mubr.bf16.gmra.mrb[12].mxu0 %v5827_v24  ;;  %v8686_v24 = vrot.slane %v4143_v22, 5  ;;  %v8690_v15 = vsel %vm7590_vm5, %v5867_v7, %v4624_v2  ;;  %v4626_v55 = vrot.slane %v4624_v2, 4  ;;  %v8707_v22 = vcombine.low %v4104_v38, %v4114_v18  ;;  %v9180_v18 = vld [vmem:[#allocation8_spill] sm:$0xff]  ;;  %v5557_v61 = vld [vmem:[%s7312_s16 + $0xc0] sm:$0xf] }
 0x10e   : > { %6436 = vmatmul.mubr.bf16.gmra.mrb[28].mxu1 %v5443_v48  ;;  %6663 = vmatprep.mubr.bf16.mxu0 %v5828_v42  ;;  %v4153_v48 = vshrl.u32 %v8631_v51, 16  ;;  %v8704_v42 = vsel %vm7590_vm5, %v4619_v1, %v4620_v30  ;;  %v8709_v57 = vrot.slane %v4135_v12, 5  ;;  %v4132_v34 = vor.u32 %v8641_v5, %v8620_v49  ;;  %v5801_v12 = vld [vmem:[%s7312_s16 + $0x110] sm:$0xf]  ;;  %v9183_v1 = vld [vmem:[#allocation9_spill] sm:$0xff]  ;;  %v7141_v45 = vld [vmem:[%s7312_s16 + $0xe0] sm:$0xff]  }
 0x10f   : > { %6455 = vmatprep.mubr.bf16.mxu1 %v7124_v13  ;;  %6692 = vmatpush3.bf16.msra.mxu0 %v7132_v6  ;;  %v5898_v17 = vcombine.low %v8675_v41, %v8704_v42  ;;  %v8715_v43 = vsel %vm7590_vm5, %v4626_v55, %v4627_v0  ;;  %v8720_v59 = vrot.slane %v4149_v31, 5  ;;  %v4159_v19 = vshll.u32 %v8682_v26, 16  ;;  %v5853_v6 = vld [vmem:[%s7312_s16 + $0xb0] sm:$0xe]  ;;  %v8734_v31 = vld [vmem:[%s7312_s16 + $0x114] sm:$0xf] }
 0x110   : > { %6693 = vmatprep.subr.bf16.mxu0 %v7135_v56  ;;  %v5899_v38 = vcombine.low %v8690_v15, %v8715_v43  ;;  %v4146_v60 = vor.u32 %v8686_v24, %v8684_v44  ;;  %v5868_v14 = vrot.slane %v5852_v23, 9  ;;  %v4631_v32 = vrot.slane %v9180_v18, 5  ;;  %v9184_v24 = vld [vmem:[#allocation12_spill] sm:$0xff] }
 0x111   : > { %v4634_v33 = vrot.slane %v9181_v28, 5  ;;  %v4155_v5 = vrot.slane %v4153_v48, 4  ;;  %v2381_v3 = vshrl.u32 %v5551_v47, 16  ;;  %v2384_v13 = vshll.u32 %v5551_v47, 16 }
 0x112   : > { %v2403_v16 = vsel %vm7344_vm2, %v8519_v50, %v9182_v53  ;;  %v4164_v46 = vshrl.u32 %v5801_v12, 16  ;;  %v8742_v29 = vsel %vm7590_vm5, %v5868_v14, %v4631_v32  ;;  %v4633_v30 = vrot.slane %v4631_v32, 4 }
 0x113   : > { %6694 = vmatpush3.bf16.msra.mxu0 %v7135_v56  ;;  %v5869_v7 = vrot.slane %v5853_v6, 9  ;;  %v4167_v52 = vshll.u32 %v5801_v12, 16  ;;  %v2383_v2 = vrot.slane %v2381_v3, 4  ;;  %v2386_v56 = vrot.slane %v2384_v13, 5  ;;  %v5854_v12 = vld [vmem:[%s7312_s16 + $0xc0] sm:$0xe] }
 0x114   : > { %v4638_v4 = vrot.slane %v9183_v1, 5  ;;  %v4173_v50 = vshll.u32 %v8734_v31, 16  ;;  %v4177_v0 = vshrl.u32 %v8734_v31, 16  ;;  %v8751_v44 = vsel %vm7590_vm5, %v4633_v30, %v4634_v33  ;;  %v7185_v6 = vld [vmem:[%s9121_s1 + $0x108] sm:$0xff]   ;;  %v7128_v3 = vld [vmem:[%s7312_s16 + $0x40] sm:$0xff]   ;;  %v7186_v1 = vld [vmem:[%s9121_s1 + $0x110] sm:$0xff]  }
 0x115   : > { %6664 = vmatmul.mubr.bf16.gmra.mrb[16].mxu0 %v8589_v58  ;;  %v4641_v55 = vrot.slane %v9184_v24, 5  ;;  %v9185_v58 = vld [vmem:[#allocation15_spill] sm:$0xff]  ;;  %v4156_v48 = vor.u32 %v4155_v5, %v8720_v59  ;;  %v2387_v23 = vor.u32 %v2386_v56, %v2383_v2  ;;  %v4133_v14 = vrot.slane %v4132_v34, 4  ;;  %v8772_v13 = vld [vmem:[%s7312_s16 + $0x118] sm:$0x1]  ;;  %v9186_v2 = vld [vmem:[#allocation10_spill] sm:$0xff] }
 0x116   : > { %6456 = vmatmul.mubr.bf16.vlgmr.msra.gmra.mrb[0].mxu1 %v7125_v40  ;;  %6667 = vmatprep.mubr.bf16.mxu0 %v8591_v35  ;;  %v5900_v35 = vcombine.low %v8742_v29, %v8751_v44  ;;  %v4640_v47 = vrot.slane %v4638_v4, 4  ;;  %v4123_v40 = vrot.slane %v4122_v62, 4  ;;  %v4161_v18 = vrot.slane %v4159_v19, 5  ;;  %v7130_v19 = vld [vmem:[%s7312_s16 + $0x50] sm:$0xff]  }
 0x117   : > { %6735 = vmatpush3.bf16.msra.mxu1 %v9185_v58  ;;  %6459 = vmatprep.mubr.bf16.mxu1 %v7127_v39  ;;  %v8764_v32 = vsel %vm7590_vm5, %v5869_v7, %v4638_v4  ;;  %v4166_v28 = vrot.slane %v4164_v46, 4  ;;  %v4169_v33 = vrot.slane %v4167_v52, 5  ;;  %v2388_v39 = vrot.slane %v2387_v23, 4 }
 0x118   : > { %6728 = vmatprep.subr.bf16.mxu1 %v7185_v6  ;;  %v8768_v5 = vsel %vm7590_vm5, %v4640_v47, %v4641_v55  ;;  %v8774_v53 = vrot.slane %v4173_v50, 5  ;;  %v4179_v30 = vrot.slane %v4177_v0, 4  ;;  %v5870_v34 = vrot.slane %v5854_v12, 9  ;;  %v7187_v47 = vld [vmem:[%s7312_s16 + $0x24] sm:$0xf] }
 0x119   : > { %v5901_v62 = vcombine.low %v8764_v32, %v8768_v5  ;;  %v4147_v7 = vrot.slane %v4146_v60, 4  ;;  %v4157_v46 = vrot.slane %v4156_v48, 4  ;;  %v2393_v52 = vsel %vm7344_vm2, %v2388_v39, %v7920_v11  ;;  %v9187_v11 = vld [vmem:[#allocation14_spill] sm:$0xff] }
 0x11a   : > { %v4645_v56 = vrot.slane %v9186_v2, 5  ;;  %v4128_v4 = vsel %vm7344_vm2, %v4123_v40, %v8620_v49  ;;  %v4138_v60 = vsel %vm7344_vm2, %v4133_v14, %v8709_v57  ;;  %v8792_v50 = vcombine.low %v2393_v52, %v2403_v16  ;;  %v5844_v57 = vld [vmem:[%s7312_s16 + $0x20] sm:$0xe]  ;;  %v5855_v16 = vld [vmem:[%s7312_s16 + $0xd0] sm:$0xe]  ;;  %v7188_v40 = vld [vmem:[%s9121_s1 + $0x118] sm:$0xff]  }
 0x11b   : > { %6736 = vmatpush3.bf16.msra.mxu1 %v7185_v6  ;;  %v4648_v0 = vrot.slane %v9187_v11, 5  ;;  %v4170_v24 = vor.u32 %v4169_v33, %v4166_v28  ;;  %v4183_v55 = vshll.u32 %v8772_v13, 16  ;;  %v4180_v49 = vor.u32 %v4179_v30, %v8774_v53  ;;  %v7131_v39 = vld [vmem:[%s7312_s16 + $0x60] sm:$0xff]   ;;  %v7189_v2 = vld [vmem:[%s7312_s16 + $0x28] sm:$0x1] }
 0x11c   : > { %6729 = vmatprep.subr.bf16.mxu1 %v7186_v1  ;;  %v8799_v58 = vsel %vm7590_vm5, %v5870_v34, %v4645_v56  ;;  %v4647_v48 = vrot.slane %v4645_v56, 4  ;;  %v4162_v23 = vsel %vm7344_vm2, %v4157_v46, %v4161_v18  ;;  %v4575_v12 = vrot.slane %v7187_v47, 5  ;;  %v9188_v34 = vld [vmem:[#allocation13_spill] sm:$0xff]  ;;  %v7133_v46 = vld [vmem:[%s7312_s16 + $0x70] sm:$0xff]   ;;  %v5856_v11 = vld [vmem:[%s7312_s16 + $0xe0] sm:$0xe] }
 0x11d   : > { %6668 = vmatmul.mubr.bf16.gmra.mrb[20].mxu0 %v8697_v36  ;;  %v4152_v36 = vsel %vm7344_vm2, %v4147_v7, %v8720_v59  ;;  %v5833_v6 = vcombine.low %v4128_v4, %v4138_v60  ;;  %v4171_v14 = vrot.slane %v4170_v24, 4  ;;  %v4185_v28 = vrot.slane %v4183_v55, 5  ;;  %v5845_v55 = vld [vmem:[%s7312_s16 + $0x30] sm:$0xe] }
 0x11e   : > { %6460 = vmatmul.mubr.bf16.gmra.mrb[4].mxu1 %v7128_v3  ;;  %6671 = vmatprep.mubr.bf16.mxu0 %v8707_v22  ;;  %v8813_v22 = vsel %vm7590_vm5, %v4647_v48, %v4648_v0  ;;  %v5860_v18 = vrot.slane %v5844_v57, 9  ;;  %v5871_v33 = vrot.slane %v5855_v16, 9  ;;  %v5834_v3 = vcombine.low %v4152_v36, %v4162_v23  ;;  %v7191_v48 = vld [vmem:[%s7312_s16 + $0x34] sm:$0xf]  ;;  %v7192_v36 = vld [vmem:[%s7312_s16 + $0x44] sm:$0xf] }
 0x11f   : > { %6463 = vmatprep.mubr.bf16.mxu1 %v7130_v19  ;;  %6737 = vmatpush3.bf16.msra.mxu1 %v7186_v1  ;;  %v5902_v59 = vcombine.low %v8799_v58, %v8813_v22  ;;  %v4181_v30 = vrot.slane %v4180_v49, 4  ;;  %v4652_v19 = vrot.slane %v9188_v34, 5  ;;  %v4655_v7 = vrot.slane %v8502_v25, 5  ;;  %v7190_v1 = vld [vmem:[%s9121_s1 + $0x120] sm:$0xff]  }
 0x120   : > { %6730 = vmatprep.subr.bf16.mxu1 %v7188_v40  ;;  %v4577_v52 = vrot.slane %v4575_v12, 4  ;;  %v4578_v56 = vrot.slane %v7189_v2, 5  ;;  %v4576_v25 = vsel %vm7590_vm5, %v5860_v18, %v4575_v12  ;;  %v4176_v0 = vsel %vm7344_vm2, %v4171_v14, %v8774_v53  ;;  %v5846_v12 = vld [vmem:[%s7312_s16 + $0x40] sm:$0xe] }
 0x121   : > { %v8830_v4 = vsel %vm7590_vm5, %v5871_v33, %v4652_v19  ;;  %v4654_v60 = vrot.slane %v4652_v19, 4  ;;  %v4186_v24 = vsel %vm7344_vm2, %v4181_v30, %v4185_v28  ;;  %v4582_v49 = vrot.slane %v7191_v48, 5  ;;  %v7194_v33 = vld [vmem:[%s7312_s16 + $0x38] sm:$0x1]  ;;  %v7134_v30 = vld [vmem:[%s7312_s16 + $0x80] sm:$0xff]  }
 0x122   : > { %v4579_v16 = vsel %vm7590_vm5, %v4577_v52, %v4578_v56  ;;  %v4589_v23 = vrot.slane %v7192_v36, 5  ;;  %v5872_v47 = vrot.slane %v5856_v11, 9  ;;  %v5835_v28 = vcombine.low %v4176_v0, %v4186_v24  ;;  %v7136_v52 = vld [vmem:[%s7312_s16 + $0x90] sm:$0xff]  }
 0x123   : > { %6738 = vmatpush3.bf16.msra.mxu1 %v7188_v40  ;;  %v8844_v57 = vsel %vm7590_vm5, %v4654_v60, %v4655_v7  ;;  %v9189_v40 = vld [vmem:[#allocation16_spill] sm:$0xff]  ;;  %v5861_v18 = vrot.slane %v5845_v55, 9  ;;  %v5892_v34 = vcombine.low %v4576_v25, %v4579_v16  ;;  %v4584_v19 = vrot.slane %v4582_v49, 4 }
 0x124   : > { %6731 = vmatprep.subr.bf16.mxu1 %v7190_v1  ;;  %v5903_v53 = vcombine.low %v8830_v4, %v8844_v57  ;;  %v4659_v14 = vrot.slane %v9189_v40, 5  ;;  %v5862_v2 = vrot.slane %v5846_v12, 9  ;;  %v4591_v56 = vrot.slane %v4589_v23, 4  ;;  %v5857_v11 = vld [vmem:[%s7312_s16 + $0xf0] sm:$0xe] }
 0x125   : > { %6672 = vmatmul.mubr.bf16.gmra.mrb[24].mxu0 %v5833_v6  ;;  %v7193_v6 = vld [vmem:[%s9121_s1 + $0x128] sm:$0xff]   ;;  %v5847_v0 = vld [vmem:[%s7312_s16 + $0x50] sm:$0xe]  ;;  %v7196_v24 = vld [vmem:[%s7312_s16 + $0x54] sm:$0xf]  ;;  %v4583_v48 = vsel %vm7590_vm5, %v5861_v18, %v4582_v49  ;;  %v4666_v12 = vrot.slane %v8549_v10, 5 }
 0x126   : > { %6464 = vmatmul.mubr.bf16.gmra.mrb[8].mxu1 %v7131_v39  ;;  %6675 = vmatprep.mubr.bf16.mxu0 %v5834_v3  ;;  %v4585_v39 = vrot.slane %v7194_v33, 5  ;;  %v4662_v3 = vrot.slane %v8537_v21, 5  ;;  %v8861_v7 = vsel %vm7590_vm5, %v5872_v47, %v4659_v14  ;;  %v4596_v55 = vrot.slane %v7196_v24, 5  ;;  %v7197_v21 = vld [vmem:[%s9121_s1 + $0x130] sm:$0xff]   ;;  %v7198_v18 = vld [vmem:[%s7312_s16 + $0x58] sm:$0x1] }
 0x127   : > { %6467 = vmatprep.mubr.bf16.mxu1 %v7133_v46  ;;  %6739 = vmatpush3.bf16.msra.mxu1 %v7190_v1  ;;  %v4661_v46 = vrot.slane %v4659_v14, 4  ;;  %v7195_v1 = vld [vmem:[%s7312_s16 + $0x48] sm:$0x1]  ;;  %v5873_v47 = vrot.slane %v5857_v11, 9  ;;  %v4590_v49 = vsel %vm7590_vm5, %v5862_v2, %v4589_v23  ;;  %v5863_v14 = vrot.slane %v5847_v0, 9  ;;  %v7199_v10 = vld [vmem:[%s9121_s1 + $0x138] sm:$0xff]  }
 0x128   : > { %6732 = vmatprep.subr.bf16.mxu1 %v7193_v6  ;;  %v4592_v60 = vrot.slane %v7195_v1, 5  ;;  %v4586_v36 = vsel %vm7590_vm5, %v4584_v19, %v4585_v39  ;;  %v4599_v33 = vrot.slane %v7198_v18, 5  ;;  %v4668_v39 = vrot.slane %v4666_v12, 4  ;;  %v5858_v23 = vld [vmem:[%s7312_s16 + $0x100] sm:$0xe] }
 0x129   : > { %v8873_v25 = vsel %vm7590_vm5, %v4661_v46, %v4662_v3  ;;  %v5893_v3 = vcombine.low %v4583_v48, %v4586_v36  ;;  %v5548_v19 = vld [vmem:[%s7312_s16 + $0x90] sm:$0xf]  ;;  %v4597_v1 = vsel %vm7590_vm5, %v5863_v14, %v4596_v55  ;;  %v4673_v11 = vrot.slane %v8631_v51, 5  ;;  %v7139_v18 = vld [vmem:[%s7312_s16 + $0xc0] sm:$0xff]  }
 0x12a   : > { %v5904_v16 = vcombine.low %v8861_v7, %v8873_v25  ;;  %v4593_v40 = vsel %vm7590_vm5, %v4591_v56, %v4592_v60  ;;  %v5874_v56 = vrot.slane %v5858_v23, 9  ;;  %v2357_v0 = vshrl.u32 %v5548_v19, 16  ;;  %v5859_v51 = vld [vmem:[%s7312_s16 + $0x110] sm:$0xe] }
 0x12b   : > { %6740 = vmatpush3.bf16.msra.mxu1 %v7193_v6  ;;  %v4669_v6 = vrot.slane %v8570_v27, 5  ;;  %v8893_v27 = vsel %vm7590_vm5, %v5873_v47, %v4666_v12  ;;  %v2360_v24 = vshll.u32 %v5548_v19, 16  ;;  %v4676_v36 = vrot.slane %v8682_v26, 5 }
 0x12c   : > { %6733 = vmatprep.subr.bf16.mxu1 %v7197_v21  ;;  %v4675_v12 = vrot.slane %v4673_v11, 4  ;;  %v4683_v23 = vrot.slane %v8772_v13, 5  ;;  %v2424_v20 = vshll.u32 %v7205_v63, 16 }
 0x12d   : > { %6676 = vmatmul.mubr.bf16.gmra.mrb[28].mxu0 %v5835_v28  ;;  %v4598_v28 = vrot.slane %v4596_v55, 4  ;;  %v8900_v46 = vsel %vm7590_vm5, %v4668_v39, %v4669_v6  ;;  %v8914_v55 = vsel %vm7590_vm5, %v5874_v56, %v4673_v11  ;;  %v2362_v26 = vrot.slane %v2360_v24, 5  ;;  %v7201_v56 = vld [vmem:[%s7312_s16 + $0x98] sm:$0x1] }
 0x12e   : > { %6468 = vmatmul.mubr.bf16.gmra.mrb[12].mxu1 %v7134_v30  ;;  %6695 = vmatprep.mubr.bf16.mxu0 %v5892_v34  ;;  %v7137_v30 = vld [vmem:[%s7312_s16 + $0xa0] sm:$0xff]   ;;  %v5894_v34 = vcombine.low %v4590_v49, %v4593_v40  ;;  %v5905_v2 = vcombine.low %v8893_v27, %v8900_v46  ;;  %v8919_v49 = vsel %vm7590_vm5, %v4675_v12, %v4676_v36  ;;  %v2359_v40 = vrot.slane %v2357_v0, 4  ;;  %v7202_v0 = vld [vmem:[%s7312_s16 + $0xb4] sm:$0xf] }
 0x12f   : > { %6471 = vmatprep.mubr.bf16.mxu1 %v7136_v52  ;;  %6741 = vmatpush3.bf16.msra.mxu1 %v7197_v21  ;;  %v7138_v52 = vld [vmem:[%s7312_s16 + $0xb0] sm:$0xff]   ;;  %v4600_v60 = vsel %vm7590_vm5, %v4598_v28, %v4599_v33  ;;  %v5906_v28 = vcombine.low %v8914_v55, %v8919_v49  ;;  %v4680_v39 = vrot.slane %v8734_v31, 5  ;;  %v2414_v24 = vshll.u32 %v7202_v0, 16 }
 0x130   : > { %6734 = vmatprep.subr.bf16.mxu1 %v7199_v10  ;;  %v7200_v21 = vld [vmem:[%s7312_s16 + $0x94] sm:$0xf]  ;;  %v5895_v6 = vcombine.low %v4597_v1, %v4600_v60  ;;  %v2376_v1 = vshll.u32 %v7201_v56, 16 }
 0x131   : > { %v2366_v48 = vshll.u32 %v7200_v21, 16  ;;  %v2370_v47 = vshrl.u32 %v7200_v21, 16  ;;  %v4682_v19 = vrot.slane %v4680_v39, 4  ;;  %v2418_v21 = vshrl.u32 %v7202_v0, 16 }
 0x133   : > { %6742 = vmatpush3.bf16.msra.mxu1 %v7199_v10  ;;  %v8921_v14 = vrot.slane %v2366_v48, 5  ;;  %v2372_v33 = vrot.slane %v2370_v47, 4  ;;  %v5875_v10 = vrot.slane %v5859_v51, 9  ;;  %v8941_v11 = vsel %vm7590_vm5, %v4682_v19, %v4683_v23  ;;  %v7204_v19 = vld [vmem:[%s7312_s16 + $0xd4] sm:$0xf] }
 0x134   : > { %v2466_v56 = vshrl.u32 %v7204_v19, 16 }
 0x135   : > { %6696 = vmatmul.mubr.bf16.vlgmr.msra.gmra.mrb[0].mxu0 %v5893_v3  ;;  %v7140_v3 = vld [vmem:[%s7312_s16 + $0xd0] sm:$0xff]   ;;  %v2373_v31 = vor.u32 %v2372_v33, %v8921_v14  ;;  %v2432_v33 = vshll.u32 %v5557_v61, 16 }
 0x136   : > { %6472 = vmatmul.mubr.bf16.gmra.mrb[16].mxu1 %v7137_v30  ;;  %6699 = vmatprep.mubr.bf16.mxu0 %v5894_v34  ;;  %v5554_v30 = vld [vmem:[%s7312_s16 + $0xb0] sm:$0xf]  ;;  %v8932_v34 = vsel %vm7590_vm5, %v5875_v10, %v4680_v39  ;;  %v7203_v10 = vld [vmem:[%s7312_s16 + $0xc4] sm:$0xf] }
 0x137   : > { %6475 = vmatprep.mubr.bf16.mxu1 %v7138_v52  ;;  %v2363_v52 = vor.u32 %v2362_v26, %v2359_v40  ;;  %v2405_v13 = vshrl.u32 %v5554_v30, 16  ;;  %v2408_v60 = vshll.u32 %v5554_v30, 16  ;;  %v5907_v48 = vcombine.low %v8932_v34, %v8941_v11 }
 0x138   : > { %v2374_v47 = vrot.slane %v2373_v31, 4  ;;  %v8950_v40 = vrot.slane %v2414_v24, 5  ;;  %v2420_v26 = vrot.slane %v2418_v21, 4  ;;  %v2438_v39 = vshll.u32 %v7203_v10, 16 }
 0x139   : > { %v2364_v36 = vrot.slane %v2363_v52, 4  ;;  %v2407_v12 = vrot.slane %v2405_v13, 4  ;;  %v2410_v51 = vrot.slane %v2408_v60, 5  ;;  %v2442_v23 = vshrl.u32 %v7203_v10, 16  ;;  %v7207_v10 = vld [vmem:[%s7312_s16 + $0xd8] sm:$0x1] }
 0x13a   : > { %v2462_v52 = vshll.u32 %v7204_v19, 16  ;;  %v2421_v13 = vor.u32 %v2420_v26, %v8950_v40  ;;  %v2434_v0 = vrot.slane %v2432_v33, 5  ;;  %v8967_v41 = vrot.slane %v2438_v39, 5  ;;  %v7208_v19 = vld [vmem:[%s7312_s16 + $0xe4] sm:$0xf] }
 0x13b   : > { %v2444_v42 = vrot.slane %v2442_v23, 4  ;;  %v2468_v21 = vrot.slane %v2466_v56, 4  ;;  %v2472_v39 = vshll.u32 %v7207_v10, 16  ;;  %v5566_v23 = vld [vmem:[%s7312_s16 + $0xf0] sm:$0xf]  ;;  %v2490_v15 = vshrl.u32 %v7208_v19, 16 }
 0x13c   : > { %v2504_v63 = vshll.u32 %v5566_v23, 16 }
 0x13d   : > { %6700 = vmatmul.mubr.bf16.gmra.mrb[4].mxu0 %v5895_v6  ;;  %v5560_v6 = vld [vmem:[%s7312_s16 + $0xd0] sm:$0xf]  ;;  %v2445_v26 = vor.u32 %v2444_v42, %v8967_v41 }
 0x13e   : > { %6476 = vmatmul.mubr.bf16.gmra.mrb[20].mxu1 %v7139_v18  ;;  %6703 = vmatprep.mubr.bf16.mxu0 %v5896_v8  ;;  %v2378_v8 = vrot.slane %v2376_v1, 5  ;;  %v2429_v18 = vshrl.u32 %v5557_v61, 16  ;;  %v2456_v30 = vshll.u32 %v5560_v6, 16  ;;  %v2369_v1 = vsel %vm7344_vm2, %v2364_v36, %v8921_v14  ;;  %v7143_v61 = vld [vmem:[%s7312_s16 + $0x100] sm:$0xff]  }
 0x13f   : > { %6479 = vmatprep.mubr.bf16.mxu1 %v7140_v3  ;;  %v2453_v3 = vshrl.u32 %v5560_v6, 16  ;;  %v8969_v14 = vrot.slane %v2462_v52, 5  ;;  %v2486_v52 = vshll.u32 %v7208_v19, 16 }
 0x140   : > { %v2379_v31 = vsel %vm7344_vm2, %v2374_v47, %v2378_v8  ;;  %v2431_v60 = vrot.slane %v2429_v18, 4  ;;  %v2458_v24 = vrot.slane %v2456_v30, 5  ;;  %v2426_v8 = vrot.slane %v2424_v20, 5  ;;  %v7209_v20 = vld [vmem:[%s7312_s16 + $0xf4] sm:$0xf] }
 0x141   : > { %v2422_v47 = vrot.slane %v2421_v13, 4  ;;  %v2469_v33 = vor.u32 %v2468_v21, %v8969_v14  ;;  %v2510_v29 = vshll.u32 %v7209_v20, 16  ;;  %v2514_v44 = vshrl.u32 %v7209_v20, 16 }
 0x143   : > { %v2470_v13 = vrot.slane %v2469_v33, 4 }
 0x145   : > { %6704 = vmatmul.mubr.bf16.gmra.mrb[8].mxu0 %v5897_v54  ;;  %v2411_v54 = vor.u32 %v2410_v51, %v2407_v12  ;;  %v2435_v12 = vor.u32 %v2434_v0, %v2431_v60  ;;  %v7206_v51 = vld [vmem:[%s7312_s16 + $0xc8] sm:$0x1]  ;;  %v2474_v60 = vrot.slane %v2472_v39, 5 }
 0x146   : > { %6480 = vmatmul.mubr.bf16.gmra.mrb[24].mxu1 %v7141_v45  ;;  %6707 = vmatprep.mubr.bf16.mxu0 %v5898_v17  ;;  %v2455_v17 = vrot.slane %v2453_v3, 4  ;;  %v5596_v45 = vcombine.low %v2369_v1, %v2379_v31  ;;  %v2448_v6 = vshll.u32 %v7206_v51, 16  ;;  %v2501_v31 = vshrl.u32 %v5566_v23, 16 }
 0x147   : > { %6483 = vmatprep.mubr.bf16.mxu1 %v7142_v9  ;;  %v2412_v36 = vrot.slane %v2411_v54, 4  ;;  %v5563_v9 = vld [vmem:[%s7312_s16 + $0xe0] sm:$0xf]  ;;  %v2436_v56 = vrot.slane %v2435_v12, 4  ;;  %v2475_v32 = vsel %vm7344_vm2, %v2470_v13, %v2474_v60 }
 0x148   : > { %v2459_v18 = vor.u32 %v2458_v24, %v2455_v17  ;;  %v2477_v3 = vshrl.u32 %v5563_v9, 16  ;;  %v2480_v30 = vshll.u32 %v5563_v9, 16  ;;  %v2450_v1 = vrot.slane %v2448_v6, 5 }
 0x149   : > { %v2417_v43 = vsel %vm7344_vm2, %v2412_v36, %v8950_v40  ;;  %v2488_v17 = vrot.slane %v2486_v52, 5  ;;  %v2492_v24 = vrot.slane %v2490_v15, 4  ;;  %v2503_v21 = vrot.slane %v2501_v31, 4  ;;  %v5569_v36 = vld [vmem:[%s7312_s16 + $0x100] sm:$0xf] }
 0x14a   : > { %v2460_v54 = vrot.slane %v2459_v18, 4  ;;  %v2479_v0 = vrot.slane %v2477_v3, 4  ;;  %v2482_v42 = vrot.slane %v2480_v30, 5  ;;  %v2525_v9 = vshrl.u32 %v5569_v36, 16  ;;  %v7211_v18 = vld [vmem:[%s7312_s16 + $0x104] sm:$0xf] }
 0x14b   : > { %v2534_v33 = vshll.u32 %v7211_v18, 16 }
 0x14c   : > { %v2465_v51 = vsel %vm7344_vm2, %v2460_v54, %v8969_v14  ;;  %v2483_v5 = vor.u32 %v2482_v42, %v2479_v0  ;;  %v2538_v14 = vshrl.u32 %v7211_v18, 16  ;;  %v2527_v19 = vrot.slane %v2525_v9, 4 }
 0x14d   : > { %6708 = vmatmul.mubr.bf16.gmra.mrb[12].mxu0 %v5899_v38  ;;  %v2427_v38 = vsel %vm7344_vm2, %v2422_v47, %v2426_v8  ;;  %v2516_v8 = vrot.slane %v2514_v44, 4  ;;  %v2441_v47 = vsel %vm7344_vm2, %v2436_v56, %v8967_v41  ;;  %v7210_v41 = vld [vmem:[%s7312_s16 + $0xe8] sm:$0x1]  ;;  %v5600_v58 = vcombine.low %v2465_v51, %v2475_v32 }
 0x14e   : > { %6484 = vmatmul.mubr.bf16.gmra.mrb[28].mxu1 %v7143_v61  ;;  %6711 = vmatprep.mubr.bf16.mxu0 %v5900_v35  ;;  %v2446_v35 = vrot.slane %v2445_v26, 4  ;;  %v5598_v40 = vcombine.low %v2417_v43, %v2427_v38  ;;  %v2506_v61 = vrot.slane %v2504_v63, 5  ;;  %v2496_v6 = vshll.u32 %v7210_v41, 16  ;;  %v7213_v44 = vld [vmem:[%s7312_s16 + $0x108] sm:$0x1] }
 0x14f   : > { %6519 = vmatprep.mubr.bf16.mxu1 %v5596_v45  ;;  %v2512_v45 = vrot.slane %v2510_v29, 5  ;;  %v2528_v26 = vshll.u32 %v5569_v36, 16  ;;  %v2484_v22 = vrot.slane %v2483_v5, 4  ;;  %v2536_v15 = vrot.slane %v2534_v33, 5 }
 0x150   : > { %v2451_v12 = vsel %vm7344_vm2, %v2446_v35, %v2450_v1  ;;  %v2507_v10 = vor.u32 %v2506_v61, %v2503_v21  ;;  %v2498_v30 = vrot.slane %v2496_v6, 5  ;;  %v2540_v43 = vrot.slane %v2538_v14, 4 }
 0x151   : > { %v2517_v39 = vor.u32 %v2516_v8, %v2512_v45  ;;  %v5599_v3 = vcombine.low %v2441_v47, %v2451_v12  ;;  %v2530_v52 = vrot.slane %v2528_v26, 5  ;;  %v2489_v31 = vsel %vm7344_vm2, %v2484_v22, %v2488_v17 }
 0x152   : > { %v2508_v38 = vrot.slane %v2507_v10, 4  ;;  %v2541_v29 = vor.u32 %v2540_v43, %v2536_v15  ;;  %v2544_v35 = vshll.u32 %v7213_v44, 16 }
 0x153   : > { %v2518_v56 = vrot.slane %v2517_v39, 4  ;;  %v2531_v20 = vor.u32 %v2530_v52, %v2527_v19 }
 0x154   : > { %v2513_v4 = vsel %vm7344_vm2, %v2508_v38, %v2512_v45  ;;  %v2546_v54 = vrot.slane %v2544_v35, 5 }
 0x155   : > { %6712 = vmatmul.mubr.bf16.gmra.mrb[16].mxu0 %v5901_v62  ;;  %v2493_v62 = vor.u32 %v2492_v24, %v2488_v17  ;;  %v2532_v25 = vrot.slane %v2531_v20, 4 }
 0x156   : > { %6520 = vmatmul.mubr.bf16.vlgmr.msra.gmra.mrb[16].mxu1 %v8792_v50  ;;  %6715 = vmatprep.mubr.bf16.mxu0 %v5902_v59  ;;  %v7212_v50 = vld [vmem:[%s7312_s16 + $0xf8] sm:$0x1] }
 0x157   : > { %6523 = vmatprep.mubr.bf16.mxu1 %v5598_v40  ;;  %v2520_v23 = vshll.u32 %v7212_v50, 16  ;;  %v2494_v59 = vrot.slane %v2493_v62, 4  ;;  %v2537_v13 = vsel %vm7344_vm2, %v2532_v25, %v2536_v15 }
 0x159   : > { %v2522_v1 = vrot.slane %v2520_v23, 5  ;;  %v2499_v63 = vsel %vm7344_vm2, %v2494_v59, %v2498_v30 }
 0x15b   : > { %v2523_v57 = vsel %vm7344_vm2, %v2518_v56, %v2522_v1 }
 0x15c   : > { %v5602_v7 = vcombine.low %v2513_v4, %v2523_v57 }
 0x15d   : > { %6716 = vmatmul.mubr.bf16.gmra.mrb[20].mxu0 %v5903_v53  ;;  %v5601_v53 = vcombine.low %v2489_v31, %v2499_v63 }
 0x15e   : > { %6524 = vmatmul.mubr.bf16.gmra.mrb[20].mxu1 %v5599_v3  ;;  %6719 = vmatprep.mubr.bf16.mxu0 %v5904_v16  ;;  %v2542_v16 = vrot.slane %v2541_v29, 4 }
 0x15f   : > { %6527 = vmatprep.mubr.bf16.mxu1 %v5600_v58 }
 0x160   : > { %v2547_v60 = vsel %vm7344_vm2, %v2542_v16, %v2546_v54 }
 0x161   : > { %v5603_v0 = vcombine.low %v2537_v13, %v2547_v60 }
 0x165   : > { %6720 = vmatmul.mubr.bf16.gmra.mrb[24].mxu0 %v5905_v2 }
 0x166   : > { %6528 = vmatmul.mubr.bf16.gmra.mrb[24].mxu1 %v5601_v53  ;;  %6723 = vmatprep.mubr.bf16.mxu0 %v5906_v28 }
 0x167   : > { %6531 = vmatprep.mubr.bf16.mxu1 %v5602_v7 }
 0x16d   : > { %6724 = vmatmul.mubr.bf16.gmra.mrb[28].mxu0 %v5907_v48  ;;  %v9051_v48 = vld [vmem:[%s9122_s2] ss:$0 sm:$0xff] }
 0x16e   : > { %6532 = vmatmul.mubr.bf16.gmra.mrb[28].mxu1 %v5603_v0 }
 0x1e9   : > { %v6457_v27 = vpop.f32.mrb[0].mxu1 }
 0x1ea   : > { %v1957_v46 = vpop.f32.mrb[1].mxu1 }
 0x1eb   : > { %v6458_v2 = vpop.f32.mrb[2].mxu1 }
 0x1ec   : > { %v1960_v42 = vpop.f32.mrb[3].mxu1 }
 0x1f1   : > { %v6461_v17 = vpop.f32.mrb[4].mxu1 }
 0x1f2   : > { %v1973_v55 = vpop.f32.mrb[5].mxu1 }
 0x1f3   : > { %v6462_v49 = vpop.f32.mrb[6].mxu1 }
 0x1f4   : > { %v1976_v28 = vpop.f32.mrb[7].mxu1 }
 0x1f9   : > { %v6465_v24 = vpop.f32.mrb[8].mxu1 }
 0x1fa   : > { %v1989_v40 = vpop.f32.mrb[9].mxu1 }
 0x1fb   : > { %v6466_v21 = vpop.f32.mrb[10].mxu1 }
 0x1fc   : > { %v1992_v61 = vpop.f32.mrb[11].mxu1 }
 0x201   : > { %v9040_v37 = vpop.f32.mrb[12].mxu1 }
 0x202   : > { %v9042_v45 = vpop.f32.mrb[13].mxu1 }
 0x203   : > { %v9044_v34 = vpop.f32.mrb[14].mxu1 }
 0x204   : > { %v9046_v11 = vpop.f32.mrb[15].mxu1 }
 0x208   : > { %v6697_v8 = vpop.f32.mrb[0].mxu0 }
 0x209   : > { %v6743_v36 = vadd.f32 %v6697_v8, %v6457_v27  ;;  %v4848_v47 = vpop.f32.mrb[1].mxu0 }
 0x20a   : > { %v6744_v12 = vadd.f32 %v4848_v47, %v1957_v46  ;;  %v6698_v51 = vpop.f32.mrb[2].mxu0 }
 0x20b   : > { %v5015_v32 = vadd.f32 %v6743_v36, %v9051_v48  ;;  %v6745_v5 = vadd.f32 %v6698_v51, %v6458_v2  ;;  %v4851_v62 = vpop.f32.mrb[3].mxu0 }
 0x20c   : > { %v5013_v41 = vadd.f32 %v6744_v12, %v9051_v48  ;;  %v6746_v6 = vadd.f32 %v4851_v62, %v1960_v42 }
 0x20d   : > { %v5016_v9 = vadd.f32 %v6745_v5, %v9051_v48  ;;  %v5047_v18 = vmax.f32 %v5015_v32, 0.0 }
 0x20e   : > { %v5014_v26 = vadd.f32 %v6746_v6, %v9051_v48  ;;  %v5045_v14 = vmax.f32 %v5013_v41, 0.0 }
 0x20f   : > { %v5048_v33 = vmax.f32 %v5016_v9, 0.0 }
 0x210   : > { %v5046_v10 = vmax.f32 %v5014_v26, 0.0  ;;  %v6701_v39 = vpop.f32.mrb[4].mxu0 }
 0x211   : > { %v5992_v50 = vpack.c.bf16 %v5048_v33, %v5047_v18  ;;  %v6747_v23 = vadd.f32 %v6701_v39, %v6461_v17  ;;  %v4864_v3 = vpop.f32.mrb[5].mxu0 }
 0x212   : > { %v5987_v58 = vpack.c.bf16 %v5046_v10, %v5045_v14  ;;  %v6748_v22 = vadd.f32 %v4864_v3, %v1973_v55  ;;  %v6702_v59 = vpop.f32.mrb[6].mxu0 }
 0x213   : > { %6064 = vst [vmem:[%s9061_s29 + $0x8] sm:$0xff] %v5992_v50   ;;  %v5019_v30 = vadd.f32 %v6747_v23, %v9051_v48  ;;  %v6749_v19 = vadd.f32 %v6702_v59, %v6462_v49  ;;  %v4867_v52 = vpop.f32.mrb[7].mxu0 }
 0x214   : > { %5988 = vst [vmem:[%s9061_s29] sm:$0xff] %v5987_v58   ;;  %v5017_v15 = vadd.f32 %v6748_v22, %v9051_v48  ;;  %v6750_v43 = vadd.f32 %v4867_v52, %v1976_v28 }
 0x215   : > { %v5020_v38 = vadd.f32 %v6749_v19, %v9051_v48  ;;  %v5051_v1 = vmax.f32 %v5019_v30, 0.0 }
 0x216   : > { %v5018_v56 = vadd.f32 %v6750_v43, %v9051_v48  ;;  %v5049_v63 = vmax.f32 %v5017_v15, 0.0 }
 0x217   : > { %v5052_v31 = vmax.f32 %v5020_v38, 0.0 }
 0x218   : > { %v5050_v20 = vmax.f32 %v5018_v56, 0.0  ;;  %v6705_v29 = vpop.f32.mrb[8].mxu0 }
 0x219   : > { %v6002_v44 = vpack.c.bf16 %v5052_v31, %v5051_v1  ;;  %v6751_v35 = vadd.f32 %v6705_v29, %v6465_v24  ;;  %v4880_v4 = vpop.f32.mrb[9].mxu0 }
 0x21a   : > { %v5997_v57 = vpack.c.bf16 %v5050_v20, %v5049_v63  ;;  %v6752_v53 = vadd.f32 %v4880_v4, %v1989_v40  ;;  %v6706_v7 = vpop.f32.mrb[10].mxu0 }
 0x21b   : > { %6066 = vst [vmem:[%s9061_s29 + $0x18] sm:$0xff] %v6002_v44   ;;  %v5023_v25 = vadd.f32 %v6751_v35, %v9051_v48  ;;  %v6753_v16 = vadd.f32 %v6706_v7, %v6466_v21  ;;  %v4883_v54 = vpop.f32.mrb[11].mxu0 }
 0x21c   : > { %6065 = vst [vmem:[%s9061_s29 + $0x10] sm:$0xff] %v5997_v57   ;;  %v5021_v13 = vadd.f32 %v6752_v53, %v9051_v48  ;;  %v6754_v60 = vadd.f32 %v4883_v54, %v1992_v61 }
 0x21d   : > { %v5024_v0 = vadd.f32 %v6753_v16, %v9051_v48  ;;  %v5055_v46 = vmax.f32 %v5023_v25, 0.0 }
 0x21e   : > { %v5022_v27 = vadd.f32 %v6754_v60, %v9051_v48  ;;  %v5053_v42 = vmax.f32 %v5021_v13, 0.0 }
 0x21f   : > { %v5056_v2 = vmax.f32 %v5024_v0, 0.0 }
 0x220   : > { %v5054_v17 = vmax.f32 %v5022_v27, 0.0  ;;  %v6709_v55 = vpop.f32.mrb[12].mxu0 }
 0x221   : > { %v6012_v49 = vpack.c.bf16 %v5056_v2, %v5055_v46  ;;  %v6755_v28 = vadd.f32 %v6709_v55, %v9040_v37  ;;  %v4896_v24 = vpop.f32.mrb[13].mxu0 }
 0x222   : > { %v6007_v40 = vpack.c.bf16 %v5054_v17, %v5053_v42  ;;  %v6756_v21 = vadd.f32 %v4896_v24, %v9042_v45  ;;  %v6710_v8 = vpop.f32.mrb[14].mxu0 }
 0x223   : > { %6068 = vst [vmem:[%s9061_s29 + $0x28] sm:$0xff] %v6012_v49   ;;  %v5027_v61 = vadd.f32 %v6755_v28, %v9051_v48  ;;  %v6757_v36 = vadd.f32 %v6710_v8, %v9044_v34  ;;  %v4899_v47 = vpop.f32.mrb[15].mxu0 }
 0x224   : > { %6067 = vst [vmem:[%s9061_s29 + $0x20] sm:$0xff] %v6007_v40   ;;  %v5025_v12 = vadd.f32 %v6756_v21, %v9051_v48  ;;  %v6758_v51 = vadd.f32 %v4899_v47, %v9046_v11 }
 0x225   : > { %v5028_v32 = vadd.f32 %v6757_v36, %v9051_v48  ;;  %v5059_v5 = vmax.f32 %v5027_v61, 0.0 }
 0x226   : > { %v5026_v37 = vadd.f32 %v6758_v51, %v9051_v48  ;;  %v5057_v62 = vmax.f32 %v5025_v12, 0.0 }
 0x227   : > { %v5060_v45 = vmax.f32 %v5028_v32, 0.0 }
 0x228   : > { %v5058_v41 = vmax.f32 %v5026_v37, 0.0  ;;  %v6713_v6 = vpop.f32.mrb[16].mxu0 }
 0x229   : > { %v6022_v9 = vpack.c.bf16 %v5060_v45, %v5059_v5  ;;  %v6521_v26 = vpop.f32.mrb[16].mxu1  ;;  %v4912_v34 = vpop.f32.mrb[17].mxu0 }
 0x22a   : > { %v6017_v18 = vpack.c.bf16 %v5058_v41, %v5057_v62  ;;  %v6759_v33 = vadd.f32 %v6713_v6, %v6521_v26  ;;  %v2775_v14 = vpop.f32.mrb[17].mxu1  ;;  %v6714_v10 = vpop.f32.mrb[18].mxu0 }
 0x22b   : > { %6070 = vst [vmem:[%s9061_s29 + $0x38] sm:$0xff] %v6022_v9   ;;  %v6760_v39 = vadd.f32 %v4912_v34, %v2775_v14  ;;  %v6522_v11 = vpop.f32.mrb[18].mxu1  ;;  %v4915_v50 = vpop.f32.mrb[19].mxu0 }
 0x22c   : > { %6069 = vst [vmem:[%s9061_s29 + $0x30] sm:$0xff] %v6017_v18   ;;  %v5031_v23 = vadd.f32 %v6759_v33, %v9051_v48  ;;  %v6761_v3 = vadd.f32 %v6714_v10, %v6522_v11  ;;  %v2778_v58 = vpop.f32.mrb[19].mxu1 }
 0x22d   : > { %v5029_v22 = vadd.f32 %v6760_v39, %v9051_v48  ;;  %v6762_v59 = vadd.f32 %v4915_v50, %v2778_v58 }
 0x22e   : > { %v5032_v30 = vadd.f32 %v6761_v3, %v9051_v48  ;;  %v5063_v52 = vmax.f32 %v5031_v23, 0.0 }
 0x22f   : > { %v5030_v19 = vadd.f32 %v6762_v59, %v9051_v48  ;;  %v5061_v38 = vmax.f32 %v5029_v22, 0.0 }
 0x230   : > { %v5064_v15 = vmax.f32 %v5032_v30, 0.0  ;;  %v6717_v43 = vpop.f32.mrb[20].mxu0 }
 0x231   : > { %v5062_v56 = vmax.f32 %v5030_v19, 0.0  ;;  %v6525_v1 = vpop.f32.mrb[20].mxu1  ;;  %v4928_v31 = vpop.f32.mrb[21].mxu0 }
 0x232   : > { %v6032_v63 = vpack.c.bf16 %v5064_v15, %v5063_v52  ;;  %v6763_v20 = vadd.f32 %v6717_v43, %v6525_v1  ;;  %v2791_v29 = vpop.f32.mrb[21].mxu1  ;;  %v6718_v44 = vpop.f32.mrb[22].mxu0 }
 0x233   : > { %v6027_v35 = vpack.c.bf16 %v5062_v56, %v5061_v38  ;;  %v6764_v4 = vadd.f32 %v4928_v31, %v2791_v29  ;;  %v6526_v57 = vpop.f32.mrb[22].mxu1  ;;  %v4931_v53 = vpop.f32.mrb[23].mxu0 }
 0x234   : > { %6072 = vst [vmem:[%s9061_s29 + $0x48] sm:$0xff] %v6032_v63   ;;  %v5035_v7 = vadd.f32 %v6763_v20, %v9051_v48  ;;  %v6765_v25 = vadd.f32 %v6718_v44, %v6526_v57  ;;  %v2794_v16 = vpop.f32.mrb[23].mxu1 }
 0x235   : > { %6071 = vst [vmem:[%s9061_s29 + $0x40] sm:$0xff] %v6027_v35   ;;  %v5033_v54 = vadd.f32 %v6764_v4, %v9051_v48  ;;  %v6766_v13 = vadd.f32 %v4931_v53, %v2794_v16 }
 0x236   : > { %v5036_v60 = vadd.f32 %v6765_v25, %v9051_v48  ;;  %v5067_v27 = vmax.f32 %v5035_v7, 0.0 }
 0x237   : > { %v5034_v0 = vadd.f32 %v6766_v13, %v9051_v48  ;;  %v5065_v42 = vmax.f32 %v5033_v54, 0.0 }
 0x238   : > { %v5068_v46 = vmax.f32 %v5036_v60, 0.0  ;;  %v6721_v2 = vpop.f32.mrb[24].mxu0 }
 0x239   : > { %v5066_v17 = vmax.f32 %v5034_v0, 0.0  ;;  %v6529_v55 = vpop.f32.mrb[24].mxu1  ;;  %v4944_v49 = vpop.f32.mrb[25].mxu0 }
 0x23a   : > { %v6042_v28 = vpack.c.bf16 %v5068_v46, %v5067_v27  ;;  %v6767_v24 = vadd.f32 %v6721_v2, %v6529_v55  ;;  %v2807_v40 = vpop.f32.mrb[25].mxu1  ;;  %v6722_v21 = vpop.f32.mrb[26].mxu0 }
 0x23b   : > { %v6037_v8 = vpack.c.bf16 %v5066_v17, %v5065_v42  ;;  %v6768_v61 = vadd.f32 %v4944_v49, %v2807_v40  ;;  %v6530_v36 = vpop.f32.mrb[26].mxu1  ;;  %v4947_v47 = vpop.f32.mrb[27].mxu0 }
 0x23c   : > { %6074 = vst [vmem:[%s9061_s29 + $0x58] sm:$0xff] %v6042_v28   ;;  %v5039_v12 = vadd.f32 %v6767_v24, %v9051_v48  ;;  %v6769_v51 = vadd.f32 %v6722_v21, %v6530_v36  ;;  %v2810_v32 = vpop.f32.mrb[27].mxu1 }
 0x23d   : > { %6073 = vst [vmem:[%s9061_s29 + $0x50] sm:$0xff] %v6037_v8   ;;  %v5037_v37 = vadd.f32 %v6768_v61, %v9051_v48  ;;  %v6770_v5 = vadd.f32 %v4947_v47, %v2810_v32 }
 0x23e   : > { %v5040_v45 = vadd.f32 %v6769_v51, %v9051_v48  ;;  %v5071_v41 = vmax.f32 %v5039_v12, 0.0 }
 0x23f   : > { %v5038_v62 = vadd.f32 %v6770_v5, %v9051_v48  ;;  %v5069_v26 = vmax.f32 %v5037_v37, 0.0 }
 0x240   : > { %v5072_v6 = vmax.f32 %v5040_v45, 0.0  ;;  %v6725_v9 = vpop.f32.mrb[28].mxu0 }
 0x241   : > { %v5070_v34 = vmax.f32 %v5038_v62, 0.0  ;;  %v6533_v18 = vpop.f32.mrb[28].mxu1  ;;  %v4960_v33 = vpop.f32.mrb[29].mxu0 }
 0x242   : > { %v6052_v14 = vpack.c.bf16 %v5072_v6, %v5071_v41  ;;  %v6771_v10 = vadd.f32 %v6725_v9, %v6533_v18  ;;  %v2823_v39 = vpop.f32.mrb[29].mxu1  ;;  %v6726_v11 = vpop.f32.mrb[30].mxu0 }
 0x243   : > { %v6047_v50 = vpack.c.bf16 %v5070_v34, %v5069_v26  ;;  %v6772_v23 = vadd.f32 %v4960_v33, %v2823_v39  ;;  %v6534_v3 = vpop.f32.mrb[30].mxu1  ;;  %v4963_v58 = vpop.f32.mrb[31].mxu0 }
 0x244   : > { %6076 = vst [vmem:[%s9061_s29 + $0x68] sm:$0xff] %v6052_v14   ;;  %v5043_v22 = vadd.f32 %v6771_v10, %v9051_v48  ;;  %v6773_v59 = vadd.f32 %v6726_v11, %v6534_v3  ;;  %v2826_v30 = vpop.f32.mrb[31].mxu1 }
 0x245   : > { %6075 = vst [vmem:[%s9061_s29 + $0x60] sm:$0xff] %v6047_v50   ;;  %v5041_v19 = vadd.f32 %v6772_v23, %v9051_v48  ;;  %v6774_v52 = vadd.f32 %v4963_v58, %v2826_v30 }
 0x246   : > { %v5044_v15 = vadd.f32 %v6773_v59, %v9051_v48  ;;  %v5075_v38 = vmax.f32 %v5043_v22, 0.0 }
 0x247   : > { %v5042_v43 = vadd.f32 %v6774_v52, %v9051_v48  ;;  %v5073_v1 = vmax.f32 %v5041_v19, 0.0 }
 0x248   : > { %v5076_v56 = vmax.f32 %v5044_v15, 0.0 }
 0x249   : > { %v5074_v31 = vmax.f32 %v5042_v43, 0.0 }
 0x24a   : > { %v6062_v63 = vpack.c.bf16 %v5076_v56, %v5075_v38 }
 0x24b   : > { %v6057_v20 = vpack.c.bf16 %v5074_v31, %v5073_v1 }
 0x24c   : > { %6078 = vst [vmem:[%s9061_s29 + $0x78] sm:$0xff] %v6062_v63  }
 0x24d   : > { %6077 = vst [vmem:[%s9061_s29 + $0x70] sm:$0xff] %v6057_v20  }
 0x24e PF: > { %s13_s14 = sadd.s32 1, %s7236_s14   ;;  %s9190_s12 = smov %s7232_s13 }
 0x24f   : > { %p10_p5 = scmp.ge.s32.totalorder %s13_s14, 4   ;;  %s9191_s13 = smov %s9193_s15 }
 0x251   :  { %12 = sbr.rel (!%p10_p5) target bundleno = 2 (0x2), region = 72 }

</bundles_post_ra>
